<compile_context>
chip_gen: v6e
topology: v6e:2x2x1
jax: 0.10.0
libtpu: 0.0.40
codegen_flags: <defaults>
</compile_context>

<pallas_src>
import functools
import numpy as np
import jax
import jax.numpy as jnp
from jax.experimental import pallas as pl
from jax.experimental.pallas import tpu as pltpu


# ----------------------------------------------------------------------------
# Host-side construction of the (tiny) linear operators with PyTorch semantics
# ----------------------------------------------------------------------------
def _adaptive_pool_matrix(in_size, out_size):
    """Row i averages input range [floor(i*I/O), ceil((i+1)*I/O))  (PyTorch)."""
    m = np.zeros((out_size, in_size), dtype=np.float32)
    for i in range(out_size):
        start = (i * in_size) // out_size
        end = -(-((i + 1) * in_size) // out_size)  # ceil
        m[i, start:end] = 1.0 / float(end - start)
    return m


def _bilinear_matrix(out_size, in_size, align_corners):
    """F.interpolate(mode='bilinear') 1-D interpolation matrix (out, in)."""
    m = np.zeros((out_size, in_size), dtype=np.float32)
    for i in range(out_size):
        if in_size == 1:
            m[i, 0] = 1.0
            continue
        if align_corners:
            src = 0.0 if out_size == 1 else i * (in_size - 1) / (out_size - 1)
        else:
            src = (i + 0.5) * in_size / out_size - 0.5
            src = min(max(src, 0.0), float(in_size - 1))
        lo = int(np.floor(src))
        hi = min(lo + 1, in_size - 1)
        frac = src - lo
        m[i, lo] += 1.0 - frac
        m[i, hi] += frac
    return m


def _bn_fold(gamma, beta, mean, var, eps=1e-5):
    """Fold eval-mode BatchNorm into per-channel scale/shift (shape (1, C))."""
    scale = gamma / jnp.sqrt(var + eps)
    shift = beta - mean * scale
    return scale.reshape(1, -1), shift.reshape(1, -1)


def prepare_params(bins, branch_params, w3, scale3, shift3, H, W, align_corners):
    """Fold all per-bin operators/weights into the stacked forms the kernels use."""
    Cin = int(branch_params[0][0].shape[0])
    Cout = int(branch_params[0][0].shape[1])
    p_rows, u_cols = [], []
    for b in bins:
        ph = _adaptive_pool_matrix(H, b)
        pw = _adaptive_pool_matrix(W, b)
        uh = _bilinear_matrix(H, b, align_corners)
        uw = _bilinear_matrix(W, b, align_corners)
        p_rows.append(np.kron(ph, pw))            # (b*b, H*W)
        u_cols.append(np.kron(uh, uw))            # (H*W, b*b)
    p_all = np.concatenate(p_rows, axis=0)        # (BB, H*W)  stacked pools
    u_cat = np.concatenate(u_cols, axis=1)        # (H*W, BB)  stacked upsamples
    u_pad = np.pad(u_cat, ((W, W), (0, 0)))       # zero halo image rows
    BB = p_all.shape[0]
    Cb = Cout * len(bins)

    w_cat = np.concatenate([np.asarray(w) for (w, _, _) in branch_params], axis=1)
    scale_cat = np.concatenate([np.asarray(s).reshape(1, -1)
                                for (_, s, _) in branch_params], axis=1)
    shift_cat = np.concatenate([np.asarray(t).reshape(1, -1)
                                for (_, _, t) in branch_params], axis=1)
    mask = np.zeros((BB, Cb), np.float32)
    off = 0
    for bi, b in enumerate(bins):
        mask[off:off + b * b, bi * Cout:(bi + 1) * Cout] = 1.0
        off += b * b

    w3 = np.asarray(w3)                           # (9, Ctot, Cout), tap = dy*3+dx
    return dict(
        p_all=jnp.asarray(p_all, jnp.bfloat16),
        u_pad=jnp.asarray(u_pad, jnp.bfloat16),
        w_cat=jnp.asarray(w_cat, jnp.bfloat16),
        scale_cat=jnp.asarray(scale_cat, jnp.float32),
        shift_cat=jnp.asarray(shift_cat, jnp.float32),
        mask=jnp.asarray(mask, jnp.float32),
        w3x=jnp.asarray(w3[:, :Cin, :], jnp.bfloat16),   # conv taps over x channels
        w3b=jnp.asarray(w3[:, Cin:, :], jnp.bfloat16),   # conv taps over branch channels
        scale3=jnp.asarray(scale3, jnp.float32).reshape(1, -1),
        shift3=jnp.asarray(shift3, jnp.float32).reshape(1, -1),
    )


# ----------------------------------------------------------------------------
# Kernel A: ALL pyramid branches fused (pool -> 1x1 conv -> BN -> ReLU),
# plus emission of a row-padded copy of x (two zero image rows) so the
# bottleneck's 3x3 halo needs no host-side padding and no boundary branches.
# ----------------------------------------------------------------------------
def branches_kernel(x_ref, p_ref, w_ref, sc_ref, sh_ref, m_ref,
                    y_ref, xpad_ref, *, H, W):
    x = x_ref[0]                                                    # (H*W, Cin) bf16
    # pooled rows for every bin at once (BB, Cin), f32 accumulation on the MXU
    pooled = jnp.dot(p_ref[...], x, preferred_element_type=jnp.float32)
    # every 1x1 conv at once (BB, 4*Cout); cross-branch columns are masked away
    y = jnp.dot(pooled.astype(jnp.bfloat16), w_ref[...],
                preferred_element_type=jnp.float32)
    y = jnp.maximum(y * sc_ref[...] + sh_ref[...], 0.0) * m_ref[...]
    y_ref[0] = y.astype(y_ref.dtype)

    # row-padded x: one zero image row above and below (the 3x3 halo).
    zrow = jnp.zeros((W, x.shape[-1]), x.dtype)
    xpad_ref[0, 0:W, :] = zrow
    xpad_ref[0, W:W + H * W, :] = x
    xpad_ref[0, W + H * W:, :] = zrow


def ppm_branches(x_flat, p_all, w_cat, sc_cat, sh_cat, mask, H, W):
    N, HW, Cin = x_flat.shape
    BB = p_all.shape[0]
    Cb = w_cat.shape[1]
    HP = (H + 2) * W
    kern = functools.partial(branches_kernel, H=H, W=W)
    return pl.pallas_call(
        kern,
        out_shape=(jax.ShapeDtypeStruct((N, BB, Cb), jnp.bfloat16),
                   jax.ShapeDtypeStruct((N, HP, Cin), jnp.bfloat16)),
        grid=(N,),
        in_specs=[
            pl.BlockSpec((1, HW, Cin), lambda n: (n, 0, 0)),
            pl.BlockSpec((BB, HW), lambda n: (0, 0)),
            pl.BlockSpec((Cin, Cb), lambda n: (0, 0)),
            pl.BlockSpec((1, Cb), lambda n: (0, 0)),
            pl.BlockSpec((1, Cb), lambda n: (0, 0)),
            pl.BlockSpec((BB, Cb), lambda n: (0, 0)),
        ],
        out_specs=(pl.BlockSpec((1, BB, Cb), lambda n: (n, 0, 0)),
                   pl.BlockSpec((1, HP, Cin), lambda n: (n, 0, 0))),
        compiler_params=pltpu.CompilerParams(dimension_semantics=("parallel",)),
    )(x_flat, p_all, w_cat, sc_cat, sh_cat, mask)


# ----------------------------------------------------------------------------
# Kernel B: bilinear upsample of the branch activations + implicit channel
# concat + 3x3 conv (zero padded) + BN + ReLU, tiled over (batch, row blocks,
# branch-channel chunks).  The concat / padded activations never hit HBM.
# ----------------------------------------------------------------------------
def bottleneck_kernel(xpad_ref, upad_ref, y_ref, wx_ref, wb_ref, sc_ref, sh_ref,
                      o_ref, acc_ref, bs_ref, *, W, TH):
    THW = TH * W
    SLAB = (TH + 2) * W
    kc = pl.program_id(2)
    r0 = pl.program_id(1) * THW              # block start (padded-flat rows)

    # column index j of every flat output row, for the left/right edge masks
    j = jax.lax.broadcasted_iota(jnp.int32, (THW, 1), 0) % W

    def shifted(t, dx):
        # tap contribution: out[s] += t[s + dx - 1], zero across image edges.
        # Shift is applied to the (rows, Cout) *result*, never to the wide input.
        if dx == 1:
            return t
        if dx == 0:
            return jnp.where(j > 0, jnp.roll(t, 1, axis=0), 0.0)
        return jnp.where(j < W - 1, jnp.roll(t, -1, axis=0), 0.0)

    # ---- x part of the 3x3 conv: once per (n, rb), folded into the init ----
    @pl.when(kc == 0)
    def _():
        acc = jnp.zeros(acc_ref.shape, jnp.float32)
        for dy in range(3):
            xrows = xpad_ref[0, pl.ds(r0 + dy * W, THW), :]          # (THW, Cin)
            for dx in range(3):
                t = jnp.dot(xrows, wx_ref[dy * 3 + dx],
                            preferred_element_type=jnp.float32)
                acc = acc + shifted(t, dx)
        acc_ref[...] = acc

    # ---- branch part for this channel chunk ----
    # regenerate the upsampled branch activations for this row block (+ halo);
    # halo rows outside the image are zero because U_pad has zero rows there.
    bs_ref[...] = jnp.dot(upad_ref[pl.ds(r0, SLAB), :], y_ref[0],
                          preferred_element_type=jnp.float32).astype(bs_ref.dtype)
    acc = jnp.zeros(acc_ref.shape, jnp.float32)
    for dy in range(3):
        brows = bs_ref[dy * W:dy * W + THW, :]                       # (THW, TC)
        for dx in range(3):
            t = jnp.dot(brows, wb_ref[dy * 3 + dx],
                        preferred_element_type=jnp.float32)
            acc = acc + shifted(t, dx)
    acc_ref[...] += acc

    # ---- BN + ReLU + store on the last channel chunk ----
    @pl.when(kc == pl.num_programs(2) - 1)
    def _():
        o_ref[0] = jnp.maximum(acc_ref[...] * sc_ref[...] + sh_ref[...],
                               0.0).astype(o_ref.dtype)


def ppm_bottleneck(x_rowpad, u_pad, y, w3x, w3b, scale3, shift3, *,
                   H, W, Cout, tile_h, cb_chunk):
    N, HP, Cin = x_rowpad.shape
    BB = u_pad.shape[1]
    Cb = y.shape[-1]
    assert H % tile_h == 0, "tile_h must divide H"
    assert (tile_h * W) % 8 == 0, "row block must be sublane aligned"
    assert Cb % cb_chunk == 0, "cb_chunk must divide branch channels"
    RB = H // tile_h
    KC = Cb // cb_chunk
    THW = tile_h * W
    SLAB = (tile_h + 2) * W
    kern = functools.partial(bottleneck_kernel, W=W, TH=tile_h)
    return pl.pallas_call(
        kern,
        out_shape=jax.ShapeDtypeStruct((N, H * W, Cout), jnp.float32),
        grid=(N, RB, KC),
        in_specs=[
            pl.BlockSpec((1, HP, Cin), lambda n, r, k: (n, 0, 0)),   # x: 1 fetch / n
            pl.BlockSpec((HP, BB), lambda n, r, k: (0, 0)),          # U: 1 fetch
            pl.BlockSpec((1, BB, cb_chunk), lambda n, r, k: (n, 0, k)),
            pl.BlockSpec((9, Cin, Cout), lambda n, r, k: (0, 0, 0)),
            pl.BlockSpec((9, cb_chunk, Cout), lambda n, r, k: (0, k, 0)),
            pl.BlockSpec((1, Cout), lambda n, r, k: (0, 0)),
            pl.BlockSpec((1, Cout), lambda n, r, k: (0, 0)),
        ],
        out_specs=pl.BlockSpec((1, THW, Cout), lambda n, r, k: (n, r, 0)),
        scratch_shapes=[pltpu.VMEM((THW, Cout), jnp.float32),        # conv accumulator
                        pltpu.VMEM((SLAB, cb_chunk), jnp.bfloat16)], # upsampled slab
        compiler_params=pltpu.CompilerParams(
            dimension_semantics=("parallel", "parallel", "arbitrary")),
        # NOTE: at production sizes raise vmem_limit_bytes here (large tiles on
        # v5e/v6e 128 MiB VMEM, smaller on v7x 64 MiB).
    )(x_rowpad, u_pad, y, w3x, w3b, scale3, shift3)


# ----------------------------------------------------------------------------
# Full forward (glue + kernels); input/output in NCHW like the PyTorch module.
# ----------------------------------------------------------------------------
def ppm_forward(x_nchw, fused, *, tile_h=8, cb_chunk=None):
    N, Cin, H, W = x_nchw.shape
    Cout = fused['scale3'].shape[-1]
    Cb = fused['w_cat'].shape[1]
    x_flat = jnp.transpose(x_nchw, (0, 2, 3, 1)).reshape(N, H * W, Cin)
    x_flat = x_flat.astype(jnp.bfloat16)

    y, x_rowpad = ppm_branches(x_flat, fused['p_all'], fused['w_cat'],
                               fused['scale_cat'], fused['shift_cat'],
                               fused['mask'], H, W)
    cbc = Cb if cb_chunk is None else cb_chunk
    out_flat = ppm_bottleneck(x_rowpad, fused['u_pad'], y,
                              fused['w3x'], fused['w3b'],
                              fused['scale3'], fused['shift3'],
                              H=H, W=W, Cout=Cout, tile_h=tile_h, cb_chunk=cbc)
    return jnp.transpose(out_flat.reshape(N, H, W, Cout), (0, 3, 1, 2))


# ----------------------------------------------------------------------------
# Pure-JAX f32 reference (PyTorch semantics) for validation
# ----------------------------------------------------------------------------
def ppm_reference(x_nchw, bins, branch_params, w3, scale3, shift3, align_corners):
    N, Cin, H, W = x_nchw.shape
    Cout = branch_params[0][0].shape[1]
    x_flat = jnp.transpose(x_nchw, (0, 2, 3, 1)).reshape(N, H * W, Cin)
    lvls = [x_flat]
    for (w, sc, sh), b in zip(branch_params, bins):
        P = jnp.asarray(np.kron(_adaptive_pool_matrix(H, b), _adaptive_pool_matrix(W, b)))
        U = jnp.asarray(np.kron(_bilinear_matrix(H, b, align_corners),
                                _bilinear_matrix(W, b, align_corners)))
        pooled = jnp.einsum('ps,nsc->npc', P, x_flat)
        ybr = jnp.maximum(jnp.einsum('npc,co->npo', pooled, w) * sc + sh, 0.0)
        lvls.append(jnp.einsum('sp,npo->nso', U, ybr))
    Ctot = Cin + Cout * len(bins)
    cat = jnp.concatenate(lvls, axis=-1).reshape(N, H, W, Ctot)
    w_hwio = jnp.asarray(w3).reshape(3, 3, Ctot, Cout)
    conv = jax.lax.conv_general_dilated(cat, w_hwio, (1, 1), 'SAME',
                                        dimension_numbers=('NHWC', 'HWIO', 'NHWC'))
    out = jnp.maximum(conv * scale3 + shift3, 0.0)
    return jnp.transpose(out, (0, 3, 1, 2))


# ----------------------------------------------------------------------------
if __name__ == "__main__":
    N, Cin, H, W = 2, 4, 16, 16
    Cout = 4
    bins = (1, 2, 3, 6)
    align_corners = False

    key = jax.random.PRNGKey(0)
    k_x, k_p = jax.random.split(key)
    x_nchw = jax.random.normal(k_x, (N, Cin, H, W), jnp.float32)

    # Deterministic synthetic parameters (eval-mode BN folded to scale/shift).
    bkeys = jax.random.split(k_p, len(bins) * 5 + 5)
    idx = 0
    branch_params = []
    for _b in bins:
        w = jax.random.normal(bkeys[idx], (Cin, Cout), jnp.float32) * 0.1; idx += 1
        gamma = 0.5 + jax.random.uniform(bkeys[idx], (Cout,), jnp.float32); idx += 1
        beta = jax.random.normal(bkeys[idx], (Cout,), jnp.float32) * 0.1; idx += 1
        mean = jax.random.normal(bkeys[idx], (Cout,), jnp.float32) * 0.1; idx += 1
        var = 0.5 + jax.random.uniform(bkeys[idx], (Cout,), jnp.float32); idx += 1
        scale, shift = _bn_fold(gamma, beta, mean, var)
        branch_params.append((w, scale, shift))

    Ctot = Cin + Cout * len(bins)
    w3 = jax.random.normal(bkeys[idx], (9, Ctot, Cout), jnp.float32) * 0.05; idx += 1
    gamma3 = 0.5 + jax.random.uniform(bkeys[idx], (Cout,), jnp.float32); idx += 1
    beta3 = jax.random.normal(bkeys[idx], (Cout,), jnp.float32) * 0.1; idx += 1
    mean3 = jax.random.normal(bkeys[idx], (Cout,), jnp.float32) * 0.1; idx += 1
    var3 = 0.5 + jax.random.uniform(bkeys[idx], (Cout,), jnp.float32); idx += 1
    scale3, shift3 = _bn_fold(gamma3, beta3, mean3, var3)

    fused = prepare_params(bins, branch_params, w3, scale3, shift3, H, W,
                           align_corners)

    fwd = jax.jit(functools.partial(ppm_forward, tile_h=8))
    out = fwd(x_nchw, fused)
    out = jax.block_until_ready(out)
    assert out.shape == (N, Cout, H, W)

    ref = ppm_reference(x_nchw, bins, branch_params, w3, scale3, shift3,
                        align_corners)
    # Kernel runs activations/weights in bf16 (f32 accumulation); tolerance
    # accounts for bf16 rounding vs. the f32 reference.
    np.testing.assert_allclose(np.asarray(out), np.asarray(ref),
                               rtol=3e-2, atol=2e-2)
    print("KERNEL_OK")
</pallas_src>

<mosaic_0001>
module attributes {stable_mosaic.version = 11 : i64} {
  func.func @branches_kernel(%arg0: i32, %arg1: memref<1x256x4xbf16, #tpu.memory_space<vmem>>, %arg2: memref<50x256xbf16, #tpu.memory_space<vmem>>, %arg3: memref<4x16xbf16, #tpu.memory_space<vmem>>, %arg4: memref<1x16xf32, #tpu.memory_space<vmem>>, %arg5: memref<1x16xf32, #tpu.memory_space<vmem>>, %arg6: memref<50x16xf32, #tpu.memory_space<vmem>>, %arg7: memref<1x50x16xbf16, #tpu.memory_space<vmem>>, %arg8: memref<1x288x4xbf16, #tpu.memory_space<vmem>>) attributes {dimension_semantics = [#tpu.dimension_semantics<parallel>], iteration_bounds = array<i64: 2>, scalar_prefetch = 0 : i64, scratch_operands = 0 : i64, tpu.core_type = #tpu.core_type<tc>, window_params = [{transform_indices = @transform_0, window_bounds = array<i64: 1, 256, 4>}, {pipeline_mode = #tpu.pipeline_mode<synchronous>, transform_indices = @transform_1, window_bounds = array<i64: 50, 256>}, {pipeline_mode = #tpu.pipeline_mode<synchronous>, transform_indices = @transform_2, window_bounds = array<i64: 4, 16>}, {pipeline_mode = #tpu.pipeline_mode<synchronous>, transform_indices = @transform_3, window_bounds = array<i64: 1, 16>}, {pipeline_mode = #tpu.pipeline_mode<synchronous>, transform_indices = @transform_4, window_bounds = array<i64: 1, 16>}, {pipeline_mode = #tpu.pipeline_mode<synchronous>, transform_indices = @transform_5, window_bounds = array<i64: 50, 16>}, {transform_indices = @transform_6, window_bounds = array<i64: 1, 50, 16>}, {transform_indices = @transform_7, window_bounds = array<i64: 1, 288, 4>}]} {
    %c0 = arith.constant 0 : index
    %c0_0 = arith.constant 0 : index
    %c0_1 = arith.constant 0 : index
    %0 = vector.load %arg1[%c0, %c0_0, %c0_1] : memref<1x256x4xbf16, #tpu.memory_space<vmem>>, vector<1x256x4xbf16>
    %1 = vector.shape_cast %0 : vector<1x256x4xbf16> to vector<256x4xbf16>
    %c0_2 = arith.constant 0 : index
    %c0_3 = arith.constant 0 : index
    %2 = vector.load %arg2[%c0_2, %c0_3] : memref<50x256xbf16, #tpu.memory_space<vmem>>, vector<50x256xbf16>
    %cst = arith.constant dense<0.000000e+00> : vector<50x4xf32>
    %3 = tpu.matmul %2, %1, %cst {dimension_numbers = #tpu.dot_dimension_numbers<[1], [0], [0], [1], [0, 0, 1, 1], [], []>} : vector<50x256xbf16>, vector<256x4xbf16>, vector<50x4xf32> -> vector<50x4xf32>
    %4 = arith.truncf %3 : vector<50x4xf32> to vector<50x4xbf16>
    %c0_4 = arith.constant 0 : index
    %c0_5 = arith.constant 0 : index
    %5 = vector.load %arg3[%c0_4, %c0_5] : memref<4x16xbf16, #tpu.memory_space<vmem>>, vector<4x16xbf16>
    %cst_6 = arith.constant dense<0.000000e+00> : vector<50x16xf32>
    %6 = tpu.matmul %4, %5, %cst_6 {dimension_numbers = #tpu.dot_dimension_numbers<[1], [0], [0], [1], [0, 0, 1, 1], [], []>} : vector<50x4xbf16>, vector<4x16xbf16>, vector<50x16xf32> -> vector<50x16xf32>
    %c0_7 = arith.constant 0 : index
    %c0_8 = arith.constant 0 : index
    %7 = vector.load %arg4[%c0_7, %c0_8] : memref<1x16xf32, #tpu.memory_space<vmem>>, vector<1x16xf32>
    %8 = vector.broadcast %7 : vector<1x16xf32> to vector<50x16xf32>
    %9 = arith.mulf %6, %8 : vector<50x16xf32>
    %c0_9 = arith.constant 0 : index
    %c0_10 = arith.constant 0 : index
    %10 = vector.load %arg5[%c0_9, %c0_10] : memref<1x16xf32, #tpu.memory_space<vmem>>, vector<1x16xf32>
    %11 = vector.broadcast %10 : vector<1x16xf32> to vector<50x16xf32>
    %12 = arith.addf %9, %11 : vector<50x16xf32>
    %cst_11 = arith.constant 0.000000e+00 : f32
    %13 = vector.broadcast %cst_11 : f32 to vector<50x16xf32>
    %14 = arith.maximumf %12, %13 : vector<50x16xf32>
    %c0_12 = arith.constant 0 : index
    %c0_13 = arith.constant 0 : index
    %15 = vector.load %arg6[%c0_12, %c0_13] : memref<50x16xf32, #tpu.memory_space<vmem>>, vector<50x16xf32>
    %16 = arith.mulf %14, %15 : vector<50x16xf32>
    %17 = arith.truncf %16 : vector<50x16xf32> to vector<50x16xbf16>
    %c0_14 = arith.constant 0 : index
    %c0_15 = arith.constant 0 : index
    %c0_16 = arith.constant 0 : index
    %18 = vector.load %arg7[%c0_14, %c0_15, %c0_16] : memref<1x50x16xbf16, #tpu.memory_space<vmem>>, vector<1x50x16xbf16>
    %19 = vector.shape_cast %18 : vector<1x50x16xbf16> to vector<50x16xbf16>
    %20 = vector.shape_cast %17 : vector<50x16xbf16> to vector<1x50x16xbf16>
    tpu.vector_store %arg7[%c0_14, %c0_15, %c0_16], %20 {strides = array<i32>} : memref<1x50x16xbf16, #tpu.memory_space<vmem>>, vector<1x50x16xbf16>,
    %cst_17 = arith.constant 0.000000e+00 : bf16
    %21 = vector.broadcast %cst_17 : bf16 to vector<16x4xbf16>
    %c0_18 = arith.constant 0 : index
    %c0_19 = arith.constant 0 : index
    %c0_20 = arith.constant 0 : index
    %22 = vector.load %arg8[%c0_18, %c0_19, %c0_20] : memref<1x288x4xbf16, #tpu.memory_space<vmem>>, vector<1x16x4xbf16>
    %23 = vector.shape_cast %22 : vector<1x16x4xbf16> to vector<16x4xbf16>
    %24 = vector.shape_cast %21 : vector<16x4xbf16> to vector<1x16x4xbf16>
    tpu.vector_store %arg8[%c0_18, %c0_19, %c0_20], %24 {strides = array<i32>} : memref<1x288x4xbf16, #tpu.memory_space<vmem>>, vector<1x16x4xbf16>,
    %c0_21 = arith.constant 0 : index
    %c16 = arith.constant 16 : index
    %c0_22 = arith.constant 0 : index
    %25 = vector.load %arg8[%c0_21, %c16, %c0_22] : memref<1x288x4xbf16, #tpu.memory_space<vmem>>, vector<1x256x4xbf16>
    %26 = vector.shape_cast %25 : vector<1x256x4xbf16> to vector<256x4xbf16>
    %27 = vector.shape_cast %1 : vector<256x4xbf16> to vector<1x256x4xbf16>
    tpu.vector_store %arg8[%c0_21, %c16, %c0_22], %27 {strides = array<i32>} : memref<1x288x4xbf16, #tpu.memory_space<vmem>>, vector<1x256x4xbf16>,
    %c0_23 = arith.constant 0 : index
    %c272 = arith.constant 272 : index
    %c0_24 = arith.constant 0 : index
    %28 = vector.load %arg8[%c0_23, %c272, %c0_24] : memref<1x288x4xbf16, #tpu.memory_space<vmem>>, vector<1x16x4xbf16>
    %29 = vector.shape_cast %28 : vector<1x16x4xbf16> to vector<16x4xbf16>
    %30 = vector.shape_cast %21 : vector<16x4xbf16> to vector<1x16x4xbf16>
    tpu.vector_store %arg8[%c0_23, %c272, %c0_24], %30 {strides = array<i32>} : memref<1x288x4xbf16, #tpu.memory_space<vmem>>, vector<1x16x4xbf16>,
    return
  }
  func.func @transform_0(%arg0: i32) -> (i32, i32, i32) {
    %c0_i32 = arith.constant 0 : i32
    %c0_i32_0 = arith.constant 0 : i32
    %c0_i32_1 = arith.constant 0 : i32
    return %arg0, %c0_i32, %c0_i32_0 : i32, i32, i32
  }
  func.func @transform_1(%arg0: i32) -> (i32, i32) {
    %c0_i32 = arith.constant 0 : i32
    %c0_i32_0 = arith.constant 0 : i32
    %c0_i32_1 = arith.constant 0 : i32
    return %c0_i32, %c0_i32_0 : i32, i32
  }
  func.func @transform_2(%arg0: i32) -> (i32, i32) {
    %c0_i32 = arith.constant 0 : i32
    %c0_i32_0 = arith.constant 0 : i32
    %c0_i32_1 = arith.constant 0 : i32
    return %c0_i32, %c0_i32_0 : i32, i32
  }
  func.func @transform_3(%arg0: i32) -> (i32, i32) {
    %c0_i32 = arith.constant 0 : i32
    %c0_i32_0 = arith.constant 0 : i32
    %c0_i32_1 = arith.constant 0 : i32
    return %c0_i32, %c0_i32_0 : i32, i32
  }
  func.func @transform_4(%arg0: i32) -> (i32, i32) {
    %c0_i32 = arith.constant 0 : i32
    %c0_i32_0 = arith.constant 0 : i32
    %c0_i32_1 = arith.constant 0 : i32
    return %c0_i32, %c0_i32_0 : i32, i32
  }
  func.func @transform_5(%arg0: i32) -> (i32, i32) {
    %c0_i32 = arith.constant 0 : i32
    %c0_i32_0 = arith.constant 0 : i32
    %c0_i32_1 = arith.constant 0 : i32
    return %c0_i32, %c0_i32_0 : i32, i32
  }
  func.func @transform_6(%arg0: i32) -> (i32, i32, i32) {
    %c0_i32 = arith.constant 0 : i32
    %c0_i32_0 = arith.constant 0 : i32
    %c0_i32_1 = arith.constant 0 : i32
    return %arg0, %c0_i32, %c0_i32_0 : i32, i32, i32
  }
  func.func @transform_7(%arg0: i32) -> (i32, i32, i32) {
    %c0_i32 = arith.constant 0 : i32
    %c0_i32_0 = arith.constant 0 : i32
    %c0_i32_1 = arith.constant 0 : i32
    return %arg0, %c0_i32, %c0_i32_0 : i32, i32, i32
  }
}

module attributes {stable_mosaic.version = 11 : i64} {
  func.func @bottleneck_kernel(%arg0: i32, %arg1: i32, %arg2: i32, %arg3: memref<1x288x4xbf16, #tpu.memory_space<vmem>>, %arg4: memref<288x50xbf16, #tpu.memory_space<vmem>>, %arg5: memref<1x50x16xbf16, #tpu.memory_space<vmem>>, %arg6: memref<9x4x4xbf16, #tpu.memory_space<vmem>>, %arg7: memref<9x16x4xbf16, #tpu.memory_space<vmem>>, %arg8: memref<1x4xf32, #tpu.memory_space<vmem>>, %arg9: memref<1x4xf32, #tpu.memory_space<vmem>>, %arg10: memref<1x128x4xf32, #tpu.memory_space<vmem>>, %arg11: memref<128x4xf32, #tpu.memory_space<vmem>>, %arg12: memref<160x16xbf16, #tpu.memory_space<vmem>>) attributes {dimension_semantics = [#tpu.dimension_semantics<parallel>, #tpu.dimension_semantics<parallel>, #tpu.dimension_semantics<arbitrary>], iteration_bounds = array<i64: 2, 2, 1>, scalar_prefetch = 0 : i64, scratch_operands = 2 : i64, tpu.core_type = #tpu.core_type<tc>, window_params = [{transform_indices = @transform_0, window_bounds = array<i64: 1, 288, 4>}, {pipeline_mode = #tpu.pipeline_mode<synchronous>, transform_indices = @transform_1, window_bounds = array<i64: 288, 50>}, {transform_indices = @transform_2, window_bounds = array<i64: 1, 50, 16>}, {pipeline_mode = #tpu.pipeline_mode<synchronous>, transform_indices = @transform_3, window_bounds = array<i64: 9, 4, 4>}, {transform_indices = @transform_4, window_bounds = array<i64: 9, 16, 4>}, {pipeline_mode = #tpu.pipeline_mode<synchronous>, transform_indices = @transform_5, window_bounds = array<i64: 1, 4>}, {pipeline_mode = #tpu.pipeline_mode<synchronous>, transform_indices = @transform_6, window_bounds = array<i64: 1, 4>}, {transform_indices = @transform_7, window_bounds = array<i64: 1, 128, 4>}]} {
    %c128_i32 = arith.constant 128 : i32
    %0 = arith.muli %arg1, %c128_i32 : i32
    %1 = tpu.iota {dimensions = array<i32: 0>} : vector<128x1xi32>
    %c16_i32 = arith.constant 16 : i32
    %c0_i32 = arith.constant 0 : i32
    %2 = arith.cmpi eq, %c16_i32, %c0_i32 : i32
    %c1_i32 = arith.constant 1 : i32
    %3 = arith.select %2, %c1_i32, %c16_i32 : i32
    %4 = vector.broadcast %3 : i32 to vector<128x1xi32>
    %5 = arith.remsi %1, %4 : vector<128x1xi32>
    %c0_i32_0 = arith.constant 0 : i32
    %6 = vector.broadcast %c0_i32_0 : i32 to vector<128x1xi32>
    %7 = arith.cmpi ne, %5, %6 : vector<128x1xi32>
    %c0_i32_1 = arith.constant 0 : i32
    %8 = vector.broadcast %c0_i32_1 : i32 to vector<128x1xi32>
    %9 = arith.cmpi slt, %5, %8 : vector<128x1xi32>
    %c0_i32_2 = arith.constant 0 : i32
    %10 = arith.cmpi slt, %3, %c0_i32_2 : i32
    %11 = vector.broadcast %10 : i1 to vector<128x1xi1>
    %12 = vector.broadcast %11 : vector<128x1xi1> to vector<128x1xi1>
    %13 = arith.xori %9, %12 : vector<128x1xi1>
    %14 = arith.andi %13, %7 : vector<128x1xi1>
    %15 = vector.broadcast %3 : i32 to vector<128x1xi32>
    %16 = arith.addi %5, %15 : vector<128x1xi32>
    %17 = arith.select %14, %16, %5 : vector<128x1xi1>, vector<128x1xi32>
    %c0_i32_3 = arith.constant 0 : i32
    %18 = arith.cmpi eq, %arg2, %c0_i32_3 : i32
    %19 = arith.extui %18 : i1 to i32
    %c0_i32_4 = arith.constant 0 : i32
    %20 = arith.cmpi ne, %19, %c0_i32_4 : i32
    scf.if %20 {
      %cst_60 = arith.constant 0.000000e+00 : f32
      %128 = vector.broadcast %cst_60 : f32 to vector<128x4xf32>
      %c0_i32_61 = arith.constant 0 : i32
      %129 = arith.addi %0, %c0_i32_61 : i32
      %c0_62 = arith.constant 0 : index
      %130 = arith.index_cast %129 : i32 to index
      %c0_63 = arith.constant 0 : index
      %131 = vector.load %arg3[%c0_62, %130, %c0_63] : memref<1x288x4xbf16, #tpu.memory_space<vmem>>, vector<1x128x4xbf16>
      %132 = vector.shape_cast %131 : vector<1x128x4xbf16> to vector<128x4xbf16>
      %c0_64 = arith.constant 0 : index
      %c0_65 = arith.constant 0 : index
      %c0_66 = arith.constant 0 : index
      %133 = vector.load %arg6[%c0_64, %c0_65, %c0_66] : memref<9x4x4xbf16, #tpu.memory_space<vmem>>, vector<1x4x4xbf16>
      %134 = vector.shape_cast %133 : vector<1x4x4xbf16> to vector<4x4xbf16>
      %cst_67 = arith.constant dense<0.000000e+00> : vector<128x4xf32>
      %135 = tpu.matmul %132, %134, %cst_67 {dimension_numbers = #tpu.dot_dimension_numbers<[1], [0], [0], [1], [0, 0, 1, 1], [], []>} : vector<128x4xbf16>, vector<4x4xbf16>, vector<128x4xf32> -> vector<128x4xf32>
      %c0_i32_68 = arith.constant 0 : i32
      %136 = vector.broadcast %c0_i32_68 : i32 to vector<128x1xi32>
      %137 = arith.cmpi sgt, %17, %136 : vector<128x1xi32>
      %138 = vector.extract_strided_slice %135 {offsets = [127, 0], sizes = [1, 4], strides = [1, 1]} : vector<128x4xf32> to vector<1x4xf32>
      %139 = vector.extract_strided_slice %135 {offsets = [0, 0], sizes = [127, 4], strides = [1, 1]} : vector<128x4xf32> to vector<127x4xf32>
      %140 = tpu.concatenate %138, %139 in 0 : vector<1x4xf32>, vector<127x4xf32> -> vector<128x4xf32>
      %cst_69 = arith.constant 0.000000e+00 : f32
      %141 = vector.shape_cast %137 : vector<128x1xi1> to vector<128x1xi1>
      %142 = vector.broadcast %141 : vector<128x1xi1> to vector<128x4xi1>
      %143 = vector.broadcast %cst_69 : f32 to vector<128x4xf32>
      %144 = arith.select %142, %140, %143 : vector<128x4xi1>, vector<128x4xf32>
      %145 = arith.addf %128, %144 : vector<128x4xf32>
      %c1_70 = arith.constant 1 : index
      %c0_71 = arith.constant 0 : index
      %c0_72 = arith.constant 0 : index
      %146 = vector.load %arg6[%c1_70, %c0_71, %c0_72] : memref<9x4x4xbf16, #tpu.memory_space<vmem>>, vector<1x4x4xbf16>
      %147 = vector.shape_cast %146 : vector<1x4x4xbf16> to vector<4x4xbf16>
      %cst_73 = arith.constant dense<0.000000e+00> : vector<128x4xf32>
      %148 = tpu.matmul %132, %147, %cst_73 {dimension_numbers = #tpu.dot_dimension_numbers<[1], [0], [0], [1], [0, 0, 1, 1], [], []>} : vector<128x4xbf16>, vector<4x4xbf16>, vector<128x4xf32> -> vector<128x4xf32>
      %149 = arith.addf %145, %148 : vector<128x4xf32>
      %c2_74 = arith.constant 2 : index
      %c0_75 = arith.constant 0 : index
      %c0_76 = arith.constant 0 : index
      %150 = vector.load %arg6[%c2_74, %c0_75, %c0_76] : memref<9x4x4xbf16, #tpu.memory_space<vmem>>, vector<1x4x4xbf16>
      %151 = vector.shape_cast %150 : vector<1x4x4xbf16> to vector<4x4xbf16>
      %cst_77 = arith.constant dense<0.000000e+00> : vector<128x4xf32>
      %152 = tpu.matmul %132, %151, %cst_77 {dimension_numbers = #tpu.dot_dimension_numbers<[1], [0], [0], [1], [0, 0, 1, 1], [], []>} : vector<128x4xbf16>, vector<4x4xbf16>, vector<128x4xf32> -> vector<128x4xf32>
      %c15_i32_78 = arith.constant 15 : i32
      %153 = vector.broadcast %c15_i32_78 : i32 to vector<128x1xi32>
      %154 = arith.cmpi slt, %17, %153 : vector<128x1xi32>
      %155 = vector.extract_strided_slice %152 {offsets = [1, 0], sizes = [127, 4], strides = [1, 1]} : vector<128x4xf32> to vector<127x4xf32>
      %156 = vector.extract_strided_slice %152 {offsets = [0, 0], sizes = [1, 4], strides = [1, 1]} : vector<128x4xf32> to vector<1x4xf32>
      %157 = tpu.concatenate %155, %156 in 0 : vector<127x4xf32>, vector<1x4xf32> -> vector<128x4xf32>
      %cst_79 = arith.constant 0.000000e+00 : f32
      %158 = vector.shape_cast %154 : vector<128x1xi1> to vector<128x1xi1>
      %159 = vector.broadcast %158 : vector<128x1xi1> to vector<128x4xi1>
      %160 = vector.broadcast %cst_79 : f32 to vector<128x4xf32>
      %161 = arith.select %159, %157, %160 : vector<128x4xi1>, vector<128x4xf32>
      %162 = arith.addf %149, %161 : vector<128x4xf32>
      %c16_i32_80 = arith.constant 16 : i32
      %163 = arith.addi %0, %c16_i32_80 : i32
      %c0_81 = arith.constant 0 : index
      %164 = arith.index_cast %163 : i32 to index
      %c0_82 = arith.constant 0 : index
      %165 = vector.load %arg3[%c0_81, %164, %c0_82] : memref<1x288x4xbf16, #tpu.memory_space<vmem>>, vector<1x128x4xbf16>
      %166 = vector.shape_cast %165 : vector<1x128x4xbf16> to vector<128x4xbf16>
      %c3_83 = arith.constant 3 : index
      %c0_84 = arith.constant 0 : index
      %c0_85 = arith.constant 0 : index
      %167 = vector.load %arg6[%c3_83, %c0_84, %c0_85] : memref<9x4x4xbf16, #tpu.memory_space<vmem>>, vector<1x4x4xbf16>
      %168 = vector.shape_cast %167 : vector<1x4x4xbf16> to vector<4x4xbf16>
      %cst_86 = arith.constant dense<0.000000e+00> : vector<128x4xf32>
      %169 = tpu.matmul %166, %168, %cst_86 {dimension_numbers = #tpu.dot_dimension_numbers<[1], [0], [0], [1], [0, 0, 1, 1], [], []>} : vector<128x4xbf16>, vector<4x4xbf16>, vector<128x4xf32> -> vector<128x4xf32>
      %c0_i32_87 = arith.constant 0 : i32
      %170 = vector.broadcast %c0_i32_87 : i32 to vector<128x1xi32>
      %171 = arith.cmpi sgt, %17, %170 : vector<128x1xi32>
      %172 = vector.extract_strided_slice %169 {offsets = [127, 0], sizes = [1, 4], strides = [1, 1]} : vector<128x4xf32> to vector<1x4xf32>
      %173 = vector.extract_strided_slice %169 {offsets = [0, 0], sizes = [127, 4], strides = [1, 1]} : vector<128x4xf32> to vector<127x4xf32>
      %174 = tpu.concatenate %172, %173 in 0 : vector<1x4xf32>, vector<127x4xf32> -> vector<128x4xf32>
      %cst_88 = arith.constant 0.000000e+00 : f32
      %175 = vector.shape_cast %171 : vector<128x1xi1> to vector<128x1xi1>
      %176 = vector.broadcast %175 : vector<128x1xi1> to vector<128x4xi1>
      %177 = vector.broadcast %cst_88 : f32 to vector<128x4xf32>
      %178 = arith.select %176, %174, %177 : vector<128x4xi1>, vector<128x4xf32>
      %179 = arith.addf %162, %178 : vector<128x4xf32>
      %c4_89 = arith.constant 4 : index
      %c0_90 = arith.constant 0 : index
      %c0_91 = arith.constant 0 : index
      %180 = vector.load %arg6[%c4_89, %c0_90, %c0_91] : memref<9x4x4xbf16, #tpu.memory_space<vmem>>, vector<1x4x4xbf16>
      %181 = vector.shape_cast %180 : vector<1x4x4xbf16> to vector<4x4xbf16>
      %cst_92 = arith.constant dense<0.000000e+00> : vector<128x4xf32>
      %182 = tpu.matmul %166, %181, %cst_92 {dimension_numbers = #tpu.dot_dimension_numbers<[1], [0], [0], [1], [0, 0, 1, 1], [], []>} : vector<128x4xbf16>, vector<4x4xbf16>, vector<128x4xf32> -> vector<128x4xf32>
      %183 = arith.addf %179, %182 : vector<128x4xf32>
      %c5_93 = arith.constant 5 : index
      %c0_94 = arith.constant 0 : index
      %c0_95 = arith.constant 0 : index
      %184 = vector.load %arg6[%c5_93, %c0_94, %c0_95] : memref<9x4x4xbf16, #tpu.memory_space<vmem>>, vector<1x4x4xbf16>
      %185 = vector.shape_cast %184 : vector<1x4x4xbf16> to vector<4x4xbf16>
      %cst_96 = arith.constant dense<0.000000e+00> : vector<128x4xf32>
      %186 = tpu.matmul %166, %185, %cst_96 {dimension_numbers = #tpu.dot_dimension_numbers<[1], [0], [0], [1], [0, 0, 1, 1], [], []>} : vector<128x4xbf16>, vector<4x4xbf16>, vector<128x4xf32> -> vector<128x4xf32>
      %c15_i32_97 = arith.constant 15 : i32
      %187 = vector.broadcast %c15_i32_97 : i32 to vector<128x1xi32>
      %188 = arith.cmpi slt, %17, %187 : vector<128x1xi32>
      %189 = vector.extract_strided_slice %186 {offsets = [1, 0], sizes = [127, 4], strides = [1, 1]} : vector<128x4xf32> to vector<127x4xf32>
      %190 = vector.extract_strided_slice %186 {offsets = [0, 0], sizes = [1, 4], strides = [1, 1]} : vector<128x4xf32> to vector<1x4xf32>
      %191 = tpu.concatenate %189, %190 in 0 : vector<127x4xf32>, vector<1x4xf32> -> vector<128x4xf32>
      %cst_98 = arith.constant 0.000000e+00 : f32
      %192 = vector.shape_cast %188 : vector<128x1xi1> to vector<128x1xi1>
      %193 = vector.broadcast %192 : vector<128x1xi1> to vector<128x4xi1>
      %194 = vector.broadcast %cst_98 : f32 to vector<128x4xf32>
      %195 = arith.select %193, %191, %194 : vector<128x4xi1>, vector<128x4xf32>
      %196 = arith.addf %183, %195 : vector<128x4xf32>
      %c32_i32 = arith.constant 32 : i32
      %197 = arith.addi %0, %c32_i32 : i32
      %c0_99 = arith.constant 0 : index
      %198 = arith.index_cast %197 : i32 to index
      %c0_100 = arith.constant 0 : index
      %199 = vector.load %arg3[%c0_99, %198, %c0_100] : memref<1x288x4xbf16, #tpu.memory_space<vmem>>, vector<1x128x4xbf16>
      %200 = vector.shape_cast %199 : vector<1x128x4xbf16> to vector<128x4xbf16>
      %c6_101 = arith.constant 6 : index
      %c0_102 = arith.constant 0 : index
      %c0_103 = arith.constant 0 : index
      %201 = vector.load %arg6[%c6_101, %c0_102, %c0_103] : memref<9x4x4xbf16, #tpu.memory_space<vmem>>, vector<1x4x4xbf16>
      %202 = vector.shape_cast %201 : vector<1x4x4xbf16> to vector<4x4xbf16>
      %cst_104 = arith.constant dense<0.000000e+00> : vector<128x4xf32>
      %203 = tpu.matmul %200, %202, %cst_104 {dimension_numbers = #tpu.dot_dimension_numbers<[1], [0], [0], [1], [0, 0, 1, 1], [], []>} : vector<128x4xbf16>, vector<4x4xbf16>, vector<128x4xf32> -> vector<128x4xf32>
      %c0_i32_105 = arith.constant 0 : i32
      %204 = vector.broadcast %c0_i32_105 : i32 to vector<128x1xi32>
      %205 = arith.cmpi sgt, %17, %204 : vector<128x1xi32>
      %206 = vector.extract_strided_slice %203 {offsets = [127, 0], sizes = [1, 4], strides = [1, 1]} : vector<128x4xf32> to vector<1x4xf32>
      %207 = vector.extract_strided_slice %203 {offsets = [0, 0], sizes = [127, 4], strides = [1, 1]} : vector<128x4xf32> to vector<127x4xf32>
      %208 = tpu.concatenate %206, %207 in 0 : vector<1x4xf32>, vector<127x4xf32> -> vector<128x4xf32>
      %cst_106 = arith.constant 0.000000e+00 : f32
      %209 = vector.shape_cast %205 : vector<128x1xi1> to vector<128x1xi1>
      %210 = vector.broadcast %209 : vector<128x1xi1> to vector<128x4xi1>
      %211 = vector.broadcast %cst_106 : f32 to vector<128x4xf32>
      %212 = arith.select %210, %208, %211 : vector<128x4xi1>, vector<128x4xf32>
      %213 = arith.addf %196, %212 : vector<128x4xf32>
      %c7_107 = arith.constant 7 : index
      %c0_108 = arith.constant 0 : index
      %c0_109 = arith.constant 0 : index
      %214 = vector.load %arg6[%c7_107, %c0_108, %c0_109] : memref<9x4x4xbf16, #tpu.memory_space<vmem>>, vector<1x4x4xbf16>
      %215 = vector.shape_cast %214 : vector<1x4x4xbf16> to vector<4x4xbf16>
      %cst_110 = arith.constant dense<0.000000e+00> : vector<128x4xf32>
      %216 = tpu.matmul %200, %215, %cst_110 {dimension_numbers = #tpu.dot_dimension_numbers<[1], [0], [0], [1], [0, 0, 1, 1], [], []>} : vector<128x4xbf16>, vector<4x4xbf16>, vector<128x4xf32> -> vector<128x4xf32>
      %217 = arith.addf %213, %216 : vector<128x4xf32>
      %c8_111 = arith.constant 8 : index
      %c0_112 = arith.constant 0 : index
      %c0_113 = arith.constant 0 : index
      %218 = vector.load %arg6[%c8_111, %c0_112, %c0_113] : memref<9x4x4xbf16, #tpu.memory_space<vmem>>, vector<1x4x4xbf16>
      %219 = vector.shape_cast %218 : vector<1x4x4xbf16> to vector<4x4xbf16>
      %cst_114 = arith.constant dense<0.000000e+00> : vector<128x4xf32>
      %220 = tpu.matmul %200, %219, %cst_114 {dimension_numbers = #tpu.dot_dimension_numbers<[1], [0], [0], [1], [0, 0, 1, 1], [], []>} : vector<128x4xbf16>, vector<4x4xbf16>, vector<128x4xf32> -> vector<128x4xf32>
      %c15_i32_115 = arith.constant 15 : i32
      %221 = vector.broadcast %c15_i32_115 : i32 to vector<128x1xi32>
      %222 = arith.cmpi slt, %17, %221 : vector<128x1xi32>
      %223 = vector.extract_strided_slice %220 {offsets = [1, 0], sizes = [127, 4], strides = [1, 1]} : vector<128x4xf32> to vector<127x4xf32>
      %224 = vector.extract_strided_slice %220 {offsets = [0, 0], sizes = [1, 4], strides = [1, 1]} : vector<128x4xf32> to vector<1x4xf32>
      %225 = tpu.concatenate %223, %224 in 0 : vector<127x4xf32>, vector<1x4xf32> -> vector<128x4xf32>
      %cst_116 = arith.constant 0.000000e+00 : f32
      %226 = vector.shape_cast %222 : vector<128x1xi1> to vector<128x1xi1>
      %227 = vector.broadcast %226 : vector<128x1xi1> to vector<128x4xi1>
      %228 = vector.broadcast %cst_116 : f32 to vector<128x4xf32>
      %229 = arith.select %227, %225, %228 : vector<128x4xi1>, vector<128x4xf32>
      %230 = arith.addf %217, %229 : vector<128x4xf32>
      %c0_117 = arith.constant 0 : index
      %c0_118 = arith.constant 0 : index
      %231 = vector.load %arg11[%c0_117, %c0_118] : memref<128x4xf32, #tpu.memory_space<vmem>>, vector<128x4xf32>
      tpu.vector_store %arg11[%c0_117, %c0_118], %230 {strides = array<i32>} : memref<128x4xf32, #tpu.memory_space<vmem>>, vector<128x4xf32>,
    } else {
    }
    %21 = arith.index_cast %0 : i32 to index
    %c0 = arith.constant 0 : index
    %22 = vector.load %arg4[%21, %c0] : memref<288x50xbf16, #tpu.memory_space<vmem>>, vector<160x50xbf16>
    %c0_5 = arith.constant 0 : index
    %c0_6 = arith.constant 0 : index
    %c0_7 = arith.constant 0 : index
    %23 = vector.load %arg5[%c0_5, %c0_6, %c0_7] : memref<1x50x16xbf16, #tpu.memory_space<vmem>>, vector<1x50x16xbf16>
    %24 = vector.shape_cast %23 : vector<1x50x16xbf16> to vector<50x16xbf16>
    %cst = arith.constant dense<0.000000e+00> : vector<160x16xf32>
    %25 = tpu.matmul %22, %24, %cst {dimension_numbers = #tpu.dot_dimension_numbers<[1], [0], [0], [1], [0, 0, 1, 1], [], []>} : vector<160x50xbf16>, vector<50x16xbf16>, vector<160x16xf32> -> vector<160x16xf32>
    %26 = arith.truncf %25 : vector<160x16xf32> to vector<160x16xbf16>
    %c0_8 = arith.constant 0 : index
    %c0_9 = arith.constant 0 : index
    %27 = vector.load %arg12[%c0_8, %c0_9] : memref<160x16xbf16, #tpu.memory_space<vmem>>, vector<160x16xbf16>
    tpu.vector_store %arg12[%c0_8, %c0_9], %26 {strides = array<i32>} : memref<160x16xbf16, #tpu.memory_space<vmem>>, vector<160x16xbf16>,
    %cst_10 = arith.constant 0.000000e+00 : f32
    %28 = vector.broadcast %cst_10 : f32 to vector<128x4xf32>
    %c0_11 = arith.constant 0 : index
    %c0_12 = arith.constant 0 : index
    %29 = vector.load %arg12[%c0_11, %c0_12] : memref<160x16xbf16, #tpu.memory_space<vmem>>, vector<128x16xbf16>
    %c0_13 = arith.constant 0 : index
    %c0_14 = arith.constant 0 : index
    %c0_15 = arith.constant 0 : index
    %30 = vector.load %arg7[%c0_13, %c0_14, %c0_15] : memref<9x16x4xbf16, #tpu.memory_space<vmem>>, vector<1x16x4xbf16>
    %31 = vector.shape_cast %30 : vector<1x16x4xbf16> to vector<16x4xbf16>
    %cst_16 = arith.constant dense<0.000000e+00> : vector<128x4xf32>
    %32 = tpu.matmul %29, %31, %cst_16 {dimension_numbers = #tpu.dot_dimension_numbers<[1], [0], [0], [1], [0, 0, 1, 1], [], []>} : vector<128x16xbf16>, vector<16x4xbf16>, vector<128x4xf32> -> vector<128x4xf32>
    %c0_i32_17 = arith.constant 0 : i32
    %33 = vector.broadcast %c0_i32_17 : i32 to vector<128x1xi32>
    %34 = arith.cmpi sgt, %17, %33 : vector<128x1xi32>
    %35 = vector.extract_strided_slice %32 {offsets = [127, 0], sizes = [1, 4], strides = [1, 1]} : vector<128x4xf32> to vector<1x4xf32>
    %36 = vector.extract_strided_slice %32 {offsets = [0, 0], sizes = [127, 4], strides = [1, 1]} : vector<128x4xf32> to vector<127x4xf32>
    %37 = tpu.concatenate %35, %36 in 0 : vector<1x4xf32>, vector<127x4xf32> -> vector<128x4xf32>
    %cst_18 = arith.constant 0.000000e+00 : f32
    %38 = vector.shape_cast %34 : vector<128x1xi1> to vector<128x1xi1>
    %39 = vector.broadcast %38 : vector<128x1xi1> to vector<128x4xi1>
    %40 = vector.broadcast %cst_18 : f32 to vector<128x4xf32>
    %41 = arith.select %39, %37, %40 : vector<128x4xi1>, vector<128x4xf32>
    %42 = arith.addf %28, %41 : vector<128x4xf32>
    %c1 = arith.constant 1 : index
    %c0_19 = arith.constant 0 : index
    %c0_20 = arith.constant 0 : index
    %43 = vector.load %arg7[%c1, %c0_19, %c0_20] : memref<9x16x4xbf16, #tpu.memory_space<vmem>>, vector<1x16x4xbf16>
    %44 = vector.shape_cast %43 : vector<1x16x4xbf16> to vector<16x4xbf16>
    %cst_21 = arith.constant dense<0.000000e+00> : vector<128x4xf32>
    %45 = tpu.matmul %29, %44, %cst_21 {dimension_numbers = #tpu.dot_dimension_numbers<[1], [0], [0], [1], [0, 0, 1, 1], [], []>} : vector<128x16xbf16>, vector<16x4xbf16>, vector<128x4xf32> -> vector<128x4xf32>
    %46 = arith.addf %42, %45 : vector<128x4xf32>
    %c2 = arith.constant 2 : index
    %c0_22 = arith.constant 0 : index
    %c0_23 = arith.constant 0 : index
    %47 = vector.load %arg7[%c2, %c0_22, %c0_23] : memref<9x16x4xbf16, #tpu.memory_space<vmem>>, vector<1x16x4xbf16>
    %48 = vector.shape_cast %47 : vector<1x16x4xbf16> to vector<16x4xbf16>
    %cst_24 = arith.constant dense<0.000000e+00> : vector<128x4xf32>
    %49 = tpu.matmul %29, %48, %cst_24 {dimension_numbers = #tpu.dot_dimension_numbers<[1], [0], [0], [1], [0, 0, 1, 1], [], []>} : vector<128x16xbf16>, vector<16x4xbf16>, vector<128x4xf32> -> vector<128x4xf32>
    %c15_i32 = arith.constant 15 : i32
    %50 = vector.broadcast %c15_i32 : i32 to vector<128x1xi32>
    %51 = arith.cmpi slt, %17, %50 : vector<128x1xi32>
    %52 = vector.extract_strided_slice %49 {offsets = [1, 0], sizes = [127, 4], strides = [1, 1]} : vector<128x4xf32> to vector<127x4xf32>
    %53 = vector.extract_strided_slice %49 {offsets = [0, 0], sizes = [1, 4], strides = [1, 1]} : vector<128x4xf32> to vector<1x4xf32>
    %54 = tpu.concatenate %52, %53 in 0 : vector<127x4xf32>, vector<1x4xf32> -> vector<128x4xf32>
    %cst_25 = arith.constant 0.000000e+00 : f32
    %55 = vector.shape_cast %51 : vector<128x1xi1> to vector<128x1xi1>
    %56 = vector.broadcast %55 : vector<128x1xi1> to vector<128x4xi1>
    %57 = vector.broadcast %cst_25 : f32 to vector<128x4xf32>
    %58 = arith.select %56, %54, %57 : vector<128x4xi1>, vector<128x4xf32>
    %59 = arith.addf %46, %58 : vector<128x4xf32>
    %c16 = arith.constant 16 : index
    %c0_26 = arith.constant 0 : index
    %60 = vector.load %arg12[%c16, %c0_26] : memref<160x16xbf16, #tpu.memory_space<vmem>>, vector<128x16xbf16>
    %c3 = arith.constant 3 : index
    %c0_27 = arith.constant 0 : index
    %c0_28 = arith.constant 0 : index
    %61 = vector.load %arg7[%c3, %c0_27, %c0_28] : memref<9x16x4xbf16, #tpu.memory_space<vmem>>, vector<1x16x4xbf16>
    %62 = vector.shape_cast %61 : vector<1x16x4xbf16> to vector<16x4xbf16>
    %cst_29 = arith.constant dense<0.000000e+00> : vector<128x4xf32>
    %63 = tpu.matmul %60, %62, %cst_29 {dimension_numbers = #tpu.dot_dimension_numbers<[1], [0], [0], [1], [0, 0, 1, 1], [], []>} : vector<128x16xbf16>, vector<16x4xbf16>, vector<128x4xf32> -> vector<128x4xf32>
    %c0_i32_30 = arith.constant 0 : i32
    %64 = vector.broadcast %c0_i32_30 : i32 to vector<128x1xi32>
    %65 = arith.cmpi sgt, %17, %64 : vector<128x1xi32>
    %66 = vector.extract_strided_slice %63 {offsets = [127, 0], sizes = [1, 4], strides = [1, 1]} : vector<128x4xf32> to vector<1x4xf32>
    %67 = vector.extract_strided_slice %63 {offsets = [0, 0], sizes = [127, 4], strides = [1, 1]} : vector<128x4xf32> to vector<127x4xf32>
    %68 = tpu.concatenate %66, %67 in 0 : vector<1x4xf32>, vector<127x4xf32> -> vector<128x4xf32>
    %cst_31 = arith.constant 0.000000e+00 : f32
    %69 = vector.shape_cast %65 : vector<128x1xi1> to vector<128x1xi1>
    %70 = vector.broadcast %69 : vector<128x1xi1> to vector<128x4xi1>
    %71 = vector.broadcast %cst_31 : f32 to vector<128x4xf32>
    %72 = arith.select %70, %68, %71 : vector<128x4xi1>, vector<128x4xf32>
    %73 = arith.addf %59, %72 : vector<128x4xf32>
    %c4 = arith.constant 4 : index
    %c0_32 = arith.constant 0 : index
    %c0_33 = arith.constant 0 : index
    %74 = vector.load %arg7[%c4, %c0_32, %c0_33] : memref<9x16x4xbf16, #tpu.memory_space<vmem>>, vector<1x16x4xbf16>
    %75 = vector.shape_cast %74 : vector<1x16x4xbf16> to vector<16x4xbf16>
    %cst_34 = arith.constant dense<0.000000e+00> : vector<128x4xf32>
    %76 = tpu.matmul %60, %75, %cst_34 {dimension_numbers = #tpu.dot_dimension_numbers<[1], [0], [0], [1], [0, 0, 1, 1], [], []>} : vector<128x16xbf16>, vector<16x4xbf16>, vector<128x4xf32> -> vector<128x4xf32>
    %77 = arith.addf %73, %76 : vector<128x4xf32>
    %c5 = arith.constant 5 : index
    %c0_35 = arith.constant 0 : index
    %c0_36 = arith.constant 0 : index
    %78 = vector.load %arg7[%c5, %c0_35, %c0_36] : memref<9x16x4xbf16, #tpu.memory_space<vmem>>, vector<1x16x4xbf16>
    %79 = vector.shape_cast %78 : vector<1x16x4xbf16> to vector<16x4xbf16>
    %cst_37 = arith.constant dense<0.000000e+00> : vector<128x4xf32>
    %80 = tpu.matmul %60, %79, %cst_37 {dimension_numbers = #tpu.dot_dimension_numbers<[1], [0], [0], [1], [0, 0, 1, 1], [], []>} : vector<128x16xbf16>, vector<16x4xbf16>, vector<128x4xf32> -> vector<128x4xf32>
    %c15_i32_38 = arith.constant 15 : i32
    %81 = vector.broadcast %c15_i32_38 : i32 to vector<128x1xi32>
    %82 = arith.cmpi slt, %17, %81 : vector<128x1xi32>
    %83 = vector.extract_strided_slice %80 {offsets = [1, 0], sizes = [127, 4], strides = [1, 1]} : vector<128x4xf32> to vector<127x4xf32>
    %84 = vector.extract_strided_slice %80 {offsets = [0, 0], sizes = [1, 4], strides = [1, 1]} : vector<128x4xf32> to vector<1x4xf32>
    %85 = tpu.concatenate %83, %84 in 0 : vector<127x4xf32>, vector<1x4xf32> -> vector<128x4xf32>
    %cst_39 = arith.constant 0.000000e+00 : f32
    %86 = vector.shape_cast %82 : vector<128x1xi1> to vector<128x1xi1>
    %87 = vector.broadcast %86 : vector<128x1xi1> to vector<128x4xi1>
    %88 = vector.broadcast %cst_39 : f32 to vector<128x4xf32>
    %89 = arith.select %87, %85, %88 : vector<128x4xi1>, vector<128x4xf32>
    %90 = arith.addf %77, %89 : vector<128x4xf32>
    %c32 = arith.constant 32 : index
    %c0_40 = arith.constant 0 : index
    %91 = vector.load %arg12[%c32, %c0_40] : memref<160x16xbf16, #tpu.memory_space<vmem>>, vector<128x16xbf16>
    %c6 = arith.constant 6 : index
    %c0_41 = arith.constant 0 : index
    %c0_42 = arith.constant 0 : index
    %92 = vector.load %arg7[%c6, %c0_41, %c0_42] : memref<9x16x4xbf16, #tpu.memory_space<vmem>>, vector<1x16x4xbf16>
    %93 = vector.shape_cast %92 : vector<1x16x4xbf16> to vector<16x4xbf16>
    %cst_43 = arith.constant dense<0.000000e+00> : vector<128x4xf32>
    %94 = tpu.matmul %91, %93, %cst_43 {dimension_numbers = #tpu.dot_dimension_numbers<[1], [0], [0], [1], [0, 0, 1, 1], [], []>} : vector<128x16xbf16>, vector<16x4xbf16>, vector<128x4xf32> -> vector<128x4xf32>
    %c0_i32_44 = arith.constant 0 : i32
    %95 = vector.broadcast %c0_i32_44 : i32 to vector<128x1xi32>
    %96 = arith.cmpi sgt, %17, %95 : vector<128x1xi32>
    %97 = vector.extract_strided_slice %94 {offsets = [127, 0], sizes = [1, 4], strides = [1, 1]} : vector<128x4xf32> to vector<1x4xf32>
    %98 = vector.extract_strided_slice %94 {offsets = [0, 0], sizes = [127, 4], strides = [1, 1]} : vector<128x4xf32> to vector<127x4xf32>
    %99 = tpu.concatenate %97, %98 in 0 : vector<1x4xf32>, vector<127x4xf32> -> vector<128x4xf32>
    %cst_45 = arith.constant 0.000000e+00 : f32
    %100 = vector.shape_cast %96 : vector<128x1xi1> to vector<128x1xi1>
    %101 = vector.broadcast %100 : vector<128x1xi1> to vector<128x4xi1>
    %102 = vector.broadcast %cst_45 : f32 to vector<128x4xf32>
    %103 = arith.select %101, %99, %102 : vector<128x4xi1>, vector<128x4xf32>
    %104 = arith.addf %90, %103 : vector<128x4xf32>
    %c7 = arith.constant 7 : index
    %c0_46 = arith.constant 0 : index
    %c0_47 = arith.constant 0 : index
    %105 = vector.load %arg7[%c7, %c0_46, %c0_47] : memref<9x16x4xbf16, #tpu.memory_space<vmem>>, vector<1x16x4xbf16>
    %106 = vector.shape_cast %105 : vector<1x16x4xbf16> to vector<16x4xbf16>
    %cst_48 = arith.constant dense<0.000000e+00> : vector<128x4xf32>
    %107 = tpu.matmul %91, %106, %cst_48 {dimension_numbers = #tpu.dot_dimension_numbers<[1], [0], [0], [1], [0, 0, 1, 1], [], []>} : vector<128x16xbf16>, vector<16x4xbf16>, vector<128x4xf32> -> vector<128x4xf32>
    %108 = arith.addf %104, %107 : vector<128x4xf32>
    %c8 = arith.constant 8 : index
    %c0_49 = arith.constant 0 : index
    %c0_50 = arith.constant 0 : index
    %109 = vector.load %arg7[%c8, %c0_49, %c0_50] : memref<9x16x4xbf16, #tpu.memory_space<vmem>>, vector<1x16x4xbf16>
    %110 = vector.shape_cast %109 : vector<1x16x4xbf16> to vector<16x4xbf16>
    %cst_51 = arith.constant dense<0.000000e+00> : vector<128x4xf32>
    %111 = tpu.matmul %91, %110, %cst_51 {dimension_numbers = #tpu.dot_dimension_numbers<[1], [0], [0], [1], [0, 0, 1, 1], [], []>} : vector<128x16xbf16>, vector<16x4xbf16>, vector<128x4xf32> -> vector<128x4xf32>
    %c15_i32_52 = arith.constant 15 : i32
    %112 = vector.broadcast %c15_i32_52 : i32 to vector<128x1xi32>
    %113 = arith.cmpi slt, %17, %112 : vector<128x1xi32>
    %114 = vector.extract_strided_slice %111 {offsets = [1, 0], sizes = [127, 4], strides = [1, 1]} : vector<128x4xf32> to vector<127x4xf32>
    %115 = vector.extract_strided_slice %111 {offsets = [0, 0], sizes = [1, 4], strides = [1, 1]} : vector<128x4xf32> to vector<1x4xf32>
    %116 = tpu.concatenate %114, %115 in 0 : vector<127x4xf32>, vector<1x4xf32> -> vector<128x4xf32>
    %cst_53 = arith.constant 0.000000e+00 : f32
    %117 = vector.shape_cast %113 : vector<128x1xi1> to vector<128x1xi1>
    %118 = vector.broadcast %117 : vector<128x1xi1> to vector<128x4xi1>
    %119 = vector.broadcast %cst_53 : f32 to vector<128x4xf32>
    %120 = arith.select %118, %116, %119 : vector<128x4xi1>, vector<128x4xf32>
    %121 = arith.addf %108, %120 : vector<128x4xf32>
    %c0_54 = arith.constant 0 : index
    %c0_55 = arith.constant 0 : index
    %122 = vector.load %arg11[%c0_54, %c0_55] : memref<128x4xf32, #tpu.memory_space<vmem>>, vector<128x4xf32>
    %123 = arith.addf %122, %121 : vector<128x4xf32>
    %c0_56 = arith.constant 0 : index
    %c0_57 = arith.constant 0 : index
    %124 = vector.load %arg11[%c0_56, %c0_57] : memref<128x4xf32, #tpu.memory_space<vmem>>, vector<128x4xf32>
    tpu.vector_store %arg11[%c0_56, %c0_57], %123 {strides = array<i32>} : memref<128x4xf32, #tpu.memory_space<vmem>>, vector<128x4xf32>,
    %c0_i32_58 = arith.constant 0 : i32
    %125 = arith.cmpi eq, %arg2, %c0_i32_58 : i32
    %126 = arith.extui %125 : i1 to i32
    %c0_i32_59 = arith.constant 0 : i32
    %127 = arith.cmpi ne, %126, %c0_i32_59 : i32
    scf.if %127 {
      %c0_60 = arith.constant 0 : index
      %c0_61 = arith.constant 0 : index
      %128 = vector.load %arg11[%c0_60, %c0_61] : memref<128x4xf32, #tpu.memory_space<vmem>>, vector<128x4xf32>
      %c0_62 = arith.constant 0 : index
      %c0_63 = arith.constant 0 : index
      %129 = vector.load %arg8[%c0_62, %c0_63] : memref<1x4xf32, #tpu.memory_space<vmem>>, vector<1x4xf32>
      %130 = vector.broadcast %129 : vector<1x4xf32> to vector<128x4xf32>
      %131 = arith.mulf %128, %130 : vector<128x4xf32>
      %c0_64 = arith.constant 0 : index
      %c0_65 = arith.constant 0 : index
      %132 = vector.load %arg9[%c0_64, %c0_65] : memref<1x4xf32, #tpu.memory_space<vmem>>, vector<1x4xf32>
      %133 = vector.broadcast %132 : vector<1x4xf32> to vector<128x4xf32>
      %134 = arith.addf %131, %133 : vector<128x4xf32>
      %cst_66 = arith.constant 0.000000e+00 : f32
      %135 = vector.broadcast %cst_66 : f32 to vector<128x4xf32>
      %136 = arith.maximumf %134, %135 : vector<128x4xf32>
      %c0_67 = arith.constant 0 : index
      %c0_68 = arith.constant 0 : index
      %c0_69 = arith.constant 0 : index
      %137 = vector.load %arg10[%c0_67, %c0_68, %c0_69] : memref<1x128x4xf32, #tpu.memory_space<vmem>>, vector<1x128x4xf32>
      %138 = vector.shape_cast %137 : vector<1x128x4xf32> to vector<128x4xf32>
      %139 = vector.shape_cast %136 : vector<128x4xf32> to vector<1x128x4xf32>
      tpu.vector_store %arg10[%c0_67, %c0_68, %c0_69], %139 {strides = array<i32>} : memref<1x128x4xf32, #tpu.memory_space<vmem>>, vector<1x128x4xf32>,
    } else {
    }
    return
  }
  func.func @transform_0(%arg0: i32, %arg1: i32, %arg2: i32) -> (i32, i32, i32) {
    %c0_i32 = arith.constant 0 : i32
    %c0_i32_0 = arith.constant 0 : i32
    %c0_i32_1 = arith.constant 0 : i32
    return %arg0, %c0_i32, %c0_i32_0 : i32, i32, i32
  }
  func.func @transform_1(%arg0: i32, %arg1: i32, %arg2: i32) -> (i32, i32) {
    %c0_i32 = arith.constant 0 : i32
    %c0_i32_0 = arith.constant 0 : i32
    %c0_i32_1 = arith.constant 0 : i32
    return %c0_i32, %c0_i32_0 : i32, i32
  }
  func.func @transform_2(%arg0: i32, %arg1: i32, %arg2: i32) -> (i32, i32, i32) {
    %c0_i32 = arith.constant 0 : i32
    %c0_i32_0 = arith.constant 0 : i32
    return %arg0, %c0_i32, %arg2 : i32, i32, i32
  }
  func.func @transform_3(%arg0: i32, %arg1: i32, %arg2: i32) -> (i32, i32, i32) {
    %c0_i32 = arith.constant 0 : i32
    %c0_i32_0 = arith.constant 0 : i32
    %c0_i32_1 = arith.constant 0 : i32
    %c0_i32_2 = arith.constant 0 : i32
    return %c0_i32, %c0_i32_0, %c0_i32_1 : i32, i32, i32
  }
  func.func @transform_4(%arg0: i32, %arg1: i32, %arg2: i32) -> (i32, i32, i32) {
    %c0_i32 = arith.constant 0 : i32
    %c0_i32_0 = arith.constant 0 : i32
    %c0_i32_1 = arith.constant 0 : i32
    return %c0_i32, %arg2, %c0_i32_0 : i32, i32, i32
  }
  func.func @transform_5(%arg0: i32, %arg1: i32, %arg2: i32) -> (i32, i32) {
    %c0_i32 = arith.constant 0 : i32
    %c0_i32_0 = arith.constant 0 : i32
    %c0_i32_1 = arith.constant 0 : i32
    return %c0_i32, %c0_i32_0 : i32, i32
  }
  func.func @transform_6(%arg0: i32, %arg1: i32, %arg2: i32) -> (i32, i32) {
    %c0_i32 = arith.constant 0 : i32
    %c0_i32_0 = arith.constant 0 : i32
    %c0_i32_1 = arith.constant 0 : i32
    return %c0_i32, %c0_i32_0 : i32, i32
  }
  func.func @transform_7(%arg0: i32, %arg1: i32, %arg2: i32) -> (i32, i32, i32) {
    %c0_i32 = arith.constant 0 : i32
    %c0_i32_0 = arith.constant 0 : i32
    return %arg0, %arg1, %c0_i32 : i32, i32, i32
  }
}

</mosaic_0001>

<bundles_post_ra>
// kernel: ppm_forward.2
= control target key start
LH: loop header
LB: loop body
LE: loop exit
PB: predicated region body
PF: predicated region fallthrough
CT: control target
= control target key end

     0   :  { %s1042_s24 = smov 0   ;;  %s1251_s0 = inlined_call_operand.vmem [shape: bf16[2,256,4], index: 0, kind: input, shape index: {}]   ;;  %s1252_s1 = inlined_call_operand.vmem [shape: bf16[50,256], index: 1, kind: input, shape index: {}]   ;;  %s1253_s2 = inlined_call_operand.vmem [shape: bf16[4,16], index: 2, kind: input, shape index: {}]   ;;  %s1254_s3 = inlined_call_operand.vmem [shape: f32[1,16], index: 3, kind: input, shape index: {}]   ;;  %s1255_s4 = inlined_call_operand.vmem [shape: f32[1,16], index: 4, kind: input, shape index: {}]   ;;  %s1256_s5 = inlined_call_operand.vmem [shape: f32[50,16], index: 5, kind: input, shape index: {}]   ;;  %s1257_s6 = inlined_call_operand.vmem [shape: bf16[2,50,16], index: 6, kind: output, shape index: {0}]   ;;  %s1258_s7 = inlined_call_operand.vmem [shape: bf16[2,288,4], index: 7, kind: output, shape index: {1}]  }
   0x1 LB: > { %s827_s25 = sadd.s32 4294967295, %s999_s24   ;;  %p831_p0 = scmp.ge.s32.totalorder %s999_s24, 1  ;;  %s999_s24 = sphi %s1042_s24, %s18_s24  }
   0x2   : > { %p240_p1 = scmp.lt.s32.totalorder %s999_s24, 3 }
   0x4   : > { %p241_p2 = pnand %p831_p0, %p240_p1 }
   0x5   : > { %p277_p3 = scmp.lt.s32.totalorder (!%p241_p2), %s827_s25, 1 }
   0x6   : > { %244 = sbr.rel (%p241_p2) target bundleno = 480 (0x1e0), region = 44 }
   0xb   : > { %v984_v0 = vld [vmem:[%s1252_s1 + $0x4] ss:$8 sps:$4 sm:$0xff]   ;;  %s1260_s25 = smov (!%p277_p3, %s827_s25), 1  ;;  %v1058_v1 = vld [vmem:[%s1252_s1 + $0x30] sm:$0x11]  ;;  %vm702_vm0 = vcmask 27648  }
   0xc   : > { %497 = vmatprep.mubr.bf16.mxu0 %v984_v0  ;;  %s875_s30 = sshll.u32 %s1260_s25, 7  ;;  %s956_s8 = smul.u32 144, %s1260_s25  ;;  %v843_v2 = vcombine.high %v1058_v1, %v1058_v1  ;;  %v982_v51 = vld [vmem:[%s1252_s1] ss:$8 sps:$4 sm:$0xff]   ;;  %v842_v52 = vcombine.low %v1058_v1, %v1058_v1  ;;  %v985_v53 = vld [vmem:[%s1252_s1 + $0x14] ss:$8 sps:$4 sm:$0xff]  }
   0xd   : > { %s1067_s11 = scalar_lea.vmem %s1251_s0, %s875_s30  ;;  %v987_v54 = vld [vmem:[%s1252_s1 + $0x10] ss:$8 sps:$4 sm:$0xff]   ;;  %v990_v55 = vld [vmem:[%s1252_s1 + $0x24] ss:$8 sps:$4 sm:$0xff]   ;;  %v992_v56 = vld [vmem:[%s1252_s1 + $0x20] ss:$8 sps:$4 sm:$0xff]  }
   0xe   : > { %s1072_s14 = scalar_lea.vmem %s1258_s7, %s956_s8  ;;  %v323_v3 = vld [vmem:[%s1067_s11 + $0x78] sm:$0xf]  ;;  %v324_v4 = vld [vmem:[%s1067_s11 + $0x7c] sm:$0xf]  ;;  %521 = vmatprep.mubr.bf16.mxu1 %v843_v2  ;;  %v321_v8 = vld [vmem:[%s1067_s11 + $0x70] sm:$0xf] }
   0xf   : > { %v307_v5 = vld [vmem:[%s1067_s11 + $0x38] sm:$0xf]  ;;  %v859_v6 = vcombine.low %v323_v3, %v324_v4  ;;  %735 = vst.msk [vmem:[%s1072_s14 + $0x80] sm:$0xf] %vm702_vm0, %v323_v3  ;;  %736 = vst.msk [vmem:[%s1072_s14 + $0x84] sm:$0xf] %vm702_vm0, %v324_v4 }
  0x10   : > { %v308_v7 = vld [vmem:[%s1067_s11 + $0x3c] sm:$0xf]  ;;  %719 = vst.msk [vmem:[%s1072_s14 + $0x40] sm:$0xf] %vm702_vm0, %v307_v5  ;;  %v322_v9 = vld [vmem:[%s1067_s11 + $0x74] sm:$0xf] }
  0x11   : > { %v851_v10 = vcombine.low %v307_v5, %v308_v7  ;;  %720 = vst.msk [vmem:[%s1072_s14 + $0x44] sm:$0xf] %vm702_vm0, %v308_v7  ;;  %v858_v11 = vcombine.low %v321_v8, %v322_v9  ;;  %733 = vst.msk [vmem:[%s1072_s14 + $0x78] sm:$0xf] %vm702_vm0, %v321_v8  ;;  %v305_v12 = vld [vmem:[%s1067_s11 + $0x30] sm:$0xf]  ;;  %883 = vmatprep.subr.bf16.mxu0 %v859_v6  ;;  %938 = vmatprep.subr.bf16.mxu1 %v859_v6 }
  0x12   : > { %734 = vst.msk [vmem:[%s1072_s14 + $0x7c] sm:$0xf] %vm702_vm0, %v322_v9  ;;  %v306_v13 = vld [vmem:[%s1067_s11 + $0x34] sm:$0xf]  ;;  %v319_v14 = vld [vmem:[%s1067_s11 + $0x68] sm:$0xf] }
  0x13   : > { %717 = vst.msk [vmem:[%s1072_s14 + $0x38] sm:$0xf] %vm702_vm0, %v305_v12  ;;  %718 = vst.msk [vmem:[%s1072_s14 + $0x3c] sm:$0xf] %vm702_vm0, %v306_v13  ;;  %v320_v15 = vld [vmem:[%s1067_s11 + $0x6c] sm:$0xf]  ;;  %884 = vmatpush3.bf16.msra.mxu0 %v851_v10  ;;  %v850_v18 = vcombine.low %v305_v12, %v306_v13  ;;  %946 = vmatpush3.bf16.msra.mxu1 %v851_v10 }
  0x14   : > { %731 = vst.msk [vmem:[%s1072_s14 + $0x70] sm:$0xf] %vm702_vm0, %v319_v14  ;;  %v303_v16 = vld [vmem:[%s1067_s11 + $0x28] sm:$0xf]  ;;  %v304_v17 = vld [vmem:[%s1067_s11 + $0x2c] sm:$0xf]  ;;  %885 = vmatprep.subr.bf16.mxu0 %v858_v11  ;;  %v857_v22 = vcombine.low %v319_v14, %v320_v15  ;;  %939 = vmatprep.subr.bf16.mxu1 %v858_v11 }
  0x15   : > { %732 = vst.msk [vmem:[%s1072_s14 + $0x74] sm:$0xf] %vm702_vm0, %v320_v15  ;;  %715 = vst.msk [vmem:[%s1072_s14 + $0x30] sm:$0xf] %vm702_vm0, %v303_v16  ;;  %v317_v19 = vld [vmem:[%s1067_s11 + $0x60] sm:$0xf]  ;;  %v849_v32 = vcombine.low %v303_v16, %v304_v17 }
  0x16   : > { %716 = vst.msk [vmem:[%s1072_s14 + $0x34] sm:$0xf] %vm702_vm0, %v304_v17  ;;  %v318_v20 = vld [vmem:[%s1067_s11 + $0x64] sm:$0xf]  ;;  %v301_v21 = vld [vmem:[%s1067_s11 + $0x20] sm:$0xf] }
  0x17   : > { %729 = vst.msk [vmem:[%s1072_s14 + $0x68] sm:$0xf] %vm702_vm0, %v317_v19  ;;  %730 = vst.msk [vmem:[%s1072_s14 + $0x6c] sm:$0xf] %vm702_vm0, %v318_v20  ;;  %v302_v23 = vld [vmem:[%s1067_s11 + $0x24] sm:$0xf]  ;;  %886 = vmatpush3.bf16.msra.mxu0 %v850_v18  ;;  %947 = vmatpush3.bf16.msra.mxu1 %v850_v18  ;;  %v856_v36 = vcombine.low %v317_v19, %v318_v20 }
  0x18   : > { %713 = vst.msk [vmem:[%s1072_s14 + $0x28] sm:$0xf] %vm702_vm0, %v301_v21  ;;  %v315_v24 = vld [vmem:[%s1067_s11 + $0x58] sm:$0xf]  ;;  %v316_v25 = vld [vmem:[%s1067_s11 + $0x5c] sm:$0xf]  ;;  %887 = vmatprep.subr.bf16.mxu0 %v857_v22  ;;  %940 = vmatprep.subr.bf16.mxu1 %v857_v22  ;;  %v848_v42 = vcombine.low %v301_v21, %v302_v23 }
  0x19   : > { %714 = vst.msk [vmem:[%s1072_s14 + $0x2c] sm:$0xf] %vm702_vm0, %v302_v23  ;;  %727 = vst.msk [vmem:[%s1072_s14 + $0x60] sm:$0xf] %vm702_vm0, %v315_v24  ;;  %v299_v26 = vld [vmem:[%s1067_s11 + $0x18] sm:$0xf]  ;;  %v855_v43 = vcombine.low %v315_v24, %v316_v25 }
  0x1a   : > { %728 = vst.msk [vmem:[%s1072_s14 + $0x64] sm:$0xf] %vm702_vm0, %v316_v25  ;;  %v300_v27 = vld [vmem:[%s1067_s11 + $0x1c] sm:$0xf]  ;;  %v313_v28 = vld [vmem:[%s1067_s11 + $0x50] sm:$0xf] }
  0x1b   : > { %711 = vst.msk [vmem:[%s1072_s14 + $0x20] sm:$0xf] %vm702_vm0, %v299_v26  ;;  %712 = vst.msk [vmem:[%s1072_s14 + $0x24] sm:$0xf] %vm702_vm0, %v300_v27  ;;  %v314_v29 = vld [vmem:[%s1067_s11 + $0x54] sm:$0xf]  ;;  %888 = vmatpush3.bf16.msra.mxu0 %v849_v32  ;;  %948 = vmatpush3.bf16.msra.mxu1 %v849_v32  ;;  %v847_v44 = vcombine.low %v299_v26, %v300_v27 }
  0x1c   : > { %725 = vst.msk [vmem:[%s1072_s14 + $0x58] sm:$0xf] %vm702_vm0, %v313_v28  ;;  %v297_v30 = vld [vmem:[%s1067_s11 + $0x10] sm:$0xf]  ;;  %v298_v31 = vld [vmem:[%s1067_s11 + $0x14] sm:$0xf]  ;;  %889 = vmatprep.subr.bf16.mxu0 %v856_v36  ;;  %941 = vmatprep.subr.bf16.mxu1 %v856_v36  ;;  %v854_v45 = vcombine.low %v313_v28, %v314_v29 }
  0x1d   : > { %726 = vst.msk [vmem:[%s1072_s14 + $0x5c] sm:$0xf] %vm702_vm0, %v314_v29  ;;  %709 = vst.msk [vmem:[%s1072_s14 + $0x18] sm:$0xf] %vm702_vm0, %v297_v30  ;;  %v311_v33 = vld [vmem:[%s1067_s11 + $0x48] sm:$0xf]  ;;  %v846_v46 = vcombine.low %v297_v30, %v298_v31 }
  0x1e   : > { %710 = vst.msk [vmem:[%s1072_s14 + $0x1c] sm:$0xf] %vm702_vm0, %v298_v31  ;;  %v312_v34 = vld [vmem:[%s1067_s11 + $0x4c] sm:$0xf]  ;;  %v295_v35 = vld [vmem:[%s1067_s11 + $0x8] sm:$0xf] }
  0x1f   : > { %723 = vst.msk [vmem:[%s1072_s14 + $0x50] sm:$0xf] %vm702_vm0, %v311_v33  ;;  %724 = vst.msk [vmem:[%s1072_s14 + $0x54] sm:$0xf] %vm702_vm0, %v312_v34  ;;  %v296_v37 = vld [vmem:[%s1067_s11 + $0xc] sm:$0xf]  ;;  %890 = vmatpush3.bf16.msra.mxu0 %v848_v42  ;;  %949 = vmatpush3.bf16.msra.mxu1 %v848_v42  ;;  %v853_v47 = vcombine.low %v311_v33, %v312_v34 }
  0x20   : > { %707 = vst.msk [vmem:[%s1072_s14 + $0x10] sm:$0xf] %vm702_vm0, %v295_v35  ;;  %v309_v38 = vld [vmem:[%s1067_s11 + $0x40] sm:$0xf]  ;;  %v310_v39 = vld [vmem:[%s1067_s11 + $0x44] sm:$0xf]  ;;  %891 = vmatprep.subr.bf16.mxu0 %v855_v43  ;;  %942 = vmatprep.subr.bf16.mxu1 %v855_v43  ;;  %v845_v48 = vcombine.low %v295_v35, %v296_v37 }
  0x21   : > { %708 = vst.msk [vmem:[%s1072_s14 + $0x14] sm:$0xf] %vm702_vm0, %v296_v37  ;;  %721 = vst.msk [vmem:[%s1072_s14 + $0x48] sm:$0xf] %vm702_vm0, %v309_v38  ;;  %v293_v40 = vld [vmem:[%s1067_s11] sm:$0xf]  ;;  %v852_v49 = vcombine.low %v309_v38, %v310_v39 }
  0x22   : > { %722 = vst.msk [vmem:[%s1072_s14 + $0x4c] sm:$0xf] %vm702_vm0, %v310_v39  ;;  %v294_v41 = vld [vmem:[%s1067_s11 + $0x4] sm:$0xf]  ;;  %705 = vst.msk [vmem:[%s1072_s14 + $0x8] sm:$0xf] %vm702_vm0, %v293_v40 }
  0x23   : > { %706 = vst.msk [vmem:[%s1072_s14 + $0xc] sm:$0xf] %vm702_vm0, %v294_v41  ;;  %892 = vmatpush3.bf16.msra.mxu0 %v847_v44  ;;  %950 = vmatpush3.bf16.msra.mxu1 %v847_v44  ;;  %v844_v50 = vcombine.low %v293_v40, %v294_v41  ;;  %v533_v57 = vld [vmem:[%s1253_s2] sm:$0x3]  ;;  %vm547_vm1 = vcmask 1041408   ;;  %vm534_vm2 = vcmask 31744  }
  0x24   : > { %893 = vmatprep.subr.bf16.mxu0 %v854_v45  ;;  %943 = vmatprep.subr.bf16.mxu1 %v854_v45  ;;  %v549_v58 = vsel %vm547_vm1, %v533_v57, 0  ;;  %v1001_v22 = vmov 0   ;;  %v864_v23 = vld [vmem:[%s1254_s3] ss:$0 sm:$0xff]  ;;  %s955_s10 = smul.u32 28, %s1260_s25  ;;  %v652_v30 = vld [vmem:[%s1256_s5 + $0x10] sm:$0xff] }
  0x25   : > { %703 = vst.msk [vmem:[%s1072_s14] sm:$0xf] %vm702_vm0, %v1001_v22  ;;  %704 = vst.msk [vmem:[%s1072_s14 + $0x4] sm:$0xf] %vm702_vm0, %v1001_v22  ;;  %v865_v25 = vld [vmem:[%s1255_s4] ss:$0 sm:$0xff] }
  0x26   : > { %737 = vst.msk [vmem:[%s1072_s14 + $0x88] sm:$0xf] %vm702_vm0, %v1001_v22  ;;  %738 = vst.msk [vmem:[%s1072_s14 + $0x8c] sm:$0xf] %vm702_vm0, %v1001_v22  ;;  %v650_v35 = vld [vmem:[%s1256_s5] sm:$0xff]  ;;  %s1218_s25 = scalar_lea.vmem %s1257_s6, %s955_s10  ;;  %vm693_vm3 = vcmask 125952  }
  0x27   : > { %894 = vmatpush3.bf16.msra.mxu0 %v846_v46  ;;  %951 = vmatpush3.bf16.msra.mxu1 %v846_v46  ;;  %v653_v41 = vld [vmem:[%s1256_s5 + $0x18] sm:$0xff]  ;;  %vm700_vm4 = vcmask 122880  }
  0x28   : > { %895 = vmatprep.subr.bf16.mxu0 %v853_v47  ;;  %944 = vmatprep.subr.bf16.mxu1 %v853_v47  ;;  %v651_v47 = vld [vmem:[%s1256_s5 + $0x8] sm:$0xff] }
  0x2b   : > { %896 = vmatpush3.bf16.msra.mxu0 %v845_v48  ;;  %952 = vmatpush3.bf16.msra.mxu1 %v845_v48 }
  0x2c   : > { %897 = vmatprep.subr.bf16.mxu0 %v852_v49  ;;  %945 = vmatprep.subr.bf16.mxu1 %v852_v49 }
  0x2f   : > { %898 = vmatpush3.bf16.msra.mxu0 %v844_v50  ;;  %953 = vmatpush3.bf16.msra.mxu1 %v844_v50 }
  0x30   : > { %954 = vmatprep.subr.msk.bf16.mxu1 %vm547_vm1, %v533_v57  ;;  %v656_v57 = vld [vmem:[%s1256_s5 + $0x30] sm:$0x3] }
  0x32   : > { %498 = vmatmul.mubr.bf16.vlgmr.msra.gmra.mxu0 %v982_v51  ;;  %522 = vmatmul.mubr.bf16.vlgmr.msra.gmra.mxu1 %v842_v52 }
  0x33   : > { %505 = vmatprep.mubr.bf16.mxu0 %v985_v53  ;;  %929 = vmatpush3.bf16.msra.mxu1 %v549_v58 }
  0x3a   : > { %506 = vmatmul.mubr.bf16.gmra.mxu0 %v987_v54 }
  0x3b   : > { %513 = vmatprep.mubr.bf16.mxu0 %v990_v55 }
  0x42   : > { %514 = vmatmul.mubr.bf16.gmra.mxu0 %v992_v56 }
  0xf2   : > { %v899_v59 = vpop.f32.mrf.mxu0  ;;  %v917_v60 = vpop.f32.mrf.mxu1 }
  0xf4   : > { %v900_v61 = vpop.f32.mrf.mxu0  ;;  %v918_v62 = vpop.f32.mrf.mxu1 }
  0xf5   : > { %v901_v3 = vadd.f32 %v900_v61, %v899_v59  ;;  %v919_v16 = vadd.f32 %v918_v62, %v917_v60  ;;  %v654_v62 = vld [vmem:[%s1256_s5 + $0x20] sm:$0xff] }
  0xf6   : > { %v902_v63 = vpop.f32.mrf.mxu0  ;;  %v920_v0 = vpop.f32.mrf.mxu1 }
  0xf7   : > { %v532_v21 = vpack.c.bf16 %v919_v16, %v919_v16 }
  0xf8   : > { %v903_v1 = vpop.f32.mrf.mxu0  ;;  %v921_v2 = vpop.f32.mrf.mxu1 }
  0xf9   : > { %v904_v4 = vadd.f32 %v903_v1, %v902_v63 }
  0xfa   : > { %v905_v5 = vpop.f32.mrf.mxu0 }
  0xfb   : > { %v529_v6 = vpack.c.bf16 %v904_v4, %v901_v3 }
  0xfc   : > { %v906_v7 = vpop.f32.mrf.mxu0 }
  0xfd   : > { %930 = vmatprep.mubr.msk.bf16.mxu1 %vm534_vm2, %v529_v6  ;;  %v907_v10 = vadd.f32 %v906_v7, %v905_v5  ;;  %v655_v6 = vld [vmem:[%s1256_s5 + $0x28] sm:$0xff] }
  0xfe   : > { %v908_v8 = vpop.f32.mrf.mxu0 }
 0x100   : > { %v909_v9 = vpop.f32.mrf.mxu0 }
 0x101   : > { %v910_v11 = vadd.f32 %v909_v9, %v908_v8 }
 0x102   : > { %v911_v12 = vpop.f32.mrf.mxu0 }
 0x103   : > { %v530_v13 = vpack.c.bf16 %v910_v11, %v907_v10 }
 0x104   : > { %v912_v14 = vpop.f32.mrf.mxu0 }
 0x105   : > { %931 = vmatmul.mubr.msk.bf16.vlgmr.msra.gmra.mxu1 %vm534_vm2, %v530_v13  ;;  %v913_v18 = vadd.f32 %v912_v14, %v911_v12 }
 0x106   : > { %v914_v15 = vpop.f32.mrf.mxu0 }
 0x108   : > { %v915_v17 = vpop.f32.mrf.mxu0 }
 0x109   : > { %v916_v19 = vadd.f32 %v915_v17, %v914_v15 }
 0x10b   : > { %v531_v20 = vpack.c.bf16 %v916_v19, %v913_v18 }
 0x10d   : > { %934 = vmatprep.mubr.msk.bf16.mxu1 %vm534_vm2, %v531_v20 }
 0x10e   : > { %935 = vmatmul.mubr.msk.bf16.gmra.mxu1 %vm534_vm2, %v532_v21 }
 0x1c5   : > { %v932_v24 = vpop.f32.mrf.mxu1 }
 0x1c6   : > { %v624_v26 = vmul.f32 %v932_v24, %v864_v23 }
 0x1c7   : > { %v585_v27 = vpop.f32.mrf.mxu1 }
 0x1c8   : > { %v638_v28 = vadd.f32 %v865_v25, %v624_v26  ;;  %v622_v29 = vmul.f32 %v864_v23, %v585_v27 }
 0x1c9   : > { %v933_v31 = vpop.f32.mrf.mxu1 }
 0x1ca   : > { %v645_v32 = vmax.f32 %v638_v28, 0.0  ;;  %v636_v33 = vadd.f32 %v865_v25, %v622_v29  ;;  %v625_v34 = vmul.f32 %v933_v31, %v864_v23 }
 0x1cb   : > { %v588_v36 = vpop.f32.mrf.mxu1 }
 0x1cc   : > { %v659_v37 = vmul.f32 %v652_v30, %v645_v32  ;;  %v643_v38 = vmax.f32 %v636_v33, 0.0  ;;  %v639_v39 = vadd.f32 %v865_v25, %v625_v34  ;;  %v623_v40 = vmul.f32 %v864_v23, %v588_v36 }
 0x1ce   : > { %v878_v42 = vpack.c.bf16 %v659_v37, %v659_v37  ;;  %v657_v43 = vmul.f32 %v650_v35, %v643_v38  ;;  %v646_v44 = vmax.f32 %v639_v39, 0.0  ;;  %v637_v45 = vadd.f32 %v865_v25, %v623_v40  ;;  %v936_v46 = vpop.f32.mrf.mxu1 }
 0x1cf   : > { %v628_v48 = vmul.f32 %v936_v46, %v864_v23 }
 0x1d0   : > { %696 = vst.msk [vmem:[%s1218_s25 + $0x8] sm:$0xf] %vm693_vm3, %v878_v42  ;;  %v876_v49 = vpack.c.bf16 %v657_v43, %v657_v43  ;;  %v660_v50 = vmul.f32 %v653_v41, %v646_v44  ;;  %v644_v51 = vmax.f32 %v637_v45, 0.0  ;;  %v601_v52 = vpop.f32.mrf.mxu1 }
 0x1d1   : > { %v642_v53 = vadd.f32 %v865_v25, %v628_v48  ;;  %v626_v54 = vmul.f32 %v864_v23, %v601_v52 }
 0x1d2   : > { %694 = vst.msk [vmem:[%s1218_s25] sm:$0xf] %vm693_vm3, %v876_v49  ;;  %v879_v55 = vpack.c.bf16 %v660_v50, %v660_v50  ;;  %v658_v56 = vmul.f32 %v651_v47, %v644_v51  ;;  %v937_v58 = vpop.f32.mrf.mxu1 }
 0x1d3   : > { %v649_v59 = vmax.f32 %v642_v53, 0.0  ;;  %v640_v60 = vadd.f32 %v865_v25, %v626_v54 }
 0x1d4   : > { %697 = vst.msk [vmem:[%s1218_s25 + $0xc] sm:$0xf] %vm693_vm3, %v879_v55  ;;  %v877_v61 = vpack.c.bf16 %v658_v56, %v658_v56  ;;  %v604_v63 = vpop.f32.mrf.mxu1 }
 0x1d5   : > { %v663_v0 = vmul.f32 %v656_v57, %v649_v59  ;;  %v647_v1 = vmax.f32 %v640_v60, 0.0  ;;  %v627_v2 = vmul.f32 %v864_v23, %v604_v63 }
 0x1d6   : > { %695 = vst.msk [vmem:[%s1218_s25 + $0x4] sm:$0xf] %vm693_vm3, %v877_v61 }
 0x1d7   : > { %v882_v3 = vpack.c.bf16 %v663_v0, %v663_v0  ;;  %v661_v4 = vmul.f32 %v654_v62, %v647_v1  ;;  %v641_v5 = vadd.f32 %v865_v25, %v627_v2 }
 0x1d9   : > { %701 = vst.msk [vmem:[%s1218_s25 + $0x18] sm:$0x1] %vm700_vm4, %v882_v3  ;;  %v880_v7 = vpack.c.bf16 %v661_v4, %v661_v4  ;;  %v648_v8 = vmax.f32 %v641_v5, 0.0 }
 0x1db   : > { %698 = vst.msk [vmem:[%s1218_s25 + $0x10] sm:$0xf] %vm693_vm3, %v880_v7  ;;  %v662_v9 = vmul.f32 %v655_v6, %v648_v8 }
 0x1dd   : > { %v881_v10 = vpack.c.bf16 %v662_v9, %v662_v9 }
 0x1df   : > { %699 = vst.msk [vmem:[%s1218_s25 + $0x14] sm:$0xf] %vm693_vm3, %v881_v10 }
 0x1e0 PF: > { %s18_s24 = sadd.s32 1, %s999_s24  }
 0x1e1   : > { %p15_p4 = scmp.ge.s32.totalorder %s18_s24, 4  }
 0x1e3   :  { %17 = sbr.rel (!%p15_p4) target bundleno = 1 (0x1), region = 86 }

// kernel: ppm_forward.3
= control target key start
LH: loop header
LB: loop body
LE: loop exit
PB: predicated region body
PF: predicated region fallthrough
CT: control target
= control target key end

     0   :  { %s6084_s24 = smov 0   ;;  %s6086_s25 = smov 0   ;;  %s7926_s0 = inlined_call_operand.vmem [shape: bf16[2,288,4], index: 0, kind: input, shape index: {}]   ;;  %s7927_s1 = inlined_call_operand.vmem [shape: bf16[288,50], index: 1, kind: input, shape index: {}]   ;;  %s7928_s2 = inlined_call_operand.vmem [shape: bf16[2,50,16], index: 2, kind: input, shape index: {}]   ;;  %s7929_s3 = inlined_call_operand.vmem [shape: bf16[9,4,4], index: 3, kind: input, shape index: {}]   ;;  %s7930_s4 = inlined_call_operand.vmem [shape: bf16[9,16,4], index: 4, kind: input, shape index: {}]   ;;  %s7931_s5 = inlined_call_operand.vmem [shape: f32[1,4], index: 5, kind: input, shape index: {}]   ;;  %s7932_s6 = inlined_call_operand.vmem [shape: f32[1,4], index: 6, kind: input, shape index: {}]   ;;  %s7933_s7 = inlined_call_operand.vmem [shape: f32[2,256,4], index: 7, kind: output, shape index: {}]  }
   0x1   :  { %s6088_s26 = smov 0   ;;  %s6090_s27 = smov 0  }
   0x2   :  { %s6092_s28 = smov 0  }
   0x3 LB: > { %s32_s29 = sadd.s32 1, %s6034_s26  ;;  %s36_s30 = sadd.s32 1, %s6038_s27  ;;  %s6042_s28 = sphi %s6092_s28, %s17_s28   ;;  %s6038_s27 = sphi %s6090_s27, %s8371_s27   ;;  %s6034_s26 = sphi %s6088_s26, %s8370_s26   ;;  %s6030_s25 = sphi %s6086_s25, %s8369_s25   ;;  %s6026_s24 = sphi %s6084_s24, %s8368_s24  }
   0x4   : > { %p34_p0 = scmp.ge.s32.totalorder %s32_s29, 2  ;;  %p5045_p1 = scmp.ge.s32.totalorder %s6042_s28, 1 }
   0x5   : > { %p284_p2 = scmp.lt.s32.totalorder %s6042_s28, 5 }
   0x6   : > { %s8373_s29 = smov (%p34_p0, %s32_s29), 0  ;;  %s8375_s30 = smov (!%p34_p0, %s36_s30), %s6038_s27 }
   0x7   : > { %p285_p3 = pnand %p5045_p1, %p284_p2  ;;  %p38_p4 = scmp.ge.s32.totalorder %s8375_s30, 2 }
   0x9   : > { %s8377_s30 = smov (%p38_p4, %s8375_s30), 0  ;;  %288 = sbr.rel (%p285_p3) target bundleno = 752 (0x2f0), region = 48 }
   0xe   : > { %v597_v0 = vld [vmem:[%s7929_s3] sm:$0x3]  ;;  %vm663_vm0 = vcmask 1041408   ;;  %p333_p5 = scmp.lt.s32.totalorder %s6030_s25, 1  ;;  %s6123_s10 = sshll.u32 %s6026_s24, 7  ;;  %vm7934_vm1 = vcmask 31744   ;;  %v364_v57 = vlaneseq }
   0xf   : > { %5880 = vmatprep.subr.msk.bf16.mxu1 %vm663_vm0, %v597_v0  ;;  %5879 = vmatprep.subr.msk.bf16.mxu0 %vm663_vm0, %v597_v0  ;;  %v665_v1 = vsel %vm663_vm0, %v597_v0, 0  ;;  %v5069_v2 = vld [vmem:[%s7929_s3 + $0x2] sm:$0x3]  ;;  %v5078_v3 = vld [vmem:[%s7929_s3 + $0x4] sm:$0x3]  ;;  %s577_s16 = sshra.s32 %s6123_s10, 3 }
  0x10   : > { %5878 = vmatpush3.bf16.msra.mxu1 %v665_v1  ;;  %5526 = vmatpush3.bf16.msra.mxu0 %v665_v1  ;;  %s8379_s25 = smov (!%p333_p5, %s6030_s25), 1  ;;  %s6142_s20 = sshll.u32 %s577_s16, 2  ;;  %v5088_v7 = vld [vmem:[%s7929_s3 + $0x6] sm:$0x3]  ;;  %v1031_v8 = vsel %vm663_vm0, %v5078_v3, 0  ;;  %v913_v10 = vsel %vm663_vm0, %v5069_v2, 0 }
  0x11   : > { %5881 = vmatprep.subr.msk.bf16.mxu1 %vm663_vm0, %v5069_v2  ;;  %5882 = vmatprep.subr.msk.bf16.mxu0 %vm663_vm0, %v5078_v3  ;;  %s5890_s15 = smul.u32 144, %s8379_s25  ;;  %s1276_s22 = sadd.s32 16, %s6123_s10  ;;  %v5105_v12 = vld [vmem:[%s7929_s3 + $0x8] sm:$0x3]  ;;  %v1364_v15 = vsel %vm663_vm0, %v5088_v7, 0  ;;  %vm7935_vm2 = vcmask 1040384  }
  0x12   : > { %s1277_s23 = sshra.s32 %s1276_s22, 3  ;;  %s1877_s14 = sadd.s32 32, %s6123_s10  ;;  %v5114_v16 = vld [vmem:[%s7929_s3 + $0xa] sm:$0x3]  ;;  %v1563_v18 = vsel %vm663_vm0, %v5105_v12, 0  ;;  %vm2596_vm3 = vcmask 408576  }
  0x13   : > { %s6140_s19 = scalar_lea.vmem %s7926_s0, %s5890_s15  ;;  %s5087_s11 = sshll.u32 %s1277_s23, 2  ;;  %v5124_v19 = vld [vmem:[%s7929_s3 + $0xc] sm:$0x3]  ;;  %v1681_v23 = vsel %vm663_vm0, %v5114_v16, 0  ;;  %v5141_v24 = vld [vmem:[%s7929_s3 + $0xe] sm:$0x3] }
  0x14   : > { %s6146_s21 = scalar_lea.vmem %s6140_s19, %s6142_s20  ;;  %s6171_s15 = scalar_lea.vmem %s6140_s19, %s5087_s11  ;;  %v1965_v29 = vsel %vm663_vm0, %v5124_v19, 0  ;;  %v5150_v30 = vld [vmem:[%s7929_s3 + $0x10] sm:$0x3]  ;;  %v2164_v32 = vsel %vm663_vm0, %v5141_v24, 0  ;;  %v6322_v58 = vshrl.u32 %v364_v57, 7  ;;  %v5970_v59 = vld [vmem:[%s7930_s4] sm:$0xff]  }
  0x15   : > { %v5932_v4 = vld [vmem:[%s6146_s21] sm:$0xff]   ;;  %v5933_v5 = vld [vmem:[%s6146_s21 + $0x30] sm:$0xff]   ;;  %v5934_v6 = vld [vmem:[%s6146_s21 + $0x8] sm:$0xff]   ;;  %s1878_s16 = sshra.s32 %s1877_s14, 3  ;;  %s5891_s23 = smul.u32 28, %s8379_s25  ;;  %v2282_v37 = vsel %vm663_vm0, %v5150_v30, 0 }
  0x16   : > { %5527 = vmatprep.mubr.msk.bf16.mxu0 %vm7934_vm1, %v5932_v4  ;;  %5539 = vmatprep.mubr.msk.bf16.mxu1 %vm7934_vm1, %v5933_v5  ;;  %v5935_v9 = vld [vmem:[%s6146_s21 + $0x38] sm:$0xff]   ;;  %v5936_v11 = vld [vmem:[%s6146_s21 + $0x10] sm:$0xff]   ;;  %v5938_v14 = vld [vmem:[%s6146_s21 + $0x20] sm:$0xff]   ;;  %s5123_s10 = sshll.u32 %s1878_s16, 2  ;;  %v367_v60 = vadd.s32 16, %v6322_v58  ;;  %vm7940_vm10 = vcmask 1046528  }
  0x17   : > { %5528 = vmatmul.mubr.msk.bf16.vlgmr.msra.gmra.mxu0 %vm7934_vm1, %v5934_v6  ;;  %5540 = vmatmul.mubr.msk.bf16.vlgmr.msra.gmra.mxu1 %vm7934_vm1, %v5935_v9  ;;  %v5937_v13 = vld [vmem:[%s6146_s21 + $0x18] sm:$0xff]   ;;  %s6186_s22 = scalar_lea.vmem %s6140_s19, %s5123_s10  ;;  %v5939_v17 = vld [vmem:[%s6146_s21 + $0x28] sm:$0xff]   ;;  %s6194_s11 = scalar_lea.vmem %s7928_s2, %s5891_s23  ;;  %v5940_v20 = vld [vmem:[%s6171_s15] sm:$0xff]  }
  0x18   : > { %5562 = vmatpush3.bf16.msra.mxu0 %v1031_v8  ;;  %5544 = vmatpush3.bf16.msra.mxu1 %v913_v10  ;;  %s6203_s21 = scalar_lea.vmem %s7927_s1, %s6142_s20  ;;  %v5941_v21 = vld [vmem:[%s6171_s15 + $0x8] sm:$0xff]   ;;  %v5942_v22 = vld [vmem:[%s6171_s15 + $0x10] sm:$0xff]   ;;  %v5943_v25 = vld [vmem:[%s6171_s15 + $0x18] sm:$0xff]   ;;  %v399_v1 = vand.u32 15, %v367_v60  ;;  %v379_v60 = vadd.s32 112, %v6322_v58  ;;  %s5048_s8 = sshll.u32 %s6026_s24, 4 }
  0x19   : > { %5531 = vmatprep.mubr.msk.bf16.mxu0 %vm7934_vm1, %v5936_v11  ;;  %5545 = vmatprep.mubr.msk.bf16.mxu1 %vm7934_vm1, %v5932_v4  ;;  %v5944_v26 = vld [vmem:[%s6171_s15 + $0x20] sm:$0xff]   ;;  %v5945_v27 = vld [vmem:[%s6171_s15 + $0x28] sm:$0xff]   ;;  %v5946_v28 = vld [vmem:[%s6171_s15 + $0x30] sm:$0xff]   ;;  %p7712_p6 = scmp.lt.s32.totalorder %s5048_s8, 31 }
  0x1a   : > { %5883 = vmatprep.subr.msk.bf16.mxu1 %vm663_vm0, %v5088_v7  ;;  %5884 = vmatprep.subr.msk.bf16.mxu0 %vm663_vm0, %v5105_v12  ;;  %v5947_v31 = vld [vmem:[%s6171_s15 + $0x38] sm:$0xff]   ;;  %v5948_v34 = vld [vmem:[%s6186_s22] sm:$0xff]   ;;  %v5949_v35 = vld [vmem:[%s6186_s22 + $0x8] sm:$0xff]   ;;  %vm6343_vm4 = vcmp.gt.s32.totalorder %v399_v1, 0 }
  0x1b   : > { %v5953_v33 = vld [vmem:[%s6194_s11 + $0x18] ss:$0 sps:$4 sm:$0x11]   ;;  %v5950_v36 = vld [vmem:[%s6186_s22 + $0x10] sm:$0xff]   ;;  %v5952_v39 = vld [vmem:[%s6186_s22 + $0x20] sm:$0xff]   ;;  %s8381_s8 = smov (!%p7712_p6, %s5048_s8), 31 }
  0x1c   : > { %v5951_v38 = vld [vmem:[%s6186_s22 + $0x18] sm:$0xff]   ;;  %v5954_v40 = vld [vmem:[%s6186_s22 + $0x28] sm:$0xff]   ;;  %v5955_v41 = vld [vmem:[%s6186_s22 + $0x30] sm:$0xff]   ;;  %v2629_v42 = vsel %vm7935_vm2, %v5953_v33, 0 }
  0x1d   : > { %v5956_v43 = vld [vmem:[%s6194_s11 + $0x10] sm:$0xff]   ;;  %v5958_v44 = vld [vmem:[%s6194_s11 + $0x8] sm:$0xff]   ;;  %v5957_v45 = vld [vmem:[%s6186_s22 + $0x38] sm:$0xff]  }
  0x1e   : > { %v5959_v46 = vld [vmem:[%s6194_s11] sm:$0xff]   ;;  %v5961_v48 = vld [vmem:[%s6203_s21 + $0x8] sm:$0xff]   ;;  %v5962_v49 = vld [vmem:[%s6203_s21 + $0x10] sm:$0xff]   ;;  %s5049_s11 = sshll.u32 %s8379_s25, 5 }
  0x1f   : > { %5532 = vmatmul.mubr.msk.bf16.gmra.mxu0 %vm7934_vm1, %v5937_v13  ;;  %5546 = vmatmul.mubr.msk.bf16.vlgmr.msra.gmra.mxu1 %vm7934_vm1, %v5934_v6  ;;  %v5960_v47 = vld [vmem:[%s6203_s21] sm:$0xff]   ;;  %v5963_v50 = vld [vmem:[%s6203_s21 + $0x18] sm:$0xff]   ;;  %v5965_v52 = vld [vmem:[%s6203_s21 + $0x28] sm:$0xff]   ;;  %s7759_s24 = sadd.s32 %s5049_s11, %s8381_s8 }
  0x20   : > { %5535 = vmatprep.mubr.msk.bf16.mxu0 %vm7934_vm1, %v5938_v14  ;;  %5580 = vmatpush3.bf16.msra.mxu1 %v1364_v15  ;;  %v5964_v51 = vld [vmem:[%s6203_s21 + $0x20] sm:$0xff]   ;;  %v5966_v53 = vld [vmem:[%s6203_s21 + $0x30] sm:$0xff]   ;;  %v5967_v54 = vld [vmem:[%s6203_s21 + $0x38] sm:$0xff]   ;;  %s5050_s13 = sshll.u32 %s7759_s24, 3 }
  0x21   : > { %5549 = vmatprep.mubr.msk.bf16.mxu1 %vm7934_vm1, %v5936_v11  ;;  %5885 = vmatprep.subr.msk.bf16.mxu1 %vm663_vm0, %v5114_v16  ;;  %v5968_v55 = vld [vmem:[%s6203_s21 + $0x40] sm:$0xff]   ;;  %v5969_v56 = vld [vmem:[%s6203_s21 + $0x48] sm:$0xff]   ;;  %v371_v16 = vadd.s32 48, %v6322_v58  ;;  %s7809_s16 = scalar_lea.vmem %s7933_s7, %s5050_s13 }
  0x27   : > { %5536 = vmatmul.mubr.msk.bf16.gmra.mxu0 %vm7934_vm1, %v5939_v17  ;;  %5550 = vmatmul.mubr.msk.bf16.gmra.mxu1 %vm7934_vm1, %v5937_v13 }
  0x28   : > { %5563 = vmatprep.mubr.msk.bf16.mxu0 %vm7934_vm1, %v5932_v4  ;;  %5553 = vmatprep.mubr.msk.bf16.mxu1 %vm7934_vm1, %v5938_v14  ;;  %v385_v4 = vand.u32 15, %v6322_v58 }
  0x2a   : > { %vm6349_vm5 = vcmp.gt.s32.totalorder %v385_v4, 0 }
  0x2f   : > { %5564 = vmatmul.mubr.msk.bf16.vlgmr.msra.gmra.mxu0 %vm7934_vm1, %v5934_v6  ;;  %5554 = vmatmul.mubr.msk.bf16.gmra.mxu1 %vm7934_vm1, %v5939_v17 }
  0x30   : > { %5567 = vmatprep.mubr.msk.bf16.mxu0 %vm7934_vm1, %v5936_v11  ;;  %5557 = vmatprep.mubr.msk.bf16.mxu1 %vm7934_vm1, %v5933_v5  ;;  %v369_v11 = vadd.s32 32, %v6322_v58 }
  0x31   : > { %5598 = vmatpush3.bf16.msra.mxu0 %v1563_v18  ;;  %v8019_v18 = vmov 0 }
  0x32   : > { %5886 = vmatprep.subr.msk.bf16.mxu0 %vm663_vm0, %v5124_v19  ;;  %v8020_v18 = vsel %vm6349_vm5, 4294967295, %v8019_v18 }
  0x33   : > { %8021 = vst [vmem:[#allocation5_spill] sm:$0xff] %v8020_v18 }
  0x37   : > { %5568 = vmatmul.mubr.msk.bf16.gmra.mxu0 %vm7934_vm1, %v5937_v13  ;;  %5558 = vmatmul.mubr.msk.bf16.gmra.mxu1 %vm7934_vm1, %v5935_v9 }
  0x38   : > { %5571 = vmatprep.mubr.msk.bf16.mxu0 %vm7934_vm1, %v5938_v14  ;;  %5581 = vmatprep.mubr.msk.bf16.mxu1 %vm7934_vm1, %v5940_v20  ;;  %v8016_v14 = vmov 0 }
  0x39   : > { %v8017_v14 = vsel %vm6343_vm4, 4294967295, %v8016_v14 }
  0x3a   : > { %8018 = vst [vmem:[#allocation4_spill] sm:$0xff] %v8017_v14 }
  0x3f   : > { %5572 = vmatmul.mubr.msk.bf16.gmra.mxu0 %vm7934_vm1, %v5939_v17  ;;  %5582 = vmatmul.mubr.msk.bf16.vlgmr.msra.gmra.mxu1 %vm7934_vm1, %v5941_v21 }
  0x40   : > { %5575 = vmatprep.mubr.msk.bf16.mxu0 %vm7934_vm1, %v5933_v5  ;;  %5616 = vmatpush3.bf16.msra.mxu1 %v1681_v23 }
  0x41   : > { %5585 = vmatprep.mubr.msk.bf16.mxu1 %vm7934_vm1, %v5942_v22  ;;  %5887 = vmatprep.subr.msk.bf16.mxu1 %vm663_vm0, %v5141_v24 }
  0x47   : > { %5576 = vmatmul.mubr.msk.bf16.gmra.mxu0 %vm7934_vm1, %v5935_v9  ;;  %5586 = vmatmul.mubr.msk.bf16.gmra.mxu1 %vm7934_vm1, %v5943_v25 }
  0x48   : > { %5599 = vmatprep.mubr.msk.bf16.mxu0 %vm7934_vm1, %v5940_v20  ;;  %5589 = vmatprep.mubr.msk.bf16.mxu1 %vm7934_vm1, %v5944_v26 }
  0x4f   : > { %5600 = vmatmul.mubr.msk.bf16.vlgmr.msra.gmra.mxu0 %vm7934_vm1, %v5941_v21  ;;  %5590 = vmatmul.mubr.msk.bf16.gmra.mxu1 %vm7934_vm1, %v5945_v27 }
  0x50   : > { %5603 = vmatprep.mubr.msk.bf16.mxu0 %vm7934_vm1, %v5942_v22  ;;  %5593 = vmatprep.mubr.msk.bf16.mxu1 %vm7934_vm1, %v5946_v28 }
  0x51   : > { %5634 = vmatpush3.bf16.msra.mxu0 %v1965_v29 }
  0x52   : > { %5888 = vmatprep.subr.msk.bf16.mxu0 %vm663_vm0, %v5150_v30  ;;  %v427_v30 = vand.u32 15, %v371_v16 }
  0x54   : > { %vm6391_vm7 = vcmp.gt.s32.totalorder %v427_v30, 0 }
  0x57   : > { %5604 = vmatmul.mubr.msk.bf16.gmra.mxu0 %vm7934_vm1, %v5943_v25  ;;  %5594 = vmatmul.mubr.msk.bf16.gmra.mxu1 %vm7934_vm1, %v5947_v31 }
  0x58   : > { %5607 = vmatprep.mubr.msk.bf16.mxu0 %vm7934_vm1, %v5944_v26  ;;  %5617 = vmatprep.mubr.msk.bf16.mxu1 %vm7934_vm1, %v5940_v20 }
  0x5f   : > { %5608 = vmatmul.mubr.msk.bf16.gmra.mxu0 %vm7934_vm1, %v5945_v27  ;;  %5618 = vmatmul.mubr.msk.bf16.vlgmr.msra.gmra.mxu1 %vm7934_vm1, %v5941_v21 }
  0x60   : > { %5611 = vmatprep.mubr.msk.bf16.mxu0 %vm7934_vm1, %v5946_v28  ;;  %5652 = vmatpush3.bf16.msra.mxu1 %v2164_v32 }
  0x61   : > { %5621 = vmatprep.mubr.msk.bf16.mxu1 %vm7934_vm1, %v5942_v22  ;;  %5889 = vmatprep.subr.msk.bf16.mxu1 %vm7935_vm2, %v5953_v33 }
  0x67   : > { %5612 = vmatmul.mubr.msk.bf16.gmra.mxu0 %vm7934_vm1, %v5947_v31  ;;  %5622 = vmatmul.mubr.msk.bf16.gmra.mxu1 %vm7934_vm1, %v5943_v25  ;;  %v413_v25 = vand.u32 15, %v369_v11  ;;  %v8031_v11 = vmov 0 }
  0x68   : > { %5635 = vmatprep.mubr.msk.bf16.mxu0 %vm7934_vm1, %v5948_v34  ;;  %5625 = vmatprep.mubr.msk.bf16.mxu1 %vm7934_vm1, %v5944_v26 }
  0x69   : > { %vm6382_vm6 = vcmp.gt.s32.totalorder %v413_v25, 0  ;;  %v368_v25 = vadd.s32 24, %v6322_v58 }
  0x6f   : > { %5636 = vmatmul.mubr.msk.bf16.vlgmr.msra.gmra.mxu0 %vm7934_vm1, %v5949_v35  ;;  %5626 = vmatmul.mubr.msk.bf16.gmra.mxu1 %vm7934_vm1, %v5945_v27 }
  0x70   : > { %5639 = vmatprep.mubr.msk.bf16.mxu0 %vm7934_vm1, %v5950_v36  ;;  %5629 = vmatprep.mubr.msk.bf16.mxu1 %vm7934_vm1, %v5946_v28 }
  0x71   : > { %5670 = vmatpush3.bf16.msra.mxu0 %v2282_v37 }
  0x72   : > { %5715 = vmatprep.subr.bf16.mxu0 %v5970_v59 }
  0x77   : > { %5640 = vmatmul.mubr.msk.bf16.gmra.mxu0 %vm7934_vm1, %v5951_v38  ;;  %5630 = vmatmul.mubr.msk.bf16.gmra.mxu1 %vm7934_vm1, %v5947_v31 }
  0x78   : > { %5643 = vmatprep.mubr.msk.bf16.mxu0 %vm7934_vm1, %v5952_v39  ;;  %5653 = vmatprep.mubr.msk.bf16.mxu1 %vm7934_vm1, %v5948_v34 }
  0x7f   : > { %5644 = vmatmul.mubr.msk.bf16.gmra.mxu0 %vm7934_vm1, %v5954_v40  ;;  %5654 = vmatmul.mubr.msk.bf16.vlgmr.msra.gmra.mxu1 %vm7934_vm1, %v5949_v35 }
  0x80   : > { %5647 = vmatprep.mubr.msk.bf16.mxu0 %vm7934_vm1, %v5955_v41  ;;  %5688 = vmatpush3.bf16.msra.mxu1 %v2629_v42 }
  0x81   : > { %5657 = vmatprep.mubr.msk.bf16.mxu1 %vm7934_vm1, %v5950_v36  ;;  %5689 = vmatprep.subr.bf16.mxu1 %v5956_v43 }
  0x84   : > { %5690 = vmatpush3.bf16.msra.mxu1 %v5956_v43 }
  0x85   : > { %5691 = vmatprep.subr.bf16.mxu1 %v5958_v44 }
  0x87   : > { %5648 = vmatmul.mubr.msk.bf16.gmra.mxu0 %vm7934_vm1, %v5957_v45  ;;  %5658 = vmatmul.mubr.msk.bf16.gmra.mxu1 %vm7934_vm1, %v5951_v38 }
  0x88   : > { %5671 = vmatprep.mubr.msk.bf16.mxu0 %vm7934_vm1, %v5948_v34  ;;  %5661 = vmatprep.mubr.msk.bf16.mxu1 %vm7934_vm1, %v5952_v39 }
  0x89   : > { %5692 = vmatpush3.bf16.msra.mxu1 %v5958_v44  ;;  %v8025_v44 = vmov 0 }
  0x8a   : > { %5693 = vmatprep.subr.bf16.mxu1 %v5959_v46  ;;  %v8026_v44 = vsel %vm6391_vm7, 4294967295, %v8025_v44 }
  0x8b   : > { %8027 = vst [vmem:[#allocation7_spill] sm:$0xff] %v8026_v44 }
  0x8d   : > { %5694 = vmatpush3.bf16.msra.mxu1 %v5959_v46 }
  0x8f   : > { %5672 = vmatmul.mubr.msk.bf16.vlgmr.msra.gmra.mxu0 %vm7934_vm1, %v5949_v35  ;;  %5662 = vmatmul.mubr.msk.bf16.gmra.mxu1 %vm7934_vm1, %v5954_v40 }
  0x90   : > { %5675 = vmatprep.mubr.msk.bf16.mxu0 %vm7934_vm1, %v5950_v36  ;;  %5665 = vmatprep.mubr.msk.bf16.mxu1 %vm7934_vm1, %v5955_v41 }
  0x91   : > { %5716 = vmatpush3.bf16.msra.mxu0 %v5970_v59 }
  0x97   : > { %5676 = vmatmul.mubr.msk.bf16.gmra.mxu0 %vm7934_vm1, %v5951_v38  ;;  %5666 = vmatmul.mubr.msk.bf16.gmra.mxu1 %vm7934_vm1, %v5957_v45 }
  0x98   : > { %5679 = vmatprep.mubr.msk.bf16.mxu0 %vm7934_vm1, %v5952_v39  ;;  %5695 = vmatprep.mubr.msk.bf16.mxu1 %vm2596_vm3, %v5960_v47  ;;  %v8022_v39 = vmov 0 }
  0x99   : > { %v8023_v39 = vsel %vm6382_vm6, 4294967295, %v8022_v39 }
  0x9a   : > { %8024 = vst [vmem:[#allocation6_spill] sm:$0xff] %v8023_v39 }
  0x9f   : > { %5680 = vmatmul.mubr.msk.bf16.gmra.mxu0 %vm7934_vm1, %v5954_v40  ;;  %5696 = vmatmul.mubr.msk.bf16.vlgmr.msra.gmra.mxu1 %vm2596_vm3, %v5961_v48  ;;  %v375_v40 = vadd.s32 80, %v6322_v58 }
  0xa0   : > { %5683 = vmatprep.mubr.msk.bf16.mxu0 %vm7934_vm1, %v5955_v41  ;;  %5699 = vmatprep.mubr.msk.bf16.mxu1 %vm2596_vm3, %v5962_v49  ;;  %v373_v41 = vadd.s32 64, %v6322_v58 }
  0xa7   : > { %5684 = vmatmul.mubr.msk.bf16.gmra.mxu0 %vm7934_vm1, %v5957_v45  ;;  %5700 = vmatmul.mubr.msk.bf16.gmra.mxu1 %vm2596_vm3, %v5963_v50 }
  0xa8   : > { %5703 = vmatprep.mubr.msk.bf16.mxu1 %vm2596_vm3, %v5964_v51 }
  0xaf   : > { %5704 = vmatmul.mubr.msk.bf16.gmra.mxu1 %vm2596_vm3, %v5965_v52  ;;  %v455_v52 = vand.u32 15, %v375_v40 }
  0xb0   : > { %5707 = vmatprep.mubr.msk.bf16.mxu1 %vm2596_vm3, %v5966_v53  ;;  %v441_v53 = vand.u32 15, %v373_v41 }
  0xb1   : > { %vm6419_vm8 = vcmp.gt.s32.totalorder %v455_v52, 0  ;;  %v370_v52 = vadd.s32 40, %v6322_v58 }
  0xb2   : > { %vm6423_vm9 = vcmp.gt.s32.totalorder %v441_v53, 0 }
  0xb3   : > { %v8032_v11 = vsel %vm6423_vm9, 4294967295, %v8031_v11 }
  0xb4   : > { %8033 = vst [vmem:[#allocation9_spill] sm:$0xff] %v8032_v11 }
  0xb7   : > { %5708 = vmatmul.mubr.msk.bf16.gmra.mxu1 %vm2596_vm3, %v5967_v54 }
  0xb8   : > { %5711 = vmatprep.mubr.msk.bf16.mxu1 %vm2596_vm3, %v5968_v55 }
  0xbf   : > { %5712 = vmatmul.mubr.msk.bf16.gmra.mxu1 %vm2596_vm3, %v5969_v56 }
  0xd7   : > { %v5529_v61 = vpop.f32.mrf.mxu0  ;;  %v6328_v62 = vpop.f32.mrf.mxu1 }
  0xd8   : > { %v802_v5 = vrot.slane %v5529_v61, 7  ;;  %v826_v8 = vrot.slane %v6328_v62, 7  ;;  %v8040_v62 = vmov 0 }
  0xd9   : > { %v6330_v63 = vpop.f32.mrf.mxu0  ;;  %v6332_v0 = vpop.f32.mrf.mxu1 }
  0xda   : > { %v799_v2 = vrot.slane %v6330_v63, 7  ;;  %v822_v61 = vrot.slane %v6332_v0, 7 }
  0xdb   : > { %v5530_v3 = vpop.f32.mrf.mxu0  ;;  %v5542_v7 = vpop.f32.mrf.mxu1 }
  0xdc   : > { %v804_v6 = vrot.slane %v5530_v3, 7  ;;  %v781_v9 = vrot.slane %v5542_v7, 7 }
  0xdd   : > { %v6337_v10 = vpop.f32.mrf.mxu0  ;;  %v6341_v13 = vpop.f32.mrf.mxu1 }
  0xde   : > { %v800_v12 = vrot.slane %v6337_v10, 7  ;;  %v805_v15 = vsel %vm7935_vm2, %v802_v5, %v804_v6  ;;  %v845_v19 = vsel %vm7935_vm2, %v781_v9, %v799_v2  ;;  %v6359_v20 = vsel %vm7935_vm2, %v826_v8, %v781_v9  ;;  %v5973_v10 = vld [vmem:[%s7930_s4 + $0x10] sm:$0xff]  }
  0xdf   : > { %v5533_v17 = vpop.f32.mrf.mxu0  ;;  %v5547_v22 = vpop.f32.mrf.mxu1  ;;  %v878_v28 = vsel %vm6349_vm5, %v845_v19, 0.0  ;;  %v8028_v9 = vmov 0  ;;  %5751 = vmatprep.subr.bf16.mxu0 %v5973_v10 }
  0xe0   : > { %v803_v21 = vsel %vm7935_vm2, %v800_v12, %v802_v5  ;;  %v810_v33 = vrot.slane %v5533_v17, 7  ;;  %v8029_v9 = vsel %vm6419_vm8, 4294967295, %v8028_v9 }
  0xe1   : > { %v880_v23 = vsel %vm6343_vm4, %v803_v21, 0.0  ;;  %v6366_v24 = vpop.f32.mrf.mxu0  ;;  %v949_v29 = vpop.f32.mrf.mxu1  ;;  %8030 = vst [vmem:[#allocation8_spill] sm:$0xff] %v8029_v9 }
  0xe2   : > { %v6368_v26 = vadd.f32 %v5547_v22, %v880_v23  ;;  %v806_v27 = vrot.slane %v6366_v24, 7  ;;  %v6373_v31 = vadd.f32 %v949_v29, %v878_v28  ;;  %v366_v22 = vadd.s32 8, %v6322_v58 }
  0xe3   : > { %v5534_v32 = vpop.f32.mrf.mxu0  ;;  %v5548_v35 = vpop.f32.mrf.mxu1 }
  0xe4   : > { %v812_v34 = vrot.slane %v5534_v32, 7  ;;  %v807_v36 = vsel %vm7935_vm2, %v804_v6, %v806_v27  ;;  %v6378_v37 = vadd.f32 %v5548_v35, %v805_v15  ;;  %v377_v15 = vadd.s32 96, %v6322_v58  ;;  %v5971_v32 = vld [vmem:[%s7930_s4 + $0x8] sm:$0xff]  }
  0xe5   : > { %v6380_v38 = vpop.f32.mrf.mxu0  ;;  %v6389_v43 = vpop.f32.mrf.mxu1  ;;  %v882_v49 = vsel %vm6382_vm6, %v807_v36, 0.0  ;;  %v483_v36 = vand.u32 15, %v379_v60  ;;  %5733 = vmatprep.subr.bf16.mxu1 %v5971_v32  ;;  %v801_v60 = vsel %vm7935_vm2, %v799_v2, %v800_v12 }
  0xe6   : > { %v808_v42 = vrot.slane %v6380_v38, 7  ;;  %v813_v45 = vsel %vm7935_vm2, %v810_v33, %v812_v34  ;;  %5734 = vmatpush3.bf16.msra.mxu1 %v5971_v32  ;;  %v8046_v38 = vmov 0 }
  0xe7   : > { %v5537_v46 = vpop.f32.mrf.mxu0  ;;  %v5551_v48 = vpop.f32.mrf.mxu1  ;;  %vm6463_vm11 = vcmp.gt.s32.totalorder %v483_v36, 0 }
  0xe8   : > { %v811_v47 = vsel %vm7935_vm2, %v808_v42, %v810_v33  ;;  %v818_v1 = vrot.slane %v5537_v46, 7  ;;  %v824_v33 = vrot.slane %v6341_v13, 7  ;;  %v469_v46 = vand.u32 15, %v377_v15 }
  0xe9   : > { %v884_v50 = vsel %vm6391_vm7, %v811_v47, 0.0  ;;  %v6403_v51 = vpop.f32.mrf.mxu0  ;;  %v965_v56 = vpop.f32.mrf.mxu1  ;;  %v392_v47 = vand.u32 15, %v366_v22  ;;  %v8037_v15 = vmov 0  ;;  %v8043_v22 = vmov 0 }
  0xea   : > { %v6405_v54 = vadd.f32 %v5551_v48, %v884_v50  ;;  %v814_v55 = vrot.slane %v6403_v51, 7  ;;  %v6408_v57 = vadd.f32 %v965_v56, %v882_v49  ;;  %v406_v50 = vand.u32 15, %v368_v25 }
  0xeb   : > { %v5538_v59 = vpop.f32.mrf.mxu0  ;;  %v5552_v4 = vpop.f32.mrf.mxu1  ;;  %vm6478_vm12 = vcmp.lt.s32.totalorder %v392_v47, 15  ;;  %vm6482_vm13 = vcmp.gt.s32.totalorder %v469_v46, 0  ;;  %v1013_v25 = vadd.f32 %v6389_v43, %v801_v60  ;;  %v372_v43 = vadd.s32 56, %v6322_v58 }
  0xec   : > { %v820_v3 = vrot.slane %v5538_v59, 7  ;;  %v815_v5 = vsel %vm7935_vm2, %v812_v34, %v814_v55  ;;  %v6415_v6 = vadd.f32 %v5552_v4, %v813_v45  ;;  %v8034_v4 = vmov 0 }
  0xed   : > { %v6417_v7 = vpop.f32.mrf.mxu0  ;;  %v6429_v17 = vpop.f32.mrf.mxu1  ;;  %v886_v30 = vsel %vm6423_vm9, %v815_v5, 0.0  ;;  %v8035_v4 = vsel %vm6463_vm11, 4294967295, %v8034_v4  ;;  %v827_v5 = vsel %vm7935_vm2, %v824_v33, %v826_v8  ;;  %v8038_v15 = vsel %vm6478_vm12, 4294967295, %v8037_v15 }
  0xee   : > { %v816_v16 = vrot.slane %v6417_v7, 7  ;;  %v821_v19 = vsel %vm7935_vm2, %v818_v1, %v820_v3  ;;  %v823_v21 = vsel %vm7935_vm2, %v820_v3, %v822_v61  ;;  %8036 = vst [vmem:[#allocation10_spill] sm:$0xff] %v8035_v4  ;;  %8039 = vst [vmem:[#allocation11_spill] sm:$0xff] %v8038_v15  ;;  %v8041_v62 = vsel %vm6482_vm13, 4294967295, %v8040_v62 }
  0xef   : > { %v5565_v23 = vpop.f32.mrf.mxu0  ;;  %v5555_v29 = vpop.f32.mrf.mxu1  ;;  %8042 = vst [vmem:[#allocation12_spill] sm:$0xff] %v8041_v62  ;;  %vm6489_vm14 = vcmp.lt.s32.totalorder %v406_v50, 15  ;;  %v890_v47 = vsel %vm6482_vm13, %v823_v21, 0.0  ;;  %v374_v60 = vadd.s32 72, %v6322_v58  ;;  %v809_v21 = vsel %vm7935_vm2, %v806_v27, %v808_v42 }
  0xf0   : > { %v819_v28 = vsel %vm7935_vm2, %v816_v16, %v818_v1  ;;  %v1166_v41 = vrot.slane %v5565_v23, 1  ;;  %v8044_v22 = vsel %vm6489_vm14, 4294967295, %v8043_v22  ;;  %v420_v23 = vand.u32 15, %v370_v52 }
  0xf1   : > { %v888_v34 = vsel %vm6419_vm8, %v819_v28, 0.0  ;;  %v6448_v35 = vpop.f32.mrf.mxu0  ;;  %v981_v45 = vpop.f32.mrf.mxu1  ;;  %8045 = vst [vmem:[#allocation13_spill] sm:$0xff] %v8044_v22  ;;  %v448_v42 = vand.u32 15, %v374_v60 }
  0xf2   : > { %v6450_v40 = vadd.f32 %v5555_v29, %v888_v34  ;;  %v6452_v48 = vadd.f32 %v981_v45, %v886_v30  ;;  %v1163_v53 = vrot.slane %v6448_v35, 1  ;;  %v892_v30 = vsel %vm6463_vm11, %v827_v5, 0.0 }
  0xf3   : > { %v5566_v49 = vpop.f32.mrf.mxu0  ;;  %v5556_v56 = vpop.f32.mrf.mxu1  ;;  %vm6531_vm15 = vcmp.lt.s32.totalorder %v420_v23, 15  ;;  %vm6556_vm3 = vcmp.lt.s32.totalorder %v448_v42, 15 }
  0xf4   : > { %v1168_v59 = vrot.slane %v5566_v49, 1  ;;  %v6461_v1 = vadd.f32 %v5556_v56, %v821_v19  ;;  %v376_v56 = vadd.s32 88, %v6322_v58  ;;  %v8047_v38 = vsel %vm6531_vm15, 4294967295, %v8046_v38 }
  0xf5   : > { %v1070_v3 = vpop.f32.mrf.mxu0  ;;  %v6476_v2 = vpop.f32.mrf.mxu1  ;;  %8048 = vst [vmem:[#allocation14_spill] sm:$0xff] %v8047_v38 }
  0xf6   : > { %v1169_v63 = vsel %vm7940_vm10, %v1166_v41, %v1168_v59  ;;  %v1164_v12 = vrot.slane %v1070_v3, 1  ;;  %v462_v27 = vand.u32 15, %v376_v56 }
  0xf7   : > { %v5569_v19 = vpop.f32.mrf.mxu0  ;;  %v6487_v8 = vadd.f32 %v1169_v63, %v6368_v26  ;;  %v5559_v32 = vpop.f32.mrf.mxu1 }
  0xf8   : > { %v1165_v28 = vsel %vm7940_vm10, %v1163_v53, %v1164_v12  ;;  %v1167_v29 = vsel %vm7940_vm10, %v1164_v12, %v1166_v41  ;;  %v6503_v34 = vadd.f32 %v5559_v32, %v892_v30  ;;  %v1174_v46 = vrot.slane %v5569_v19, 1 }
  0xf9   : > { %v6501_v26 = vadd.f32 %v1165_v28, %v6373_v31  ;;  %v1083_v36 = vpop.f32.mrf.mxu0  ;;  %v1245_v45 = vsel %vm6478_vm12, %v1167_v29, 0.0  ;;  %v997_v41 = vpop.f32.mrf.mxu1  ;;  %v1017_v32 = vadd.f32 %v6429_v17, %v809_v21  ;;  %vm6561_vm1 = vcmp.lt.s32.totalorder %v462_v27, 15 }
  0xfa   : > { %v1170_v49 = vrot.slane %v1083_v36, 1  ;;  %v6510_v50 = vadd.f32 %v1245_v45, %v1013_v25  ;;  %v6512_v52 = vadd.f32 %v997_v41, %v890_v47  ;;  %v434_v25 = vand.u32 15, %v372_v43 }
  0xfb   : > { %v5570_v31 = vpop.f32.mrf.mxu0  ;;  %v5560_v5 = vpop.f32.mrf.mxu1  ;;  %v380_v47 = vadd.s32 120, %v6322_v58  ;;  %v8049_v41 = vmov 0 }
  0xfc   : > { %v1171_v3 = vsel %vm7940_vm10, %v1168_v59, %v1170_v49  ;;  %v1176_v10 = vrot.slane %v5570_v31, 1  ;;  %v6523_v63 = vadd.f32 %v5560_v5, %v6359_v20  ;;  %vm6545_vm0 = vcmp.lt.s32.totalorder %v434_v25, 15 }
  0xfd   : > { %v1086_v12 = vpop.f32.mrf.mxu0  ;;  %v1247_v19 = vsel %vm6489_vm14, %v1171_v3, 0.0  ;;  %v6528_v29 = vpop.f32.mrf.mxu1  ;;  %v8050_v41 = vsel %vm6545_vm0, 4294967295, %v8049_v41  ;;  %v8052_v3 = vmov 0 }
  0xfe   : > { %v1177_v28 = vsel %vm7940_vm10, %v1174_v46, %v1176_v10  ;;  %v1172_v59 = vrot.slane %v1086_v12, 1  ;;  %v1263_v30 = vadd.f32 %v1247_v19, %v6378_v37  ;;  %8051 = vst [vmem:[#allocation15_spill] sm:$0xff] %v8050_v41  ;;  %v8053_v3 = vsel %vm6556_vm3, 4294967295, %v8052_v3 }
  0xff   : > { %v5573_v24 = vpop.f32.mrf.mxu0  ;;  %v6536_v20 = vadd.f32 %v1177_v28, %v6405_v54  ;;  %v5583_v45 = vpop.f32.mrf.mxu1  ;;  %8054 = vst [vmem:[#allocation16_spill] sm:$0xff] %v8053_v3  ;;  %v8055_v12 = vmov 0  ;;  %v490_v19 = vand.u32 15, %v380_v47 }
 0x100   : > { %v1175_v36 = vsel %vm7940_vm10, %v1172_v59, %v1174_v46  ;;  %v1173_v43 = vsel %vm7940_vm10, %v1170_v49, %v1172_v59  ;;  %v1182_v31 = vrot.slane %v5573_v24, 1  ;;  %v378_v49 = vadd.s32 104, %v6322_v58 }
 0x101   : > { %v1099_v37 = vpop.f32.mrf.mxu0  ;;  %v6543_v23 = vadd.f32 %v1173_v43, %v6408_v57  ;;  %v1249_v54 = vsel %vm6531_vm15, %v1175_v36, 0.0  ;;  %v6551_v56 = vpop.f32.mrf.mxu1  ;;  %v8056_v12 = vsel %vm6561_vm1, 4294967295, %v8055_v12  ;;  %v817_v58 = vsel %vm7935_vm2, %v814_v55, %v816_v16 }
 0x102   : > { %v1178_v17 = vrot.slane %v1099_v37, 1  ;;  %v6553_v46 = vadd.f32 %v1249_v54, %v1017_v32  ;;  %8057 = vst [vmem:[#allocation17_spill] sm:$0xff] %v8056_v12  ;;  %v1484_v25 = vrot.slane %v5583_v45, 7  ;;  %v476_v36 = vand.u32 15, %v378_v49 }
 0x103   : > { %v5574_v60 = vpop.f32.mrf.mxu0  ;;  %v5584_v21 = vpop.f32.mrf.mxu1  ;;  %v1481_v43 = vrot.slane %v6551_v56, 7  ;;  %v1021_v16 = vadd.f32 %v6476_v2, %v817_v58 }
 0x104   : > { %v1179_v57 = vsel %vm7940_vm10, %v1176_v10, %v1178_v17  ;;  %v1184_v5 = vrot.slane %v5574_v60, 1  ;;  %v1486_v28 = vrot.slane %v5584_v21, 7 }
 0x105   : > { %v1102_v59 = vpop.f32.mrf.mxu0  ;;  %v1251_v24 = vsel %vm6545_vm0, %v1179_v57, 0.0  ;;  %v1403_v27 = vpop.f32.mrf.mxu1 }
 0x106   : > { %v1185_v10 = vsel %vm7940_vm10, %v1182_v31, %v1184_v5  ;;  %v1180_v42 = vrot.slane %v1102_v59, 1  ;;  %v1267_v32 = vadd.f32 %v1251_v24, %v6415_v6  ;;  %v1482_v7 = vrot.slane %v1403_v27, 7 }
 0x107   : > { %v5577_v47 = vpop.f32.mrf.mxu0  ;;  %v1487_v51 = vsel %vm7935_vm2, %v1484_v25, %v1486_v28  ;;  %v6577_v55 = vadd.f32 %v1185_v10, %v6450_v40  ;;  %v5587_v37 = vpop.f32.mrf.mxu1 }
 0x108   : > { %v1183_v45 = vsel %vm7940_vm10, %v1180_v42, %v1182_v31  ;;  %v1547_v54 = vadd.f32 %v1487_v51, %v1263_v30  ;;  %v1181_v60 = vsel %vm7940_vm10, %v1178_v17, %v1180_v42  ;;  %v1190_v57 = vrot.slane %v5577_v47, 1  ;;  %v6613_v47 = vld [vmem:[%s7930_s4 + $0x18] sm:$0xff]  }
 0x109   : > { %v1115_v6 = vpop.f32.mrf.mxu0  ;;  %v1485_v49 = vsel %vm7935_vm2, %v1482_v7, %v1484_v25  ;;  %v1483_v21 = vsel %vm7935_vm2, %v1481_v43, %v1482_v7  ;;  %v6587_v59 = vadd.f32 %v1181_v60, %v6452_v48  ;;  %v1416_v24 = vpop.f32.mrf.mxu1  ;;  %v1253_v31 = vsel %vm6556_vm3, %v1183_v45, 0.0  ;;  %8064 = vst [vmem:[#allocation20_spill] sm:$0xff] %v6613_v47  ;;  %5769 = vmatprep.subr.bf16.mxu1 %v6613_v47 }
 0x10a   : > { %v1186_v40 = vrot.slane %v1115_v6, 1  ;;  %v1530_v2 = vsel %vm6343_vm4, %v1485_v49, 0.0  ;;  %v6592_v30 = vadd.f32 %v1483_v21, %v6510_v50  ;;  %v1488_v17 = vrot.slane %v1416_v24, 7 }
 0x10b   : > { %v5578_v58 = vpop.f32.mrf.mxu0  ;;  %v6597_v25 = vadd.f32 %v1530_v2, %v6487_v8  ;;  %v6599_v10 = vadd.f32 %v1253_v31, %v1021_v16  ;;  %v5588_v27 = vpop.f32.mrf.mxu1  ;;  %vm6602_vm2 = vcmp.lt.s32.totalorder %v490_v19, 15  ;;  %v8058_v7 = vmov 0 }
 0x10c   : > { %v1187_v48 = vsel %vm7940_vm10, %v1184_v5, %v1186_v40  ;;  %v1192_v42 = vrot.slane %v5578_v58, 1  ;;  %v8059_v7 = vsel %vm6602_vm2, 4294967295, %v8058_v7  ;;  %vm6606_vm4 = vcmp.lt.s32.totalorder %v476_v36, 15 }
 0x10d   : > { %8060 = vst [vmem:[#allocation18_spill] sm:$0xff] %v8059_v7  ;;  %v8061_v50 = vmov 0  ;;  %v1492_v8 = vrot.slane %v5587_v37, 7  ;;  %v1494_v51 = vrot.slane %v5588_v27, 7  ;;  %v1118_v16 = vpop.f32.mrf.mxu0  ;;  %vm8065_vm3 = vcmask 1040384   ;;  %v1419_v6 = vpop.f32.mrf.mxu1 }
 0x10e   : > { %v8062_v50 = vsel %vm6606_vm4, 4294967295, %v8061_v50  ;;  %v1489_v5 = vsel %vm8065_vm3, %v1486_v28, %v1488_v17  ;;  %v1255_v19 = vsel %vm6561_vm1, %v1187_v48, 0.0  ;;  %v1193_v45 = vsel %vm7940_vm10, %v1190_v57, %v1192_v42 }
 0x10f   : > { %8063 = vst [vmem:[#allocation19_spill] sm:$0xff] %v8062_v50  ;;  %v1211_v36 = vsel %vm7940_vm10, %v1192_v42, %v1163_v53  ;;  %v1188_v60 = vrot.slane %v1118_v16, 1  ;;  %v1532_v49 = vsel %vm6382_vm6, %v1489_v5, 0.0  ;;  %v1490_v37 = vrot.slane %v1419_v6, 7  ;;  %v6625_v21 = vpop.f32.mrf.mxu0  ;;  %vm8066_vm10 = vmmov %vm8065_vm3  ;;  %v5591_v31 = vpop.f32.mrf.mxu1 }
 0x110   : > { %v6628_v28 = vadd.f32 %v1532_v49, %v6543_v23  ;;  %v1495_v24 = vsel %vm8065_vm3, %v1492_v8, %v1494_v51  ;;  %v1271_v2 = vadd.f32 %v1255_v19, %v6461_v1  ;;  %v825_v35 = vsel %vm8066_vm10, %v822_v61, %v824_v33  ;;  %vm8068_vm6 = vmmov %vm8065_vm3 }
 0x111   : > { %vm8067_vm1 = vcmask 1046528   ;;  %v1551_v58 = vadd.f32 %v1495_v24, %v1267_v32  ;;  %v6639_v48 = vadd.f32 %v1193_v45, %v6503_v34  ;;  %v1025_v23 = vadd.f32 %v6528_v29, %v825_v35  ;;  %v6642_v42 = vpop.f32.mrf.mxu0  ;;  %v1432_v0 = vpop.f32.mrf.mxu1 }
 0x112   : > { %v1191_v53 = vsel %vm8067_vm1, %v1188_v60, %v1190_v57  ;;  %v1493_v27 = vsel %vm8065_vm3, %v1490_v37, %v1492_v8  ;;  %v1491_v1 = vsel %vm8068_vm6, %v1488_v17, %v1490_v37  ;;  %vm8069_vm0 = vmmov %vm8067_vm1  ;;  %v1259_v29 = vsel %vm6602_vm2, %v1211_v36, 0.0 }
 0x113   : > { %v1189_v13 = vsel %vm8069_vm0, %v1186_v40, %v1188_v60  ;;  %v1534_v61 = vsel %vm6391_vm7, %v1493_v27, 0.0  ;;  %v6650_v33 = vadd.f32 %v1491_v1, %v6553_v46  ;;  %v1496_v32 = vrot.slane %v1432_v0, 7  ;;  %v5602_v57 = vpop.f32.mrf.mxu0  ;;  %v5592_v16 = vpop.f32.mrf.mxu1  ;;  %vm8070_vm1 = vmmov %vm8065_vm3 }
 0x114   : > { %v1272_v34 = vadd.f32 %v1189_v13, %v6512_v52  ;;  %v6656_v8 = vadd.f32 %v1534_v61, %v6536_v20  ;;  %v1275_v17 = vadd.f32 %v1259_v29, %v6523_v63  ;;  %v1257_v40 = vsel %vm6606_vm4, %v1191_v53, 0.0  ;;  %vm8071_vm6 = vmmov %vm8070_vm1 }
 0x115   : > { %v6661_v5 = vadd.f32 %v5602_v57, %v1547_v54  ;;  %v1273_v46 = vadd.f32 %v1257_v40, %v1025_v23  ;;  %v1500_v19 = vrot.slane %v5591_v31, 7  ;;  %v1502_v45 = vrot.slane %v5592_v16, 7  ;;  %v6663_v52 = vpop.f32.mrf.mxu0  ;;  %v1435_v60 = vpop.f32.mrf.mxu1  ;;  %vm8072_vm10 = vmmov %vm8070_vm1 }
 0x116   : > { %v1497_v36 = vsel %vm8070_vm1, %v1494_v51, %v1496_v32  ;;  %v1498_v6 = vrot.slane %v1435_v60, 7  ;;  %vm8073_vm0 = vmmov %vm8070_vm1  ;;  %v1664_v12 = vadd.f32 %v6625_v21, %v6597_v25  ;;  %v1663_v18 = vadd.f32 %v6663_v52, %v6592_v30 }
 0x117   : > { %v1536_v20 = vsel %vm6423_vm9, %v1497_v36, 0.0  ;;  %v6668_v49 = vpop.f32.mrf.mxu0  ;;  %v1503_v54 = vsel %vm8071_vm6, %v1500_v19, %v1502_v45  ;;  %v5595_v37 = vpop.f32.mrf.mxu1  ;;  %vm8075_vm3 = vmmov %vm8073_vm0 }
 0x118   : > { %v6671_v63 = vadd.f32 %v1536_v20, %v6587_v59  ;;  %v1555_v24 = vadd.f32 %v1503_v54, %v1271_v2  ;;  %v1501_v53 = vsel %vm8072_vm10, %v1498_v6, %v1500_v19  ;;  %v1499_v51 = vsel %vm8073_vm0, %v1496_v32, %v1498_v6  ;;  %vm8076_vm1 = vmmov %vm8073_vm0 }
 0x119   : > { %v6674_v35 = vpop.f32.mrf.mxu0  ;;  %v1448_v31 = vpop.f32.mrf.mxu1  ;;  %v1538_v23 = vsel %vm6419_vm8, %v1501_v53, 0.0  ;;  %v6681_v27 = vadd.f32 %v1499_v51, %v6599_v10  ;;  %v1508_v61 = vrot.slane %v5595_v37, 7  ;;  %vm8077_vm6 = vmmov %vm8073_vm0 }
 0x11a   : > { %v1504_v1 = vrot.slane %v1448_v31, 7  ;;  %v6684_v13 = vadd.f32 %v1538_v23, %v6577_v55  ;;  %vm8078_vm10 = vmmov %vm8073_vm0  ;;  %v1666_v25 = vadd.f32 %v6674_v35, %v6628_v28 }
 0x11b   : > { %v5606_v59 = vpop.f32.mrf.mxu0  ;;  %v5596_v0 = vpop.f32.mrf.mxu1 }
 0x11c   : > { %v6686_v2 = vadd.f32 %v5606_v59, %v1551_v58  ;;  %v1464_v29 = vrot.slane %v5596_v0, 7  ;;  %v1505_v32 = vsel %vm8075_vm3, %v1502_v45, %v1504_v1  ;;  %vm8082_vm3 = vcmask 1046528  }
 0x11d   : > { %v1618_v57 = vpop.f32.mrf.mxu0  ;;  %v1451_v40 = vpop.f32.mrf.mxu1  ;;  %v1540_v16 = vsel %vm6482_vm13, %v1505_v32, 0.0  ;;  %vm8104_vm13 = vcmask 1046528  }
 0x11e   : > { %8074 = vst [vmem:[#allocation21_spill] sm:$0xff] %v6686_v2  ;;  %v1527_v10 = vsel %vm8076_vm1, %v1464_v29, %v1481_v43  ;;  %v1506_v19 = vrot.slane %v1451_v40, 7  ;;  %v6694_v55 = vadd.f32 %v1540_v16, %v1272_v34  ;;  %v1510_v58 = vsel %vm8077_vm6, %v1508_v61, %v1464_v29  ;;  %vm8084_vm1 = vmmov %vm8082_vm3 }
 0x11f   : > { %v5609_v36 = vpop.f32.mrf.mxu0  ;;  %v1528_v60 = vsel %vm6349_vm5, %v1527_v10, 0.0  ;;  %v5619_v20 = vpop.f32.mrf.mxu1  ;;  %v6699_v6 = vadd.f32 %v1510_v58, %v1275_v17  ;;  %v1667_v21 = vadd.f32 %v1618_v57, %v6650_v33  ;;  %vm8085_vm6 = vmmov %vm8084_vm1 }
 0x120   : > { %v1544_v45 = vadd.f32 %v1528_v60, %v6501_v26  ;;  %v1509_v37 = vsel %vm8078_vm10, %v1506_v19, %v1508_v61  ;;  %v1507_v56 = vsel %vm8073_vm0, %v1504_v1, %v1506_v19  ;;  %v6770_v30 = vadd.f32 %v5609_v36, %v6684_v13  ;;  %vm8086_vm10 = vmmov %vm8084_vm1 }
 0x121   : > { %v1631_v54 = vpop.f32.mrf.mxu0  ;;  %v6704_v43 = vpop.f32.mrf.mxu1  ;;  %v1542_v34 = vsel %vm6463_vm11, %v1509_v37, 0.0  ;;  %v6708_v53 = vadd.f32 %v1507_v56, %v1273_v46  ;;  %vm8087_vm0 = vmmov %vm8084_vm1 }
 0x122   : > { %v1558_v31 = vadd.f32 %v1542_v34, %v6639_v48  ;;  %v1662_v33 = vadd.f32 %v6642_v42, %v1544_v45 }
 0x123   : > { %v5610_v51 = vpop.f32.mrf.mxu0  ;;  %v5620_v17 = vpop.f32.mrf.mxu1 }
 0x124   : > { %v6711_v23 = vadd.f32 %v5610_v51, %v1555_v24  ;;  %v1801_v50 = vrot.slane %v5620_v17, 1  ;;  %v7972_v17 = vrot.slane %v6704_v43, 1 }
 0x125   : > { %v1634_v59 = vpop.f32.mrf.mxu0  ;;  %v1720_v26 = vpop.f32.mrf.mxu1 }
 0x126   : > { %8079 = vst [vmem:[#allocation22_spill] sm:$0xff] %v6711_v23  ;;  %v1797_v9 = vrot.slane %v1720_v26, 1  ;;  %v1799_v23 = vrot.slane %v5619_v20, 1  ;;  %v1668_v26 = vadd.f32 %v6668_v49, %v6656_v8  ;;  %v6776_v8 = vadd.f32 %v1631_v54, %v6671_v63 }
 0x127   : > { %v5613_v0 = vpop.f32.mrf.mxu0  ;;  %v5623_v29 = vpop.f32.mrf.mxu1  ;;  %v6786_v35 = vadd.f32 %v1634_v59, %v6681_v27 }
 0x128   : > { %v1802_v52 = vsel %vm8084_vm1, %v1799_v23, %v1801_v50  ;;  %v1798_v49 = vsel %vm8085_vm6, %v7972_v17, %v1797_v9  ;;  %v6793_v36 = vadd.f32 %v5613_v0, %v1558_v31  ;;  %vm8089_vm1 = vmmov %vm8087_vm0 }
 0x129   : > { %v1647_v61 = vpop.f32.mrf.mxu0  ;;  %v6713_v32 = vpop.f32.mrf.mxu1  ;;  %v6799_v42 = vadd.f32 %v1798_v49, %v1662_v33  ;;  %vm8090_vm6 = vmmov %vm8087_vm0 }
 0x12a   : > { %v6802_v27 = vadd.f32 %v1647_v61, %v6694_v55 }
 0x12b   : > { %v6715_v1 = vpop.f32.mrf.mxu0  ;;  %v6717_v40 = vpop.f32.mrf.mxu1 }
 0x12d   : > { %v6719_v16 = vpop.f32.mrf.mxu0  ;;  %v1736_v46 = vpop.f32.mrf.mxu1 }
 0x12e   : > { %v1805_v20 = vrot.slane %v1736_v46, 1  ;;  %v1807_v46 = vrot.slane %v5623_v29, 1 }
 0x12f   : > { %v6721_v10 = vpop.f32.mrf.mxu0  ;;  %v6723_v48 = vpop.f32.mrf.mxu1 }
 0x131   : > { %v6725_v24 = vpop.f32.mrf.mxu0  ;;  %v6727_v19 = vpop.f32.mrf.mxu1 }
 0x132   : > { %v1811_v54 = vrot.slane %v6727_v19, 1 }
 0x133   : > { %v6729_v58 = vpop.f32.mrf.mxu0  ;;  %v6731_v60 = vpop.f32.mrf.mxu1 }
 0x134   : > { %v2087_v45 = vrot.slane %v6729_v58, 7 }
 0x135   : > { %v6733_v37 = vpop.f32.mrf.mxu0  ;;  %v6735_v56 = vpop.f32.mrf.mxu1 }
 0x136   : > { %v2083_v31 = vrot.slane %v6733_v37, 7  ;;  %v1813_v55 = vrot.slane %v6735_v56, 1  ;;  %v6823_v37 = vadd.f32 %v6715_v1, %v6699_v6 }
 0x137   : > { %v6737_v34 = vpop.f32.mrf.mxu0  ;;  %v6739_v51 = vpop.f32.mrf.mxu1 }
 0x138   : > { %8080 = vst [vmem:[#allocation23_spill] sm:$0xff] %v6739_v51  ;;  %v1803_v51 = vrot.slane %v6713_v32, 1 }
 0x139   : > { %v6741_v47 = vpop.f32.mrf.mxu0  ;;  %v6743_v4 = vpop.f32.mrf.mxu1 }
 0x13a   : > { %v1804_v13 = vsel %vm8086_vm10, %v1801_v50, %v1803_v51  ;;  %v2085_v50 = vrot.slane %v6721_v10, 7  ;;  %v1806_v19 = vsel %vm8089_vm1, %v1803_v51, %v1805_v20  ;;  %v2089_v61 = vrot.slane %v6741_v47, 7 }
 0x13b   : > { %v6745_v62 = vpop.f32.mrf.mxu0  ;;  %v6747_v11 = vpop.f32.mrf.mxu1  ;;  %v1817_v51 = vrot.slane %v6731_v60, 1  ;;  %v1815_v47 = vrot.slane %v6723_v48, 1  ;;  %vm8091_vm10 = vcmask 1040384   ;;  %v1819_v48 = vrot.slane %v6743_v4, 1 }
 0x13c   : > { %8081 = vst [vmem:[#allocation24_spill] sm:$0xff] %v6747_v11  ;;  %v1800_v11 = vsel %vm8082_vm3, %v1797_v9, %v1799_v23  ;;  %v1808_v9 = vsel %vm8087_vm0, %v1805_v20, %v1807_v46  ;;  %v1863_v23 = vadd.f32 %v1802_v52, %v1664_v12  ;;  %vm8088_vm3 = vmmov %vm8087_vm0  ;;  %v1848_v12 = vsel %vm6489_vm14, %v1804_v13, 0.0 }
 0x13d   : > { %v6749_v7 = vpop.f32.mrf.mxu0  ;;  %v6751_v44 = vpop.f32.mrf.mxu1  ;;  %v1846_v63 = vsel %vm6478_vm12, %v1800_v11, 0.0  ;;  %v1850_v58 = vsel %vm6531_vm15, %v1808_v9, 0.0  ;;  %v2082_v20 = vrot.slane %v6725_v24, 7  ;;  %v1864_v49 = vadd.f32 %v1848_v12, %v6661_v5  ;;  %vm8092_vm0 = vmmov %vm8091_vm10 }
 0x13e   : > { %v1862_v0 = vadd.f32 %v1846_v63, %v1663_v18  ;;  %v6827_v18 = vadd.f32 %v6719_v16, %v6708_v53  ;;  %v2086_v1 = vsel %vm8092_vm0, %v2083_v31, %v2085_v50  ;;  %v1865_v16 = vadd.f32 %v1806_v19, %v1666_v25 }
 0x13f   : > { %v6758_v2 = vpop.f32.mrf.mxu0  ;;  %v6764_v3 = vpop.f32.mrf.mxu1  ;;  %v1866_v60 = vadd.f32 %v1850_v58, %v1667_v21  ;;  %v2091_v4 = vrot.slane %v6749_v7, 7  ;;  %v2095_v19 = vrot.slane %v6745_v62, 7 }
 0x140   : > { %8083 = vst [vmem:[#allocation25_spill] sm:$0xff] %v6764_v3  ;;  %v1809_v3 = vrot.slane %v6717_v40, 1 }
 0x141   : > { %v6773_v32 = vpop.f32.mrf.mxu0  ;;  %v6782_v28 = vpop.f32.mrf.mxu1 }
 0x142   : > { %v1810_v11 = vsel %vm8088_vm3, %v1807_v46, %v1809_v3  ;;  %v1812_v52 = vsel %vm8090_vm6, %v1809_v3, %v1811_v54  ;;  %v2088_v46 = vsel %vm8091_vm10, %v2085_v50, %v2087_v45  ;;  %vm8093_vm3 = vmmov %vm8089_vm1  ;;  %vm8096_vm6 = vnez %v8050_v41 }
 0x143   : > { %v6789_v57 = vpop.f32.mrf.mxu0  ;;  %v6797_v29 = vpop.f32.mrf.mxu1  ;;  %v6840_v53 = vadd.f32 %v1810_v11, %v1668_v26  ;;  %v1816_v33 = vsel %vm8093_vm3, %v1813_v55, %v1815_v47  ;;  %vm8094_vm1 = vmmov %vm8092_vm0  ;;  %v1852_v5 = vsel %vm8096_vm6, %v1812_v52, 0.0  ;;  %v2093_v26 = vrot.slane %v6737_v34, 7 }
 0x144   : > { %v2090_v24 = vsel %vm8094_vm1, %v2087_v45, %v2089_v61  ;;  %vm8097_vm10 = vmmov %vm8093_vm3  ;;  %v6853_v9 = vadd.f32 %v2088_v46, %v1864_v49  ;;  %v2084_v11 = vsel %vm8094_vm1, %v2082_v20, %v2083_v31  ;;  %v8106_v49 = vld [vmem:[#allocation21_spill] sm:$0xff] }
 0x145   : > { %v6806_v59 = vpop.f32.mrf.mxu0  ;;  %v6812_v40 = vpop.f32.mrf.mxu1  ;;  %v1818_v63 = vsel %vm8097_vm10, %v1815_v47, %v1817_v51  ;;  %vm8098_vm0 = vmmov %vm8093_vm3  ;;  %vm8099_vm3 = vnez %v8017_v14  ;;  %vm8100_vm10 = vnez %v8023_v39  ;;  %v8105_v47 = vld [vmem:[#allocation24_spill] sm:$0xff]  ;;  %v1868_v46 = vadd.f32 %v1852_v5, %v8106_v49 }
 0x146   : > { %v1814_v50 = vsel %vm8098_vm0, %v1811_v54, %v1813_v55  ;;  %v2131_v45 = vsel %vm8099_vm3, %v2086_v1, 0.0  ;;  %v2133_v34 = vsel %vm8100_vm10, %v2090_v24, 0.0  ;;  %vm8101_vm11 = vmmov %vm8094_vm1  ;;  %v8102_v54 = vld [vmem:[#allocation16_spill] sm:$0xff]  ;;  %v1820_v55 = vsel %vm8104_vm13, %v1817_v51, %v1819_v48  ;;  %v8107_v24 = vld [vmem:[#allocation23_spill] sm:$0xff] }
 0x147   : > { %v6817_v10 = vpop.f32.mrf.mxu0  ;;  %v6831_v56 = vpop.f32.mrf.mxu1  ;;  %vm8103_vm0 = vnez %v8102_v54  ;;  %v1825_v31 = vrot.slane %v8105_v47, 1  ;;  %v6879_v62 = vadd.f32 %v1818_v63, %v6770_v30  ;;  %v1823_v17 = vrot.slane %v8107_v24, 1  ;;  %vm8110_vm13 = vmmov %vm8094_vm1 }
 0x148   : > { %v1854_v7 = vsel %vm8103_vm0, %v1816_v33, 0.0  ;;  %v2147_v39 = vadd.f32 %v2131_v45, %v1863_v23  ;;  %v2146_v14 = vadd.f32 %v2084_v11, %v1862_v0  ;;  %v6887_v51 = vadd.f32 %v2133_v34, %v1865_v16  ;;  %v8111_v11 = vld [vmem:[#allocation17_spill] sm:$0xff]  ;;  %vm8116_vm10 = vmmov %vm8110_vm13 }
 0x149   : > { %v6837_v6 = vpop.f32.mrf.mxu0  ;;  %v6842_v3 = vpop.f32.mrf.mxu1  ;;  %v6890_v47 = vadd.f32 %v1814_v50, %v6776_v8  ;;  %v6895_v30 = vadd.f32 %v1854_v7, %v6786_v35  ;;  %v1821_v23 = vrot.slane %v6751_v44, 1  ;;  %v2096_v0 = vsel %vm8110_vm13, %v2093_v26, %v2095_v19 }
 0x14a   : > { %v8114_v8 = vrot.slane %v6704_v43, 1  ;;  %v2092_v35 = vsel %vm8116_vm10, %v2089_v61, %v2091_v4  ;;  %v2097_v44 = vrot.slane %v6773_v32, 7  ;;  %v8118_v43 = vld [vmem:[#allocation25_spill] sm:$0xff] }
 0x14b   : > { %v6847_v13 = vpop.f32.mrf.mxu0  ;;  %v6856_v21 = vpop.f32.mrf.mxu1 }
 0x14c   : > { %8095 = vst [vmem:[#allocation26_spill] sm:$0xff] %v6847_v13  ;;  %v7977_v25 = vrot.slane %v6847_v13, 7 }
 0x14d   : > { %v6863_v12 = vpop.f32.mrf.mxu0  ;;  %v6871_v52 = vpop.f32.mrf.mxu1 }
 0x14e   : > { %v2128_v58 = vsel %vm8101_vm11, %v7977_v25, %v2082_v20  ;;  %vm8109_vm11 = vmmov %vm8094_vm1  ;;  %vm8112_vm1 = vnez %v8111_v11  ;;  %v2265_v11 = vadd.f32 %v8118_v43, %v2147_v39  ;;  %v2150_v20 = vadd.f32 %v2092_v35, %v1866_v60 }
 0x14f   : > { %v5673_v1 = vpop.f32.mrf.mxu0  ;;  %v2129_v25 = vsel %vm6349_vm5, %v2128_v58, 0.0  ;;  %v6884_v13 = vpop.f32.mrf.mxu1  ;;  %v2094_v33 = vsel %vm8109_vm11, %v2091_v4, %v2093_v26  ;;  %v1856_v58 = vsel %vm8112_vm1, %v1820_v55, 0.0  ;;  %vm8113_vm11 = vcmask 1046528  }
 0x150   : > { %v2400_v63 = vrot.slane %v5673_v1, 1  ;;  %v1826_v16 = vsel %vm8113_vm11, %v1823_v17, %v1825_v31  ;;  %vm8115_vm5 = vmmov %vm8113_vm11  ;;  %v2145_v34 = vadd.f32 %v2129_v25, %v6799_v42  ;;  %v2135_v49 = vsel %vm6391_vm7, %v2094_v33, 0.0  ;;  %v8119_v42 = vld [vmem:[#allocation22_spill] sm:$0xff] }
 0x151   : > { %v6892_v5 = vpop.f32.mrf.mxu0  ;;  %v6899_v45 = vpop.f32.mrf.mxu1  ;;  %v1844_v50 = vsel %vm8115_vm5, %v1825_v31, %v8114_v8  ;;  %v6917_v31 = vadd.f32 %v2096_v0, %v1868_v46  ;;  %v6920_v25 = vadd.f32 %v1856_v58, %v8119_v42  ;;  %v1822_v32 = vsel %vm8115_vm5, %v1819_v48, %v1821_v23  ;;  %vm8120_vm10 = vmmov %vm8115_vm5 }
 0x152   : > { %v1824_v4 = vsel %vm8120_vm10, %v1821_v23, %v1823_v17  ;;  %vm8121_vm13 = vmmov %vm8115_vm5  ;;  %v2263_v39 = vadd.f32 %v6782_v28, %v2145_v34  ;;  %v2264_v0 = vadd.f32 %v6812_v40, %v2146_v14  ;;  %vm8122_vm11 = vcmask 1040384  }
 0x153   : > { %v5674_v7 = vpop.f32.mrf.mxu0  ;;  %v6913_v24 = vpop.f32.mrf.mxu1  ;;  %v2098_v58 = vsel %vm8122_vm11, %v2095_v19, %v2097_v44  ;;  %v8123_v48 = vrot.slane %v6892_v5, 1  ;;  %vm8124_vm10 = vmmov %vm8115_vm5  ;;  %vm8125_vm7 = vcmask 31744   ;;  %v1860_v19 = vsel %vm6602_vm2, %v1844_v50, 0.0 }
 0x154   : > { %v2402_v55 = vrot.slane %v5674_v7, 1  ;;  %v2151_v7 = vadd.f32 %v2135_v49, %v6840_v53  ;;  %v2099_v53 = vrot.slane %v6806_v59, 7  ;;  %v2103_v59 = vrot.slane %v6789_v57, 7  ;;  %vm8129_vm11 = vmmov %vm8125_vm7 }
 0x155   : > { %v2321_v61 = vpop.f32.mrf.mxu0  ;;  %v6925_v8 = vpop.f32.mrf.mxu1  ;;  %v6955_v50 = vadd.f32 %v1822_v32, %v6802_v27  ;;  %v6962_v57 = vadd.f32 %v1860_v19, %v6823_v37 }
 0x156   : > { %v2403_v33 = vsel %vm8121_vm13, %v2400_v63, %v2402_v55  ;;  %v2398_v1 = vrot.slane %v2321_v61, 1  ;;  %v6952_v61 = vadd.f32 %v1826_v16, %v6793_v36  ;;  %v2269_v36 = vadd.f32 %v6831_v56, %v2151_v7 }
 0x157   : > { %v2464_v26 = vadd.f32 %v2403_v33, %v2265_v11  ;;  %v5677_v46 = vpop.f32.mrf.mxu0  ;;  %v6935_v43 = vpop.f32.mrf.mxu1  ;;  %v8130_v16 = vrot.slane %v6758_v2, 7  ;;  %v2105_v56 = vrot.slane %v6837_v6, 7  ;;  %v2267_v7 = vadd.f32 %v6842_v3, %v6887_v51 }
 0x158   : > { %v2399_v17 = vsel %vm8115_vm5, %v8123_v48, %v2398_v1  ;;  %v2401_v23 = vsel %vm8124_vm10, %v2398_v1, %v2400_v63  ;;  %v2408_v34 = vrot.slane %v5677_v46, 1  ;;  %v1858_v1 = vsel %vm6606_vm4, %v1824_v4, 0.0 }
 0x159   : > { %2480 = vst.msk [vmem:[#allocation2 + $0x10] sm:$0xff] %vm8125_vm7, %v2464_v26  ;;  %v2447_v28 = vsel %vm6478_vm12, %v2401_v23, 0.0  ;;  %v2462_v60 = vadd.f32 %v2399_v17, %v2263_v39  ;;  %v2334_v14 = vpop.f32.mrf.mxu0  ;;  %v6943_v35 = vpop.f32.mrf.mxu1  ;;  %v2137_v26 = vsel %vm6423_vm9, %v2098_v58, 0.0  ;;  %v2266_v39 = vadd.f32 %v6797_v29, %v6853_v9 }
 0x15a   : > { %v2463_v11 = vadd.f32 %v2447_v28, %v2264_v0  ;;  %v2404_v63 = vrot.slane %v2334_v14, 1  ;;  %vm8131_vm10 = vcmask 1040384   ;;  %v6973_v29 = vadd.f32 %v1858_v1, %v6827_v18 }
 0x15b   : > { %2478 = vst.msk [vmem:[#allocation2] sm:$0xff] %vm8125_vm7, %v2462_v60  ;;  %v5678_v33 = vpop.f32.mrf.mxu0  ;;  %v6964_v46 = vpop.f32.mrf.mxu1  ;;  %v2102_v27 = vsel %vm8131_vm10, %v2099_v53, %v8130_v16  ;;  %vm8132_vm7 = vmmov %vm8115_vm5  ;;  %v2268_v18 = vadd.f32 %v6871_v52, %v2150_v20  ;;  %v2107_v6 = vrot.slane %v6863_v12, 7  ;;  %v8138_v20 = vmov %v8130_v16 }
 0x15c   : > { %2479 = vst.msk [vmem:[#allocation2 + $0x8] sm:$0xff] %vm8129_vm11, %v2463_v11  ;;  %v2405_v4 = vsel %vm8115_vm5, %v2402_v55, %v2404_v63  ;;  %v2410_v0 = vrot.slane %v5678_v33, 1  ;;  %v2153_v55 = vadd.f32 %v2137_v26, %v6890_v47  ;;  %vm8133_vm11 = vmmov %vm8131_vm10  ;;  %v2139_v47 = vsel %vm6419_vm8, %v2102_v27, 0.0 }
 0x15d   : > { %v2449_v32 = vsel %vm6489_vm14, %v2405_v4, 0.0  ;;  %v2337_v9 = vpop.f32.mrf.mxu0  ;;  %v6977_v48 = vpop.f32.mrf.mxu1  ;;  %v2100_v23 = vsel %vm8133_vm11, %v2097_v44, %v2099_v53  ;;  %vm8135_vm5 = vcmask 31744   ;;  %vm8136_vm10 = vmmov %vm8132_vm7  ;;  %v2104_v53 = vsel %vm8133_vm11, %v8138_v20, %v2103_v59 }
 0x15e   : > { %v2465_v37 = vadd.f32 %v2449_v32, %v2266_v39  ;;  %v2411_v58 = vsel %vm8132_vm7, %v2408_v34, %v2410_v0  ;;  %v2406_v17 = vrot.slane %v2337_v9, 1  ;;  %vm8137_vm13 = vmmov %vm8135_vm5  ;;  %v2155_v12 = vadd.f32 %v2139_v47, %v6879_v62 }
 0x15f   : > { %v2468_v28 = vadd.f32 %v2411_v58, %v2269_v36  ;;  %v5681_v60 = vpop.f32.mrf.mxu0  ;;  %v5697_v1 = vpop.f32.mrf.mxu1  ;;  %v2270_v2 = vadd.f32 %v6856_v21, %v6917_v31  ;;  %v2154_v27 = vadd.f32 %v2100_v23, %v6895_v30  ;;  %v8144_v21 = vld [vmem:[#allocation12_spill] sm:$0xff] }
 0x160   : > { %2481 = vst.msk [vmem:[#allocation2 + $0x18] sm:$0xff] %vm8135_vm5, %v2465_v37  ;;  %v2407_v19 = vsel %vm8136_vm10, %v2404_v63, %v2406_v17  ;;  %v2409_v11 = vsel %vm8132_vm7, %v2406_v17, %v2408_v34  ;;  %v5331_v44 = vpack.c.bf16 %v5697_v1, %v5697_v1  ;;  %v2416_v33 = vrot.slane %v5681_v60, 1  ;;  %vm8139_vm5 = vmmov %vm8133_vm11 }
 0x161   : > { %2484 = vst.msk [vmem:[#allocation2 + $0x30] sm:$0xff] %vm8137_vm13, %v2468_v28  ;;  %v2451_v3 = vsel %vm6531_vm15, %v2409_v11, 0.0  ;;  %v2466_v51 = vadd.f32 %v2407_v19, %v2267_v7  ;;  %v2350_v52 = vpop.f32.mrf.mxu0  ;;  %v2665_v39 = vpop.f32.mrf.mxu1  ;;  %v2109_v34 = vrot.slane %v6817_v10, 7  ;;  %v2106_v4 = vsel %vm8139_vm5, %v2103_v59, %v2105_v56  ;;  %vm8141_vm7 = vmmov %vm8137_vm13 }
 0x162   : > { %v2467_v26 = vadd.f32 %v2451_v3, %v2268_v18  ;;  %v2412_v63 = vrot.slane %v2350_v52, 1  ;;  %vm8140_vm10 = vcmask 125952   ;;  %v5329_v36 = vpack.c.bf16 %v2665_v39, %v2665_v39  ;;  %v8151_v3 = vld [vmem:[#allocation10_spill] sm:$0xff] }
 0x163   : > { %2482 = vst.msk [vmem:[#allocation2 + $0x20] sm:$0xff] %vm8137_vm13, %v2466_v51  ;;  %v5682_v16 = vpop.f32.mrf.mxu0  ;;  %vm8142_vm11 = vcmask 1046528   ;;  %v5698_v9 = vpop.f32.mrf.mxu1  ;;  %v2273_v62 = vadd.f32 %v6884_v13, %v2155_v12  ;;  %v2110_v59 = vsel %vm8139_vm5, %v2107_v6, %v2109_v34  ;;  %vm8143_vm13 = vmmov %vm8140_vm10  ;;  %v2271_v28 = vadd.f32 %v6899_v45, %v2153_v55  ;;  %v8147_v13 = vld [vmem:[#allocation26_spill] sm:$0xff] }
 0x164   : > { %2827 = vst.msk [vmem:[#allocation3 + $0x8] sm:$0xf] %vm8140_vm10, %v5331_v44  ;;  %v2413_v32 = vsel %vm8142_vm11, %v2410_v0, %v2412_v63  ;;  %v2418_v10 = vrot.slane %v5682_v16, 1  ;;  %v5332_v58 = vpack.c.bf16 %v5698_v9, %v5698_v9  ;;  %vm8145_vm10 = vnez %v8144_v21 }
 0x165   : > { %2483 = vst.msk [vmem:[#allocation2 + $0x28] sm:$0xff] %vm8141_vm7, %v2467_v26  ;;  %v2453_v37 = vsel %vm8096_vm6, %v2413_v32, 0.0  ;;  %v2353_v17 = vpop.f32.mrf.mxu0  ;;  %v2141_v30 = vsel %vm8145_vm10, %v2106_v4, 0.0  ;;  %vm8146_vm7 = vmmov %vm8142_vm11  ;;  %v2668_v23 = vpop.f32.mrf.mxu1  ;;  %v8148_v60 = vrot.slane %v8147_v13, 7  ;;  %v2272_v1 = vadd.f32 %v6925_v8, %v2154_v27 }
 0x166   : > { %2825 = vst.msk [vmem:[#allocation3] sm:$0xf] %vm8143_vm13, %v5329_v36  ;;  %v2469_v31 = vadd.f32 %v2453_v37, %v2270_v2  ;;  %v2419_v7 = vsel %vm8146_vm7, %v2416_v33, %v2418_v10  ;;  %v2414_v0 = vrot.slane %v2353_v17, 1  ;;  %vm8149_vm11 = vmmov %vm8139_vm5  ;;  %v5330_v19 = vpack.c.bf16 %v2668_v23, %v2668_v23 }
 0x167   : > { %v2111_v18 = vsel %vm8149_vm11, %v2109_v34, %v8148_v60  ;;  %v2472_v47 = vadd.f32 %v2419_v7, %v2273_v62  ;;  %vm8150_vm5 = vmmov %vm8143_vm13  ;;  %v5685_v11 = vpop.f32.mrf.mxu0  ;;  %vm2909_vm13 = vcmask 130048   ;;  %vm8152_vm6 = vnez %v8151_v3  ;;  %v5701_v55 = vpop.f32.mrf.mxu1 }
 0x168   : > { %2828 = vst.msk [vmem:[#allocation3 + $0xc] sm:$0xf] %vm8150_vm5, %v5332_v58  ;;  %v2143_v51 = vsel %vm8152_vm6, %v2110_v59, 0.0  ;;  %vm8153_vm7 = vcmask 31744   ;;  %vm8154_vm15 = vcmask 1046528   ;;  %vm8156_vm12 = vmmov %vm8149_vm11  ;;  %v5335_v8 = vpack.c.bf16 %v5701_v55, %v5701_v55  ;;  %v6003_v55 = vld [vmem:[%s7930_s4 + $0x10] sm:$0xff]  }
 0x169   : > { %2485 = vst.msk [vmem:[#allocation2 + $0x38] sm:$0xff] %vm8153_vm7, %v2469_v31  ;;  %v2415_v44 = vsel %vm8154_vm15, %v2412_v63, %v2414_v0  ;;  %vm8155_vm14 = vmmov %vm8154_vm15  ;;  %v2108_v52 = vsel %vm8156_vm12, %v2105_v56, %v2107_v6  ;;  %v2366_v39 = vpop.f32.mrf.mxu0  ;;  %v2156_v34 = vadd.f32 %v2104_v53, %v6920_v25  ;;  %v2424_v4 = vrot.slane %v5685_v11, 1  ;;  %v2681_v36 = vpop.f32.mrf.mxu1  ;;  %v7073_v11 = vld [vmem:[%s7930_s4 + $0x28] sm:$0xff]  }
 0x16a   : > { %v2417_v45 = vsel %vm8155_vm14, %v2414_v0, %v2416_v33  ;;  %vm8157_vm11 = vmmov %vm8153_vm7  ;;  %v2470_v26 = vadd.f32 %v2415_v44, %v2271_v28  ;;  %2826 = vst.msk [vmem:[#allocation3 + $0x4] sm:$0xf] %vm8150_vm5, %v5330_v19  ;;  %v2420_v63 = vrot.slane %v2366_v39, 1  ;;  %v2159_v33 = vadd.f32 %v2143_v51, %v6952_v61  ;;  %v7068_v19 = vld [vmem:[%s7930_s4 + $0x20] sm:$0xff]  }
 0x16b   : > { %2488 = vst.msk [vmem:[#allocation2 + $0x50] sm:$0xff] %vm8157_vm11, %v2472_v47  ;;  %v2455_v20 = vsel %vm8103_vm0, %v2417_v45, 0.0  ;;  %v2157_v56 = vadd.f32 %v2141_v30, %v6955_v50  ;;  %v2160_v6 = vadd.f32 %v2111_v18, %v6962_v57  ;;  %vm8158_vm12 = vmmov %vm8153_vm7  ;;  %v5333_v16 = vpack.c.bf16 %v2681_v36, %v2681_v36  ;;  %v5686_v2 = vpop.f32.mrf.mxu0  ;;  %v5702_v61 = vpop.f32.mrf.mxu1 }
 0x16c   : > { %v2471_v12 = vadd.f32 %v2455_v20, %v2272_v1  ;;  %2486 = vst.msk [vmem:[#allocation2 + $0x40] sm:$0xff] %vm8158_vm12, %v2470_v26  ;;  %vm8159_vm14 = vmmov %vm8150_vm5  ;;  %v2274_v27 = vadd.f32 %v6913_v24, %v2156_v34  ;;  %v2158_v25 = vadd.f32 %v2108_v52, %v6973_v29  ;;  %v2426_v32 = vrot.slane %v5686_v2, 1  ;;  %v8176_v52 = vld [vmem:[#allocation20_spill] sm:$0xff] }
 0x16d   : > { %2831 = vst.msk [vmem:[#allocation3 + $0x18] sm:$0xf] %vm8159_vm14, %v5335_v8  ;;  %vm8160_vm15 = vmmov %vm8153_vm7  ;;  %vm8161_vm7 = vcmask 1046528   ;;  %v2277_v50 = vadd.f32 %v6935_v43, %v2159_v33  ;;  %v2278_v57 = vadd.f32 %v6964_v46, %v2160_v6  ;;  %v5336_v59 = vpack.c.bf16 %v5702_v61, %v5702_v61  ;;  %v2369_v37 = vpop.f32.mrf.mxu0  ;;  %v2684_v30 = vpop.f32.mrf.mxu1 }
 0x16e   : > { %2487 = vst.msk [vmem:[#allocation2 + $0x48] sm:$0xff] %vm8160_vm15, %v2471_v12  ;;  %v2421_v53 = vsel %vm8161_vm7, %v2418_v10, %v2420_v63  ;;  %vm8163_vm11 = vmmov %vm8150_vm5  ;;  %v8165_v58 = vrot.slane %v6892_v5, 1  ;;  %v2422_v17 = vrot.slane %v2369_v37, 1  ;;  %v2275_v43 = vadd.f32 %v6943_v35, %v2157_v56 }
 0x16f   : > { %v2457_v62 = vsel %vm8112_vm1, %v2421_v53, 0.0  ;;  %2829 = vst.msk [vmem:[#allocation3 + $0x10] sm:$0xf] %vm8163_vm11, %v5333_v16  ;;  %vm8164_vm5 = vmmov %vm8161_vm7  ;;  %v5334_v7 = vpack.c.bf16 %v2684_v30, %v2684_v30  ;;  %v2276_v0 = vadd.f32 %v6977_v48, %v2158_v25  ;;  %v5705_v13 = vpop.f32.mrf.mxu1  ;;  %v7063_v48 = vld [vmem:[#allocation3 + $0x8] sm:$0xff]  }
 0x170   : > { %v2473_v24 = vadd.f32 %v2457_v62, %v2274_v27  ;;  %v2427_v29 = vsel %vm8164_vm5, %v2424_v4, %v2426_v32  ;;  %vm8166_vm12 = vmmov %vm8164_vm5  ;;  %v5339_v47 = vpack.c.bf16 %v5705_v13, %v5705_v13 }
 0x171   : > { %v2445_v10 = vsel %vm8166_vm12, %v2426_v32, %v8165_v58  ;;  %v2476_v31 = vadd.f32 %v2427_v29, %v2277_v50  ;;  %vm8167_vm14 = vmmov %vm8163_vm11  ;;  %v7057_v60 = vld [vmem:[#allocation3] sm:$0xff]   ;;  %v2697_v51 = vpop.f32.mrf.mxu1  ;;  %v5981_v29 = vld [vmem:[#allocation3 + $0x8] sm:$0xff]  }
 0x172   : > { %v2461_v46 = vsel %vm6602_vm2, %v2445_v10, 0.0  ;;  %2832 = vst.msk [vmem:[#allocation3 + $0x1c] sm:$0xf] %vm8167_vm14, %v5336_v59  ;;  %vm8168_vm7 = vmmov %vm8164_vm5  ;;  %5717 = vmatprep.mubr.msk.bf16.mxu0 %vm2909_vm13, %v7057_v60  ;;  %5735 = vmatprep.mubr.msk.bf16.mxu1 %vm2909_vm13, %v7057_v60  ;;  %v5337_v44 = vpack.c.bf16 %v2697_v51, %v2697_v51  ;;  %v5992_v10 = vld [vmem:[%s7930_s4 + $0x30] sm:$0xff]  }
 0x173   : > { %2489 = vst.msk [vmem:[#allocation2 + $0x58] sm:$0xff] %vm8160_vm15, %v2473_v24  ;;  %v2477_v23 = vadd.f32 %v2461_v46, %v2278_v57  ;;  %v2423_v5 = vsel %vm8168_vm7, %v2420_v63, %v2422_v17  ;;  %vm8169_vm11 = vmmov %vm8164_vm5  ;;  %5718 = vmatmul.mubr.msk.bf16.vlgmr.msra.gmra.mxu0 %vm2909_vm13, %v7063_v48  ;;  %5736 = vmatmul.mubr.msk.bf16.vlgmr.msra.gmra.mxu1 %vm2909_vm13, %v7063_v48  ;;  %v5706_v45 = vpop.f32.mrf.mxu1 }
 0x174   : > { %v2425_v28 = vsel %vm8169_vm11, %v2422_v17, %v2424_v4  ;;  %vm8170_vm5 = vmmov %vm8160_vm15  ;;  %v2474_v18 = vadd.f32 %v2423_v5, %v2275_v43  ;;  %5752 = vmatpush3.bf16.msra.mxu0 %v6003_v55  ;;  %5770 = vmatpush3.bf16.msra.mxu1 %v8176_v52  ;;  %v5340_v20 = vpack.c.bf16 %v5706_v45, %v5706_v45  ;;  %v5994_v17 = vld [vmem:[%s7930_s4 + $0x38] sm:$0xff]  }
 0x175   : > { %2492 = vst.msk [vmem:[#allocation2 + $0x70] sm:$0xff] %vm8170_vm5, %v2476_v31  ;;  %v2459_v35 = vsel %vm6606_vm4, %v2425_v28, 0.0  ;;  %vm8171_vm12 = vmmov %vm8167_vm14  ;;  %5787 = vmatprep.subr.bf16.mxu0 %v7068_v19  ;;  %5805 = vmatprep.subr.bf16.mxu1 %v7073_v11  ;;  %v2700_v26 = vpop.f32.mrf.mxu1 }
 0x176   : > { %2830 = vst.msk [vmem:[#allocation3 + $0x14] sm:$0xf] %vm8171_vm12, %v5334_v7  ;;  %vm8172_vm14 = vmmov %vm8170_vm5  ;;  %v2475_v1 = vadd.f32 %v2459_v35, %v2276_v0  ;;  %v5338_v8 = vpack.c.bf16 %v2700_v26, %v2700_v26 }
 0x177   : > { %2493 = vst.msk [vmem:[#allocation2 + $0x78] sm:$0xff] %vm8172_vm14, %v2477_v23  ;;  %vm8173_vm15 = vmmov %vm8170_vm5  ;;  %v5709_v39 = vpop.f32.mrf.mxu1  ;;  %v5995_v23 = vld [vmem:[%s7930_s4 + $0x40] sm:$0xff]  }
 0x178   : > { %2490 = vst.msk [vmem:[#allocation2 + $0x60] sm:$0xff] %vm8173_vm15, %v2474_v18  ;;  %vm8174_vm7 = vmmov %vm8171_vm12  ;;  %v5343_v12 = vpack.c.bf16 %v5709_v39, %v5709_v39 }
 0x179   : > { %2835 = vst.msk [vmem:[#allocation3 + $0x28] sm:$0xf] %vm8174_vm7, %v5339_v47  ;;  %vm8175_vm11 = vmmov %vm8170_vm5  ;;  %v5976_v4 = vld [vmem:[#allocation3 + $0x18] sm:$0xff]   ;;  %v2713_v63 = vpop.f32.mrf.mxu1 }
 0x17a   : > { %2491 = vst.msk [vmem:[#allocation2 + $0x68] sm:$0xff] %vm8175_vm11, %v2475_v1  ;;  %vm8177_vm5 = vmmov %vm8174_vm7  ;;  %v5341_v36 = vpack.c.bf16 %v2713_v63, %v2713_v63  ;;  %v5985_v30 = vld [vmem:[#allocation3 + $0x18] sm:$0xff]  }
 0x17b   : > { %2833 = vst.msk [vmem:[#allocation3 + $0x20] sm:$0xf] %vm8177_vm5, %v5337_v44  ;;  %vm8178_vm12 = vmmov %vm8177_vm5  ;;  %v5710_v33 = vpop.f32.mrf.mxu1  ;;  %v5996_v28 = vld [vmem:[#allocation3 + $0x18] sm:$0xff]  }
 0x17c   : > { %2836 = vst.msk [vmem:[#allocation3 + $0x2c] sm:$0xf] %vm8178_vm12, %v5340_v20  ;;  %vm8179_vm14 = vmmov %vm8177_vm5  ;;  %v5344_v56 = vpack.c.bf16 %v5710_v33, %v5710_v33 }
 0x17d   : > { %v5975_v34 = vld [vmem:[#allocation3 + $0x10] sm:$0xff]   ;;  %2834 = vst.msk [vmem:[#allocation3 + $0x24] sm:$0xf] %vm8179_vm14, %v5338_v8  ;;  %vm8180_vm15 = vmmov %vm8177_vm5  ;;  %v2716_v6 = vpop.f32.mrf.mxu1 }
 0x17e   : > { %5721 = vmatprep.mubr.msk.bf16.mxu0 %vm2909_vm13, %v5975_v34  ;;  %5739 = vmatprep.mubr.msk.bf16.mxu1 %vm2909_vm13, %v5975_v34  ;;  %2839 = vst.msk [vmem:[#allocation3 + $0x38] sm:$0xf] %vm8180_vm15, %v5343_v12  ;;  %vm8181_vm7 = vmmov %vm8177_vm5  ;;  %v5342_v16 = vpack.c.bf16 %v2716_v6, %v2716_v6  ;;  %v5984_v58 = vld [vmem:[#allocation3 + $0x10] sm:$0xff]  }
 0x17f   : > { %5722 = vmatmul.mubr.msk.bf16.gmra.mxu0 %vm2909_vm13, %v5976_v4  ;;  %5740 = vmatmul.mubr.msk.bf16.gmra.mxu1 %vm2909_vm13, %v5976_v4  ;;  %2837 = vst.msk [vmem:[#allocation3 + $0x30] sm:$0xf] %vm8181_vm7, %v5341_v36  ;;  %vm8182_vm11 = vmmov %vm8177_vm5  ;;  %v5713_v27 = vpop.f32.mrf.mxu1  ;;  %v5993_v5 = vld [vmem:[#allocation3 + $0x10] sm:$0xff]  }
 0x180   : > { %2840 = vst.msk [vmem:[#allocation3 + $0x3c] sm:$0xf] %vm8182_vm11, %v5344_v56  ;;  %v5347_v53 = vpack.c.bf16 %v5713_v27, %v5713_v27  ;;  %vm8183_vm12 = vmmov %vm8177_vm5  ;;  %vm8187_vm11 = vcmask 1040384  }
 0x181   : > { %2838 = vst.msk [vmem:[#allocation3 + $0x34] sm:$0xf] %vm8177_vm5, %v5342_v16  ;;  %v2729_v32 = vpop.f32.mrf.mxu1  ;;  %vm8184_vm14 = vmmov %vm8177_vm5 }
 0x182   : > { %2843 = vst.msk [vmem:[#allocation3 + $0x48] sm:$0xf] %vm8183_vm12, %v5347_v53  ;;  %v5345_v61 = vpack.c.bf16 %v2729_v32, %v2729_v32  ;;  %vm8185_vm15 = vmmov %vm8177_vm5 }
 0x183   : > { %v5978_v25 = vld [vmem:[#allocation3 + $0x28] sm:$0xff]   ;;  %v5714_v50 = vpop.f32.mrf.mxu1  ;;  %vm8186_vm7 = vmmov %vm8177_vm5 }
 0x184   : > { %v5977_v2 = vld [vmem:[#allocation3 + $0x20] sm:$0xff]   ;;  %2841 = vst.msk [vmem:[#allocation3 + $0x40] sm:$0xf] %vm8184_vm14, %v5345_v61  ;;  %v5348_v57 = vpack.c.bf16 %v5714_v50, %v5714_v50  ;;  %v5987_v46 = vld [vmem:[#allocation3 + $0x28] sm:$0xff]   ;;  %vm8189_vm5 = vmmov %vm8187_vm11 }
 0x185   : > { %5725 = vmatprep.mubr.msk.bf16.mxu0 %vm2909_vm13, %v5977_v2  ;;  %5743 = vmatprep.mubr.msk.bf16.mxu1 %vm2909_vm13, %v5977_v2  ;;  %v2732_v62 = vpop.f32.mrf.mxu1  ;;  %v5986_v43 = vld [vmem:[#allocation3 + $0x20] sm:$0xff]   ;;  %vm8191_vm12 = vmmov %vm8189_vm5 }
 0x186   : > { %2844 = vst.msk [vmem:[#allocation3 + $0x4c] sm:$0xf] %vm8185_vm15, %v5348_v57  ;;  %v5346_v59 = vpack.c.bf16 %v2732_v62, %v2732_v62  ;;  %v5997_v13 = vld [vmem:[#allocation3 + $0x20] sm:$0xff]   ;;  %vm8194_vm15 = vmmov %vm8189_vm5 }
 0x187   : > { %5726 = vmatmul.mubr.msk.bf16.gmra.mxu0 %vm2909_vm13, %v5978_v25  ;;  %5744 = vmatmul.mubr.msk.bf16.gmra.mxu1 %vm2909_vm13, %v5978_v25  ;;  %v5980_v24 = vld [vmem:[#allocation3 + $0x38] sm:$0xff]  }
 0x188   : > { %v5979_v37 = vld [vmem:[#allocation3 + $0x30] sm:$0xff]   ;;  %2842 = vst.msk [vmem:[#allocation3 + $0x44] sm:$0xf] %vm8186_vm7, %v5346_v59  ;;  %v5989_v7 = vld [vmem:[#allocation3 + $0x38] sm:$0xff]   ;;  %v8192_v59 = vld [vmem:[#allocation6_spill] sm:$0xff] }
 0x189   : > { %5729 = vmatprep.mubr.msk.bf16.mxu0 %vm2909_vm13, %v5979_v37  ;;  %5747 = vmatprep.mubr.msk.bf16.mxu1 %vm2909_vm13, %v5979_v37  ;;  %v5988_v31 = vld [vmem:[#allocation3 + $0x30] sm:$0xff]   ;;  %v6000_v18 = vld [vmem:[#allocation3 + $0x38] sm:$0xff]   ;;  %vm8193_vm14 = vnez %v8192_v59  ;;  %vm8195_vm7 = vmmov %vm8189_vm5 }
 0x18a   : > { %v5999_v35 = vld [vmem:[#allocation3 + $0x30] sm:$0xff]  }
 0x18f   : > { %5730 = vmatmul.mubr.msk.bf16.gmra.mxu0 %vm2909_vm13, %v5980_v24  ;;  %5748 = vmatmul.mubr.msk.bf16.gmra.mxu1 %vm2909_vm13, %v5980_v24  ;;  %v5990_v0 = vld [vmem:[#allocation3 + $0x40] sm:$0xff]  }
 0x190   : > { %5753 = vmatprep.mubr.msk.bf16.mxu0 %vm2909_vm13, %v7057_v60  ;;  %5771 = vmatprep.mubr.msk.bf16.mxu1 %vm2909_vm13, %v5981_v29  ;;  %v5998_v60 = vld [vmem:[#allocation3 + $0x28] sm:$0xff]   ;;  %v6001_v47 = vld [vmem:[#allocation3 + $0x40] sm:$0xff]  }
 0x197   : > { %5754 = vmatmul.mubr.msk.bf16.vlgmr.msra.gmra.mxu0 %vm2909_vm13, %v7063_v48  ;;  %5772 = vmatmul.mubr.msk.bf16.vlgmr.msra.gmra.mxu1 %vm2909_vm13, %v5984_v58  ;;  %v6002_v48 = vld [vmem:[#allocation3 + $0x48] sm:$0xff]  }
 0x198   : > { %5788 = vmatpush3.bf16.msra.mxu0 %v7068_v19  ;;  %5757 = vmatprep.mubr.msk.bf16.mxu0 %vm2909_vm13, %v5975_v34 }
 0x199   : > { %5775 = vmatprep.mubr.msk.bf16.mxu1 %vm2909_vm13, %v5985_v30  ;;  %5806 = vmatpush3.bf16.msra.mxu1 %v7073_v11 }
 0x19a   : > { %5823 = vmatprep.subr.bf16.mxu0 %v5992_v10  ;;  %5841 = vmatprep.subr.bf16.mxu1 %v5994_v17 }
 0x19f   : > { %5758 = vmatmul.mubr.msk.bf16.gmra.mxu0 %vm2909_vm13, %v5976_v4  ;;  %5776 = vmatmul.mubr.msk.bf16.gmra.mxu1 %vm2909_vm13, %v5986_v43 }
 0x1a0   : > { %5761 = vmatprep.mubr.msk.bf16.mxu0 %vm2909_vm13, %v5977_v2  ;;  %5779 = vmatprep.mubr.msk.bf16.mxu1 %vm2909_vm13, %v5987_v46 }
 0x1a7   : > { %5762 = vmatmul.mubr.msk.bf16.gmra.mxu0 %vm2909_vm13, %v5978_v25  ;;  %5780 = vmatmul.mubr.msk.bf16.gmra.mxu1 %vm2909_vm13, %v5988_v31 }
 0x1a8   : > { %5765 = vmatprep.mubr.msk.bf16.mxu0 %vm2909_vm13, %v5979_v37  ;;  %5783 = vmatprep.mubr.msk.bf16.mxu1 %vm2909_vm13, %v5989_v7 }
 0x1af   : > { %5766 = vmatmul.mubr.msk.bf16.gmra.mxu0 %vm2909_vm13, %v5980_v24  ;;  %5784 = vmatmul.mubr.msk.bf16.gmra.mxu1 %vm2909_vm13, %v5990_v0 }
 0x1b0   : > { %5789 = vmatprep.mubr.msk.bf16.mxu0 %vm2909_vm13, %v5981_v29  ;;  %5807 = vmatprep.mubr.msk.bf16.mxu1 %vm2909_vm13, %v5981_v29 }
 0x1b7   : > { %5790 = vmatmul.mubr.msk.bf16.vlgmr.msra.gmra.mxu0 %vm2909_vm13, %v5984_v58  ;;  %5808 = vmatmul.mubr.msk.bf16.vlgmr.msra.gmra.mxu1 %vm2909_vm13, %v5984_v58 }
 0x1b8   : > { %5824 = vmatpush3.bf16.msra.mxu0 %v5992_v10  ;;  %5793 = vmatprep.mubr.msk.bf16.mxu0 %vm2909_vm13, %v5985_v30 }
 0x1b9   : > { %5811 = vmatprep.mubr.msk.bf16.mxu1 %vm2909_vm13, %v5985_v30  ;;  %5842 = vmatpush3.bf16.msra.mxu1 %v5994_v17 }
 0x1ba   : > { %5859 = vmatprep.subr.bf16.mxu0 %v5995_v23 }
 0x1bf   : > { %5794 = vmatmul.mubr.msk.bf16.gmra.mxu0 %vm2909_vm13, %v5986_v43  ;;  %5812 = vmatmul.mubr.msk.bf16.gmra.mxu1 %vm2909_vm13, %v5986_v43 }
 0x1c0   : > { %5797 = vmatprep.mubr.msk.bf16.mxu0 %vm2909_vm13, %v5987_v46  ;;  %5815 = vmatprep.mubr.msk.bf16.mxu1 %vm2909_vm13, %v5987_v46 }
 0x1c7   : > { %5798 = vmatmul.mubr.msk.bf16.gmra.mxu0 %vm2909_vm13, %v5988_v31  ;;  %5816 = vmatmul.mubr.msk.bf16.gmra.mxu1 %vm2909_vm13, %v5988_v31 }
 0x1c8   : > { %5801 = vmatprep.mubr.msk.bf16.mxu0 %vm2909_vm13, %v5989_v7  ;;  %5819 = vmatprep.mubr.msk.bf16.mxu1 %vm2909_vm13, %v5989_v7 }
 0x1cf   : > { %5802 = vmatmul.mubr.msk.bf16.gmra.mxu0 %vm2909_vm13, %v5990_v0  ;;  %5820 = vmatmul.mubr.msk.bf16.gmra.mxu1 %vm2909_vm13, %v5990_v0  ;;  %v8197_v0 = vld [vmem:[#allocation7_spill] sm:$0xff] }
 0x1d0   : > { %5825 = vmatprep.mubr.msk.bf16.mxu0 %vm2909_vm13, %v5993_v5  ;;  %5843 = vmatprep.mubr.msk.bf16.mxu1 %vm2909_vm13, %v5993_v5 }
 0x1d7   : > { %5826 = vmatmul.mubr.msk.bf16.vlgmr.msra.gmra.mxu0 %vm2909_vm13, %v5996_v28  ;;  %5844 = vmatmul.mubr.msk.bf16.vlgmr.msra.gmra.mxu1 %vm2909_vm13, %v5996_v28 }
 0x1d8   : > { %5860 = vmatpush3.bf16.msra.mxu0 %v5995_v23  ;;  %5829 = vmatprep.mubr.msk.bf16.mxu0 %vm2909_vm13, %v5997_v13 }
 0x1d9   : > { %5847 = vmatprep.mubr.msk.bf16.mxu1 %vm2909_vm13, %v5997_v13 }
 0x1df   : > { %5830 = vmatmul.mubr.msk.bf16.gmra.mxu0 %vm2909_vm13, %v5998_v60  ;;  %5848 = vmatmul.mubr.msk.bf16.gmra.mxu1 %vm2909_vm13, %v5998_v60 }
 0x1e0   : > { %5833 = vmatprep.mubr.msk.bf16.mxu0 %vm2909_vm13, %v5999_v35  ;;  %5851 = vmatprep.mubr.msk.bf16.mxu1 %vm2909_vm13, %v5999_v35 }
 0x1e7   : > { %5834 = vmatmul.mubr.msk.bf16.gmra.mxu0 %vm2909_vm13, %v6000_v18  ;;  %5852 = vmatmul.mubr.msk.bf16.gmra.mxu1 %vm2909_vm13, %v6000_v18 }
 0x1e8   : > { %5837 = vmatprep.mubr.msk.bf16.mxu0 %vm2909_vm13, %v6001_v47  ;;  %5855 = vmatprep.mubr.msk.bf16.mxu1 %vm2909_vm13, %v6001_v47 }
 0x1ef   : > { %5838 = vmatmul.mubr.msk.bf16.gmra.mxu0 %vm2909_vm13, %v6002_v48  ;;  %5856 = vmatmul.mubr.msk.bf16.gmra.mxu1 %vm2909_vm13, %v6002_v48 }
 0x1f0   : > { %5861 = vmatprep.mubr.msk.bf16.mxu0 %vm2909_vm13, %v5993_v5 }
 0x1f7   : > { %5862 = vmatmul.mubr.msk.bf16.vlgmr.msra.gmra.mxu0 %vm2909_vm13, %v5996_v28 }
 0x1f8   : > { %5865 = vmatprep.mubr.msk.bf16.mxu0 %vm2909_vm13, %v5997_v13 }
 0x1ff   : > { %5866 = vmatmul.mubr.msk.bf16.gmra.mxu0 %vm2909_vm13, %v5998_v60 }
 0x200   : > { %5869 = vmatprep.mubr.msk.bf16.mxu0 %vm2909_vm13, %v5999_v35 }
 0x207   : > { %5870 = vmatmul.mubr.msk.bf16.gmra.mxu0 %vm2909_vm13, %v6000_v18 }
 0x208   : > { %5873 = vmatprep.mubr.msk.bf16.mxu0 %vm2909_vm13, %v6001_v47 }
 0x20f   : > { %5874 = vmatmul.mubr.msk.bf16.gmra.mxu0 %vm2909_vm13, %v6002_v48  ;;  %vm8188_vm13 = vmmov %vm8187_vm11 }
 0x233   : > { %v5719_v19 = vpop.f32.mrf.mxu0  ;;  %v5737_v11 = vpop.f32.mrf.mxu1 }
 0x234   : > { %v3068_v55 = vrot.slane %v5719_v19, 7 }
 0x235   : > { %v7185_v1 = vpop.f32.mrf.mxu0  ;;  %v7187_v51 = vpop.f32.mrf.mxu1 }
 0x236   : > { %v3065_v8 = vrot.slane %v7185_v1, 7 }
 0x237   : > { %v5720_v44 = vpop.f32.mrf.mxu0  ;;  %v5738_v45 = vpop.f32.mrf.mxu1 }
 0x238   : > { %v3070_v52 = vrot.slane %v5720_v44, 7 }
 0x239   : > { %v2971_v20 = vpop.f32.mrf.mxu0  ;;  %v3222_v26 = vpop.f32.mrf.mxu1 }
 0x23a   : > { %v3071_v39 = vsel %vm8187_vm11, %v3068_v55, %v3070_v52  ;;  %v3066_v34 = vrot.slane %v2971_v20, 7  ;;  %vm8196_vm11 = vmmov %vm8189_vm5 }
 0x23b   : > { %v7191_v12 = vadd.f32 %v5738_v45, %v3071_v39 }
 0x23c   : > { %v3069_v36 = vsel %vm8188_vm13, %v3066_v34, %v3068_v55  ;;  %v3067_v33 = vsel %vm8189_vm5, %v3065_v8, %v3066_v34  ;;  %vm8198_vm13 = vnez %v8197_v0 }
 0x23d   : > { %v3146_v6 = vsel %vm8099_vm3, %v3069_v36, 0.0  ;;  %v7199_v16 = vadd.f32 %v3222_v26, %v3067_v33 }
 0x23e   : > { %v7201_v53 = vadd.f32 %v5737_v11, %v3146_v6 }
 0x23f   : > { %v5723_v4 = vpop.f32.mrf.mxu0  ;;  %v5741_v63 = vpop.f32.mrf.mxu1 }
 0x240   : > { %v3076_v50 = vrot.slane %v5723_v4, 7 }
 0x241   : > { %v2984_v2 = vpop.f32.mrf.mxu0  ;;  %v3235_v27 = vpop.f32.mrf.mxu1 }
 0x242   : > { %v3072_v25 = vrot.slane %v2984_v2, 7 }
 0x243   : > { %v5724_v32 = vpop.f32.mrf.mxu0  ;;  %v5742_v61 = vpop.f32.mrf.mxu1 }
 0x244   : > { %v3073_v57 = vsel %vm8191_vm12, %v3070_v52, %v3072_v25  ;;  %v3078_v62 = vrot.slane %v5724_v32, 7  ;;  %vm8199_vm12 = vmmov %vm8189_vm5 }
 0x245   : > { %v3148_v37 = vsel %vm8193_vm14, %v3073_v57, 0.0  ;;  %v2987_v24 = vpop.f32.mrf.mxu0  ;;  %v3238_v29 = vpop.f32.mrf.mxu1 }
 0x246   : > { %v7206_v58 = vadd.f32 %v3235_v27, %v3148_v37  ;;  %v3079_v10 = vsel %vm8194_vm15, %v3076_v50, %v3078_v62  ;;  %v3074_v17 = vrot.slane %v2987_v24, 7  ;;  %vm8200_vm15 = vmmov %vm8189_vm5 }
 0x247   : > { %v7209_v30 = vadd.f32 %v5742_v61, %v3079_v10  ;;  %v5727_v43 = vpop.f32.mrf.mxu0  ;;  %v5745_v46 = vpop.f32.mrf.mxu1 }
 0x248   : > { %v3077_v31 = vsel %vm8195_vm7, %v3074_v17, %v3076_v50  ;;  %v3075_v7 = vsel %vm8196_vm11, %v3072_v25, %v3074_v17  ;;  %v3084_v48 = vrot.slane %v5727_v43, 7  ;;  %vm8201_vm7 = vmmov %vm8189_vm5 }
 0x249   : > { %v3150_v23 = vsel %vm8198_vm13, %v3077_v31, 0.0  ;;  %v7215_v5 = vadd.f32 %v3238_v29, %v3075_v7  ;;  %v3000_v28 = vpop.f32.mrf.mxu0  ;;  %v3251_v13 = vpop.f32.mrf.mxu1  ;;  %vm8202_vm11 = vmmov %vm8189_vm5  ;;  %v8204_v7 = vld [vmem:[#allocation5_spill] sm:$0xff] }
 0x24a   : > { %v3080_v60 = vrot.slane %v3000_v28, 7  ;;  %v7217_v35 = vadd.f32 %v5741_v63, %v3150_v23 }
 0x24b   : > { %v5728_v18 = vpop.f32.mrf.mxu0  ;;  %v5746_v47 = vpop.f32.mrf.mxu1 }
 0x24c   : > { %v3081_v19 = vsel %vm8189_vm5, %v3078_v62, %v3080_v60  ;;  %v3086_v11 = vrot.slane %v5728_v18, 7 }
 0x24d   : > { %v3152_v44 = vsel %vm6423_vm9, %v3081_v19, 0.0  ;;  %v3003_v45 = vpop.f32.mrf.mxu0  ;;  %v3254_v55 = vpop.f32.mrf.mxu1 }
 0x24e   : > { %v7222_v52 = vadd.f32 %v3251_v13, %v3152_v44  ;;  %v3087_v20 = vsel %vm8199_vm12, %v3084_v48, %v3086_v11  ;;  %v3082_v26 = vrot.slane %v3003_v45, 7  ;;  %vm8203_vm12 = vmmov %vm8189_vm5 }
 0x24f   : > { %v7225_v39 = vadd.f32 %v5746_v47, %v3087_v20  ;;  %v5731_v34 = vpop.f32.mrf.mxu0  ;;  %v5749_v4 = vpop.f32.mrf.mxu1 }
 0x250   : > { %v3085_v63 = vsel %vm8200_vm15, %v3082_v26, %v3084_v48  ;;  %v3083_v36 = vsel %vm8201_vm7, %v3080_v60, %v3082_v26  ;;  %v3092_v57 = vrot.slane %v5731_v34, 7  ;;  %vm8205_vm15 = vnez %v8204_v7  ;;  %vm8206_vm7 = vmmov %vm8189_vm5 }
 0x251   : > { %v3154_v33 = vsel %vm6419_vm8, %v3085_v63, 0.0  ;;  %v7231_v6 = vadd.f32 %v3254_v55, %v3083_v36  ;;  %v3016_v2 = vpop.f32.mrf.mxu0  ;;  %v3267_v27 = vpop.f32.mrf.mxu1 }
 0x252   : > { %v3088_v25 = vrot.slane %v3016_v2, 7  ;;  %v7233_v32 = vadd.f32 %v5745_v46, %v3154_v33 }
 0x253   : > { %v5732_v61 = vpop.f32.mrf.mxu0  ;;  %v5750_v50 = vpop.f32.mrf.mxu1 }
 0x254   : > { %v3089_v62 = vsel %vm8202_vm11, %v3086_v11, %v3088_v25  ;;  %v3048_v37 = vrot.slane %v5732_v61, 7  ;;  %vm8207_vm11 = vmmov %vm8189_vm5 }
 0x255   : > { %v3156_v24 = vsel %vm8145_vm10, %v3089_v62, 0.0  ;;  %v3019_v29 = vpop.f32.mrf.mxu0  ;;  %v3270_v10 = vpop.f32.mrf.mxu1 }
 0x256   : > { %v7238_v17 = vadd.f32 %v3267_v27, %v3156_v24  ;;  %v3111_v43 = vsel %vm8189_vm5, %v3048_v37, %v3065_v8  ;;  %v3094_v46 = vsel %vm8203_vm12, %v3092_v57, %v3048_v37  ;;  %v3090_v31 = vrot.slane %v3019_v29, 7 }
 0x257   : > { %v3144_v23 = vsel %vm8205_vm15, %v3111_v43, 0.0  ;;  %v7246_v28 = vadd.f32 %v5750_v50, %v3094_v46  ;;  %v5755_v13 = vpop.f32.mrf.mxu0  ;;  %v7248_v60 = vpop.f32.mrf.mxu1  ;;  %vm8208_vm5 = vcmask 1046528  }
 0x258   : > { %v3093_v18 = vsel %vm8206_vm7, %v3090_v31, %v3092_v57  ;;  %v3091_v47 = vsel %vm8207_vm11, %v3088_v25, %v3090_v31  ;;  %v3282_v11 = vadd.f32 %v7187_v51, %v3144_v23  ;;  %v3440_v20 = vrot.slane %v5755_v13, 1  ;;  %vm8209_vm12 = vmmov %vm8208_vm5 }
 0x259   : > { %v3158_v1 = vsel %vm8152_vm6, %v3093_v18, 0.0  ;;  %v7254_v48 = vadd.f32 %v3270_v10, %v3091_v47  ;;  %v7256_v8 = vpop.f32.mrf.mxu0  ;;  %v7258_v19 = vpop.f32.mrf.mxu1  ;;  %vm8210_vm7 = vmmov %vm8208_vm5  ;;  %vm8211_vm11 = vnez %v8038_v15 }
 0x25a   : > { %v7261_v44 = vadd.f32 %v5749_v4, %v3158_v1  ;;  %v7990_v36 = vrot.slane %v7256_v8, 1 }
 0x25b   : > { %v5756_v45 = vpop.f32.mrf.mxu0  ;;  %v7263_v55 = vpop.f32.mrf.mxu1 }
 0x25c   : > { %v3442_v26 = vrot.slane %v5756_v45, 1 }
 0x25d   : > { %v3344_v34 = vpop.f32.mrf.mxu0  ;;  %v7265_v63 = vpop.f32.mrf.mxu1 }
 0x25e   : > { %v3443_v33 = vsel %vm8208_vm5, %v3440_v20, %v3442_v26  ;;  %v3438_v2 = vrot.slane %v3344_v34, 1 }
 0x25f   : > { %v5759_v27 = vpop.f32.mrf.mxu0  ;;  %v7269_v25 = vpop.f32.mrf.mxu1  ;;  %v7272_v51 = vadd.f32 %v3443_v33, %v7201_v53 }
 0x260   : > { %v3439_v4 = vsel %vm8209_vm12, %v7990_v36, %v3438_v2  ;;  %v3441_v61 = vsel %vm8210_vm7, %v3438_v2, %v3440_v20  ;;  %v3448_v43 = vrot.slane %v5759_v27, 1  ;;  %vm8212_vm12 = vnez %v8044_v22  ;;  %vm8213_vm7 = vmmov %vm8208_vm5 }
 0x261   : > { %v3357_v50 = vpop.f32.mrf.mxu0  ;;  %v7278_v57 = vpop.f32.mrf.mxu1  ;;  %v7280_v62 = vadd.f32 %v3439_v4, %v3282_v11  ;;  %v3519_v37 = vsel %vm8211_vm11, %v3441_v61, 0.0  ;;  %vm8214_vm11 = vmmov %vm8208_vm5 }
 0x262   : > { %v3444_v24 = vrot.slane %v3357_v50, 1  ;;  %v7285_v29 = vadd.f32 %v3519_v37, %v7199_v16 }
 0x263   : > { %v5760_v53 = vpop.f32.mrf.mxu0  ;;  %v7287_v10 = vpop.f32.mrf.mxu1 }
 0x264   : > { %v3445_v46 = vsel %vm8208_vm5, %v3442_v26, %v3444_v24  ;;  %v3450_v31 = vrot.slane %v5760_v53, 1 }
 0x265   : > { %v3360_v23 = vpop.f32.mrf.mxu0  ;;  %v7290_v13 = vpop.f32.mrf.mxu1  ;;  %v3521_v18 = vsel %vm8212_vm12, %v3445_v46, 0.0 }
 0x266   : > { %v3451_v47 = vsel %vm8213_vm7, %v3448_v43, %v3450_v31  ;;  %v3446_v1 = vrot.slane %v3360_v23, 1  ;;  %v3537_v11 = vadd.f32 %v3521_v18, %v7191_v12  ;;  %vm8215_vm7 = vnez %v8047_v38 }
 0x267   : > { %v5763_v16 = vpop.f32.mrf.mxu0  ;;  %v7296_v45 = vpop.f32.mrf.mxu1  ;;  %v7299_v20 = vadd.f32 %v3451_v47, %v7217_v35 }
 0x268   : > { %v3447_v26 = vsel %vm8214_vm11, %v3444_v24, %v3446_v1  ;;  %v3449_v34 = vsel %vm8208_vm5, %v3446_v1, %v3448_v43  ;;  %v3456_v37 = vrot.slane %v5763_v16, 1  ;;  %vm8216_vm11 = vmmov %vm8208_vm5  ;;  %vm8217_vm5 = vnez %v8050_v41 }
 0x269   : > { %v3373_v33 = vpop.f32.mrf.mxu0  ;;  %v7303_v2 = vpop.f32.mrf.mxu1  ;;  %v7306_v27 = vadd.f32 %v3447_v26, %v7206_v58  ;;  %v3523_v4 = vsel %vm8215_vm7, %v3449_v34, 0.0  ;;  %vm8218_vm12 = vmmov %vm8216_vm11 }
 0x26a   : > { %v3452_v12 = vrot.slane %v3373_v33, 1  ;;  %v7311_v61 = vadd.f32 %v3523_v4, %v7215_v5  ;;  %vm8219_vm7 = vmmov %vm8216_vm11 }
 0x26b   : > { %v5764_v50 = vpop.f32.mrf.mxu0  ;;  %v7313_v35 = vpop.f32.mrf.mxu1 }
 0x26c   : > { %v3453_v24 = vsel %vm8216_vm11, %v3450_v31, %v3452_v12  ;;  %v3458_v53 = vrot.slane %v5764_v50, 1  ;;  %vm8220_vm11 = vmmov %vm8219_vm7  ;;  %v3775_v49 = vrot.slane %v7313_v35, 7 }
 0x26d   : > { %v3376_v43 = vpop.f32.mrf.mxu0  ;;  %v7316_v46 = vpop.f32.mrf.mxu1  ;;  %v3525_v58 = vsel %vm8217_vm5, %v3453_v24, 0.0 }
 0x26e   : > { %v3459_v23 = vsel %vm8218_vm12, %v3456_v37, %v3458_v53  ;;  %v3454_v18 = vrot.slane %v3376_v43, 1  ;;  %v3541_v47 = vadd.f32 %v3525_v58, %v7209_v30  ;;  %vm8221_vm12 = vmmov %vm8219_vm7 }
 0x26f   : > { %v5767_v5 = vpop.f32.mrf.mxu0  ;;  %v7322_v1 = vpop.f32.mrf.mxu1  ;;  %v7325_v26 = vadd.f32 %v3459_v23, %v7233_v32 }
 0x270   : > { %v3455_v31 = vsel %vm8219_vm7, %v3452_v12, %v3454_v18  ;;  %v3457_v16 = vsel %vm8220_vm11, %v3454_v18, %v3456_v37  ;;  %v3464_v58 = vrot.slane %v5767_v5, 1  ;;  %vm8223_vm11 = vmmov %vm8219_vm7  ;;  %v7996_v5 = vrot.slane %v7248_v60, 7 }
 0x271   : > { %v3389_v34 = vpop.f32.mrf.mxu0  ;;  %v7329_v33 = vpop.f32.mrf.mxu1  ;;  %v7332_v4 = vadd.f32 %v3455_v31, %v7222_v52  ;;  %v3527_v50 = vsel %vm8103_vm0, %v3457_v16, 0.0 }
 0x272   : > { %v3460_v30 = vrot.slane %v3389_v34, 1  ;;  %v7337_v24 = vadd.f32 %v3527_v50, %v7231_v6  ;;  %v8222_v6 = vrot.slane %v7256_v8, 1 }
 0x273   : > { %v5768_v43 = vpop.f32.mrf.mxu0  ;;  %v7339_v32 = vpop.f32.mrf.mxu1 }
 0x274   : > { %v3461_v12 = vsel %vm8221_vm12, %v3458_v53, %v3460_v30  ;;  %v3466_v37 = vrot.slane %v5768_v43, 1  ;;  %vm8224_vm12 = vmmov %vm8219_vm7 }
 0x275   : > { %v3392_v18 = vpop.f32.mrf.mxu0  ;;  %v7343_v36 = vpop.f32.mrf.mxu1  ;;  %v3529_v52 = vsel %vm8112_vm1, %v3461_v12, 0.0  ;;  %vm8225_vm1 = vmmov %vm8219_vm7 }
 0x276   : > { %v3467_v31 = vsel %vm8219_vm7, %v3464_v58, %v3466_v37  ;;  %v3485_v16 = vsel %vm8223_vm11, %v3466_v37, %v8222_v6  ;;  %v3462_v34 = vrot.slane %v3392_v18, 1  ;;  %v3545_v43 = vadd.f32 %v3529_v52, %v7225_v39 }
 0x277   : > { %v7352_v50 = vpop.f32.mrf.mxu0  ;;  %v7354_v53 = vpop.f32.mrf.mxu1  ;;  %v3548_v23 = vadd.f32 %v3467_v31, %v7261_v44  ;;  %v8226_v37 = vrot.slane %v7263_v55, 7  ;;  %vm8227_vm7 = vcmask 1040384   ;;  %v3533_v39 = vsel %vm6602_vm2, %v3485_v16, 0.0 }
 0x278   : > { %v3463_v9 = vsel %vm8224_vm12, %v3460_v30, %v3462_v34  ;;  %v3465_v12 = vsel %vm8225_vm1, %v3462_v34, %v3464_v58  ;;  %v7375_v58 = vadd.f32 %v3533_v39, %v7246_v28  ;;  %v8001_v34 = vrot.slane %v7287_v10, 7  ;;  %vm8231_vm1 = vmmov %vm8227_vm7 }
 0x279   : > { %v7360_v54 = vpop.f32.mrf.mxu0  ;;  %v7362_v8 = vpop.f32.mrf.mxu1  ;;  %v3760_v18 = vsel %vm8227_vm7, %v7996_v5, %v8226_v37  ;;  %v3546_v6 = vadd.f32 %v3463_v9, %v7238_v17  ;;  %v3531_v31 = vsel %vm6606_vm4, %v3465_v12, 0.0  ;;  %vm8236_vm11 = vmmov %vm8231_vm1 }
 0x27a   : > { %v3820_v41 = vadd.f32 %v3760_v18, %v3537_v11  ;;  %v7387_v17 = vadd.f32 %v3531_v31, %v7254_v48  ;;  %v3765_v11 = vrot.slane %v7269_v25, 7  ;;  %v8003_v48 = vrot.slane %v7322_v1, 7  ;;  %vm8238_vm12 = vmmov %vm8231_vm1 }
 0x27b   : > { %v5792_v44 = vpop.f32.mrf.mxu0  ;;  %v7372_v30 = vpop.f32.mrf.mxu1  ;;  %v8002_v25 = vrot.slane %v7343_v36, 7  ;;  %vm8241_vm7 = vmmov %vm8231_vm1 }
 0x27c   : > { %v7377_v52 = vadd.f32 %v5792_v44, %v3820_v41  ;;  %v3768_v12 = vsel %vm8231_vm1, %v3765_v11, %v8001_v34 }
 0x27d   : > { %v7382_v37 = vpop.f32.mrf.mxu0  ;;  %v7384_v9 = vpop.f32.mrf.mxu1  ;;  %v3824_v39 = vadd.f32 %v3768_v12, %v3541_v47 }
 0x27e   : > { %8228 = vst [vmem:[#allocation24_spill] sm:$0xff] %v7377_v52  ;;  %v3773_v52 = vrot.slane %v7296_v45, 7 }
 0x27f   : > { %v7390_v16 = vpop.f32.mrf.mxu0  ;;  %v7392_v28 = vpop.f32.mrf.mxu1 }
 0x280   : > { %8229 = vst [vmem:[#allocation21_spill] sm:$0xff] %v7390_v16  ;;  %v3776_v34 = vsel %vm8238_vm12, %v3773_v52, %v3775_v49  ;;  %vm8249_vm12 = vmmov %vm8231_vm1 }
 0x281   : > { %v7394_v41 = vpop.f32.mrf.mxu0  ;;  %v7396_v18 = vpop.f32.mrf.mxu1 }
 0x282   : > { %8230 = vst [vmem:[#allocation23_spill] sm:$0xff] %v7394_v41 }
 0x283   : > { %v5796_v44 = vpop.f32.mrf.mxu0  ;;  %v7401_v5 = vpop.f32.mrf.mxu1 }
 0x284   : > { %v7405_v31 = vadd.f32 %v5796_v44, %v3824_v39  ;;  %v3782_v39 = vsel %vm8236_vm11, %v8002_v25, %v8003_v48  ;;  %vm8247_vm11 = vmmov %vm8231_vm1 }
 0x285   : > { %v7408_v40 = vpop.f32.mrf.mxu0  ;;  %v7410_v38 = vpop.f32.mrf.mxu1 }
 0x286   : > { %8232 = vst [vmem:[#allocation25_spill] sm:$0xff] %v7405_v31  ;;  %8233 = vst [vmem:[#allocation22_spill] sm:$0xff] %v7408_v40  ;;  %v3828_v31 = vadd.f32 %v3776_v34, %v3545_v43 }
 0x287   : > { %v7413_v41 = vpop.f32.mrf.mxu0  ;;  %v7415_v47 = vpop.f32.mrf.mxu1 }
 0x288   : > { %8234 = vst [vmem:[#allocation9_spill] sm:$0xff] %v7413_v41  ;;  %8235 = vst [vmem:[#allocation8_spill] sm:$0xff] %v7415_v47  ;;  %v3815_v41 = vsel %vm8152_vm6, %v3782_v39, 0.0  ;;  %v8240_v47 = vrot.slane %v7329_v33, 7 }
 0x289   : > { %v7423_v44 = vpop.f32.mrf.mxu0  ;;  %v7425_v35 = vpop.f32.mrf.mxu1  ;;  %vm8254_vm6 = vmmov %vm8231_vm1 }
 0x28a   : > { %8237 = vst [vmem:[#allocation26_spill] sm:$0xff] %v7423_v44  ;;  %v3778_v16 = vsel %vm8241_vm7, %v3775_v49, %v8240_v47  ;;  %v3831_v44 = vadd.f32 %v3815_v41, %v3548_v23  ;;  %v3755_v49 = vrot.slane %v7265_v63, 7  ;;  %v3763_v23 = vrot.slane %v7290_v13, 7  ;;  %vm8251_vm7 = vmmov %vm8231_vm1 }
 0x28b   : > { %v5800_v45 = vpop.f32.mrf.mxu0  ;;  %v7428_v40 = vpop.f32.mrf.mxu1  ;;  %v3813_v43 = vsel %vm8145_vm10, %v3778_v16, 0.0  ;;  %v3737_v16 = vrot.slane %v7339_v32, 7  ;;  %v3754_v13 = vrot.slane %v7258_v19, 7  ;;  %v8250_v32 = vrot.slane %v7263_v55, 7 }
 0x28c   : > { %v7432_v12 = vadd.f32 %v5800_v45, %v3828_v31  ;;  %v3829_v39 = vadd.f32 %v3813_v43, %v3546_v6  ;;  %v3771_v6 = vrot.slane %v7316_v46, 7 }
 0x28d   : > { %v7437_v25 = vpop.f32.mrf.mxu0  ;;  %v7439_v48 = vpop.f32.mrf.mxu1 }
 0x28e   : > { %8239 = vst [vmem:[#allocation20_spill] sm:$0xff] %v7432_v12 }
 0x28f   : > { %v5803_v22 = vpop.f32.mrf.mxu0  ;;  %v7441_v15 = vpop.f32.mrf.mxu1 }
 0x290   : > { %v7445_v34 = vadd.f32 %v5803_v22, %v3831_v44  ;;  %v3761_v22 = vrot.slane %v7278_v57, 7  ;;  %v8245_v44 = vrot.slane %v7248_v60, 7  ;;  %v3800_v60 = vsel %vm8249_vm12, %v3737_v16, %v3754_v13  ;;  %vm8256_vm12 = vmmov %vm8231_vm1 }
 0x291   : > { %v3924_v31 = vpop.f32.mrf.mxu0  ;;  %v7447_v45 = vpop.f32.mrf.mxu1  ;;  %v3801_v55 = vsel %vm8205_vm15, %v3800_v60, 0.0 }
 0x292   : > { %8242 = vst [vmem:[#allocation6_spill] sm:$0xff] %v7445_v34  ;;  %v7449_v3 = vadd.f32 %v3924_v31, %v3829_v39  ;;  %v3758_v63 = vsel %vm8231_vm1, %v3755_v49, %v8245_v44  ;;  %v3769_v31 = vrot.slane %v7303_v2, 7  ;;  %v3762_v44 = vsel %vm8251_vm7, %v8250_v32, %v3761_v22  ;;  %vm8258_vm7 = vmmov %vm8231_vm1 }
 0x293   : > { %v7452_v47 = vpop.f32.mrf.mxu0  ;;  %v7454_v12 = vpop.f32.mrf.mxu1  ;;  %v3803_v57 = vsel %vm8099_vm3, %v3758_v63, 0.0  ;;  %v8253_v63 = vrot.slane %v7287_v10, 7  ;;  %v3805_v32 = vsel %vm8193_vm14, %v3762_v44, 0.0  ;;  %v4078_v10 = vrot.slane %v7384_v9, 1 }
 0x294   : > { %8243 = vst [vmem:[#allocation7_spill] sm:$0xff] %v7449_v3  ;;  %v3766_v3 = vsel %vm8247_vm11, %v3763_v23, %v3765_v11  ;;  %v3819_v11 = vadd.f32 %v3803_v57, %v7272_v51  ;;  %vm8252_vm11 = vmmov %vm8231_vm1  ;;  %v4080_v44 = vrot.slane %v7354_v53, 1  ;;  %v8260_v53 = vrot.slane %v7329_v33, 7 }
 0x295   : > { %v7457_v41 = vpop.f32.mrf.mxu0  ;;  %v7459_v21 = vpop.f32.mrf.mxu1  ;;  %v3807_v2 = vsel %vm8198_vm13, %v3766_v3, 0.0  ;;  %v3756_v34 = vsel %vm8252_vm11, %v3754_v13, %v3755_v49  ;;  %v4082_v49 = vrot.slane %v7372_v30, 1  ;;  %v3817_v30 = vadd.f32 %v3801_v55, %v7280_v62 }
 0x296   : > { %8244 = vst [vmem:[#allocation5_spill] sm:$0xff] %v7457_v41  ;;  %v3823_v13 = vadd.f32 %v3807_v2, %v7299_v20  ;;  %vm8261_vm11 = vcmask 1046528   ;;  %v4090_v55 = vrot.slane %v7401_v5, 1  ;;  %v4092_v33 = vrot.slane %v7425_v35, 1 }
 0x297   : > { %v7467_v43 = vpop.f32.mrf.mxu0  ;;  %v7469_v39 = vpop.f32.mrf.mxu1  ;;  %v4088_v5 = vrot.slane %v7392_v28, 1 }
 0x298   : > { %8246 = vst [vmem:[#allocation27_spill] sm:$0xff] %v7469_v39  ;;  %v3774_v39 = vsel %vm8231_vm1, %v3771_v6, %v3773_v52  ;;  %v3818_v52 = vadd.f32 %v3756_v34, %v7285_v29  ;;  %v3821_v29 = vadd.f32 %v3805_v32, %v7306_v27  ;;  %v4084_v34 = vrot.slane %v7396_v18, 1 }
 0x299   : > { %v7474_v41 = vpop.f32.mrf.mxu0  ;;  %v7478_v46 = vpop.f32.mrf.mxu1  ;;  %v3811_v3 = vsel %vm6419_vm8, %v3774_v39, 0.0  ;;  %v3772_v27 = vsel %vm8256_vm12, %v3769_v31, %v3771_v6  ;;  %v8257_v18 = vrot.slane %v7322_v1, 7  ;;  %v4086_v6 = vrot.slane %v7410_v38, 1 }
 0x29a   : > { %8248 = vst [vmem:[#allocation28_spill] sm:$0xff] %v7478_v46  ;;  %v3770_v46 = vsel %vm8254_vm6, %v8253_v63, %v3769_v31  ;;  %vm8255_vm6 = vmmov %vm8231_vm1  ;;  %v3827_v9 = vadd.f32 %v3811_v3, %v7325_v26  ;;  %v4083_v26 = vsel %vm8261_vm11, %v4080_v44, %v4082_v49  ;;  %v3941_v1 = vadd.f32 %v7352_v50, %v3819_v11 }
 0x29b   : > { %v7485_v19 = vpop.f32.mrf.mxu0  ;;  %v7503_v51 = vpop.f32.mrf.mxu1  ;;  %v3764_v57 = vsel %vm8255_vm6, %v3761_v22, %v3763_v23  ;;  %v3809_v39 = vsel %vm6423_vm9, %v3770_v46, 0.0  ;;  %v8012_v22 = vrot.slane %v7362_v8, 1  ;;  %v8259_v46 = vrot.slane %v7343_v36, 7  ;;  %vm8262_vm6 = vmmov %vm8261_vm11 }
 0x29c   : > { %v3822_v60 = vadd.f32 %v3764_v57, %v7311_v61  ;;  %v3825_v20 = vadd.f32 %v3809_v39, %v7332_v4  ;;  %v3783_v61 = vsel %vm8258_vm7, %v8257_v18, %v3737_v16  ;;  %v4081_v4 = vsel %vm8262_vm6, %v4078_v10, %v4080_v44  ;;  %vm8263_vm12 = vmmov %vm8262_vm6 }
 0x29d   : > { %v7494_v56 = vpop.f32.mrf.mxu0  ;;  %v3780_v62 = vsel %vm8231_vm1, %v8260_v53, %v8259_v46  ;;  %v7532_v2 = vpop.f32.mrf.mxu1  ;;  %v4085_v36 = vsel %vm8263_vm12, %v4082_v49, %v4084_v34  ;;  %v3826_v16 = vadd.f32 %v3772_v27, %v7337_v24  ;;  %v3939_v32 = vadd.f32 %v7360_v54, %v3817_v30  ;;  %vm8264_vm7 = vmmov %vm8262_vm6  ;;  %v8265_v24 = vld [vmem:[#allocation11_spill] sm:$0xff] }
 0x29e   : > { %v4079_v3 = vsel %vm8264_vm7, %v8012_v22, %v4078_v10  ;;  %v3832_v38 = vadd.f32 %v3783_v61, %v7375_v58  ;;  %v7552_v39 = vadd.f32 %v4083_v26, %v3941_v1  ;;  %v3940_v50 = vadd.f32 %v7382_v37, %v3818_v52  ;;  %vm8267_vm11 = vmmov %vm8262_vm6  ;;  %v8268_v10 = vld [vmem:[#allocation13_spill] sm:$0xff]  ;;  %v8272_v61 = vld [vmem:[#allocation23_spill] sm:$0xff] }
 0x29f   : > { %v7509_v63 = vpop.f32.mrf.mxu0  ;;  %v7556_v35 = vadd.f32 %v3780_v62, %v7387_v17  ;;  %vm8266_vm1 = vnez %v8265_v24  ;;  %v7560_v11 = vpop.f32.mrf.mxu1  ;;  %v4091_v49 = vsel %vm8267_vm11, %v4088_v5, %v4090_v55  ;;  %v4089_v28 = vsel %vm8262_vm6, %v4086_v6, %v4088_v5  ;;  %v8270_v17 = vld [vmem:[#allocation21_spill] sm:$0xff]  ;;  %vm8271_vm7 = vmmov %vm8262_vm6  ;;  %v8274_v62 = vld [vmem:[#allocation8_spill] sm:$0xff] }
 0x2a0   : > { %v4127_v54 = vsel %vm8266_vm1, %v4081_v4, 0.0  ;;  %v4094_v58 = vrot.slane %v7439_v48, 1  ;;  %vm8269_vm12 = vnez %v8268_v10  ;;  %v7569_v37 = vadd.f32 %v4079_v3, %v3939_v32  ;;  %vm8273_vm11 = vmmov %vm8262_vm6  ;;  %v8276_v3 = vld [vmem:[#allocation24_spill] sm:$0xff]  ;;  %v8284_v22 = vld [vmem:[#allocation25_spill] sm:$0xff] }
 0x2a1   : > { %v7520_v23 = vpop.f32.mrf.mxu0  ;;  %v4129_v44 = vsel %vm8269_vm12, %v4085_v36, 0.0  ;;  %v3945_v52 = vadd.f32 %v8270_v17, %v3823_v13  ;;  %v4093_v27 = vsel %vm8271_vm7, %v4090_v55, %v4092_v33  ;;  %v4098_v18 = vrot.slane %v7428_v40, 1  ;;  %v8275_v36 = vld [vmem:[#allocation22_spill] sm:$0xff]  ;;  %v7583_v13 = vpop.f32.mrf.mxu1  ;;  %v8279_v17 = vld [vmem:[#allocation9_spill] sm:$0xff]  ;;  %vm8283_vm12 = vmmov %vm8271_vm7 }
 0x2a2   : > { %v3943_v46 = vadd.f32 %v8272_v61, %v3821_v29  ;;  %v4087_v53 = vsel %vm8273_vm11, %v4084_v34, %v4086_v6  ;;  %v4096_v26 = vrot.slane %v8274_v62, 1  ;;  %v4143_v48 = vadd.f32 %v4127_v54, %v3940_v50  ;;  %v8277_v55 = vld [vmem:[#allocation14_spill] sm:$0xff]  ;;  %v8280_v50 = vld [vmem:[#allocation15_spill] sm:$0xff]  ;;  %vm8282_vm11 = vmmov %vm8271_vm7 }
 0x2a3   : > { %v7538_v31 = vpop.f32.mrf.mxu0  ;;  %v7579_v1 = vadd.f32 %v4091_v49, %v3945_v52  ;;  %v3944_v32 = vadd.f32 %v8275_v36, %v3822_v60  ;;  %v4145_v5 = vadd.f32 %v4129_v44, %v8276_v3  ;;  %vm8278_vm6 = vnez %v8277_v55  ;;  %v8281_v52 = vld [vmem:[#allocation26_spill] sm:$0xff]  ;;  %v8307_v7 = vld [vmem:[#allocation27_spill] sm:$0xff] }
 0x2a4   : > { %v4131_v40 = vsel %vm8278_vm6, %v4089_v28, 0.0  ;;  %v3949_v29 = vadd.f32 %v8279_v17, %v3827_v9  ;;  %v4097_v34 = vsel %vm8271_vm7, %v4094_v58, %v4096_v26  ;;  %v4363_v6 = vrot.slane %v7494_v56, 7 }
 0x2a5   : > { %v7550_v57 = vpop.f32.mrf.mxu0  ;;  %v4133_v54 = vsel %vm8217_vm5, %v4093_v27, 0.0  ;;  %v3947_v60 = vadd.f32 %v8281_v52, %v3825_v20  ;;  %v4099_v44 = vsel %vm8282_vm11, %v4096_v26, %v4098_v18  ;;  %v4100_v61 = vrot.slane %v7447_v45, 1  ;;  %v7605_v52 = vpop.f32.mrf.mxu1  ;;  %v8285_v26 = vld [vmem:[#allocation16_spill] sm:$0xff]  ;;  %vm8288_vm11 = vmmov %vm8271_vm7 }
 0x2a6   : > { %v4146_v62 = vadd.f32 %v4087_v53, %v3943_v46  ;;  %v4095_v28 = vsel %vm8283_vm12, %v4092_v33, %v4094_v58  ;;  %v4106_v9 = vrot.slane %v7454_v12, 1  ;;  %v4365_v36 = vrot.slane %v7467_v43, 7 }
 0x2a7   : > { %v7567_v30 = vpop.f32.mrf.mxu0  ;;  %v4147_v3 = vadd.f32 %v4131_v40, %v3944_v32  ;;  %v3948_v27 = vadd.f32 %v7437_v25, %v3826_v16  ;;  %v4367_v17 = vrot.slane %v7485_v19, 7  ;;  %v4149_v20 = vadd.f32 %v4133_v54, %v8284_v22 }
 0x2a8   : > { %v4135_v45 = vsel %vm8103_vm0, %v4097_v34, 0.0  ;;  %v7609_v46 = vadd.f32 %v4099_v44, %v3949_v29  ;;  %v4104_v12 = vrot.slane %v7441_v15, 1  ;;  %vm8286_vm12 = vcmask 1040384   ;;  %vm8291_vm0 = vmmov %vm8288_vm11 }
 0x2a9   : > { %v7577_v4 = vpop.f32.mrf.mxu0  ;;  %v4366_v43 = vsel %vm8286_vm12, %v4363_v6, %v4365_v36  ;;  %v4369_v33 = vrot.slane %v7520_v23, 7  ;;  %v4101_v25 = vsel %vm8271_vm7, %v4098_v18, %v4100_v61  ;;  %v4102_v19 = vrot.slane %v7459_v21, 1  ;;  %vm8290_vm7 = vmmov %vm8286_vm12 }
 0x2aa   : > { %v4362_v22 = vrot.slane %v7474_v41, 7  ;;  %v7619_v16 = vadd.f32 %v4095_v28, %v3947_v60  ;;  %v3954_v53 = vadd.f32 %v7452_v47, %v3832_v38  ;;  %v8287_v32 = vrot.slane %v7362_v8, 1  ;;  %v4503_v47 = vpop.f32.mrf.mxu1  ;;  %v8293_v60 = vld [vmem:[#allocation17_spill] sm:$0xff]  ;;  %vm8296_vm6 = vmmov %vm8291_vm0 }
 0x2ab   : > { %v7592_v49 = vpop.f32.mrf.mxu0  ;;  %v4371_v40 = vrot.slane %v7550_v57, 7  ;;  %v7626_v29 = vadd.f32 %v4135_v45, %v3948_v27  ;;  %v4368_v18 = vsel %vm8286_vm12, %v4365_v36, %v4367_v17  ;;  %v4411_v21 = vsel %vm8099_vm3, %v4366_v43, 0.0  ;;  %vm8295_vm12 = vmmov %vm8291_vm0 }
 0x2ac   : > { %v4125_v15 = vsel %vm8288_vm11, %v4106_v9, %v8287_v32  ;;  %v4364_v41 = vsel %vm8290_vm7, %v4362_v22, %v4363_v6  ;;  %v4375_v54 = vrot.slane %v7538_v31, 7  ;;  %v4107_v8 = vsel %vm8291_vm0, %v4104_v12, %v4106_v9  ;;  %vm8292_vm11 = vmmov %vm8290_vm7 }
 0x2ad   : > { %v7600_v56 = vpop.f32.mrf.mxu0  ;;  %v4373_v38 = vrot.slane %v7509_v63, 7  ;;  %v4370_v57 = vsel %vm8292_vm11, %v4367_v17, %v4369_v33  ;;  %vm8294_vm5 = vnez %v8293_v60  ;;  %v4103_v36 = vsel %vm8295_vm12, %v4100_v61, %v4102_v19  ;;  %vm8298_vm3 = vmmov %vm8290_vm7 }
 0x2ae   : > { %v4137_v44 = vsel %vm8294_vm5, %v4101_v25, 0.0  ;;  %v4105_v27 = vsel %vm8296_vm6, %v4102_v19, %v4104_v12  ;;  %v4141_v31 = vsel %vm6602_vm2, %v4125_v15, 0.0  ;;  %v4428_v43 = vadd.f32 %v4368_v18, %v4145_v5  ;;  %vm8299_vm0 = vmmov %vm8298_vm3  ;;  %v7655_v19 = vpop.f32.mrf.mxu1  ;;  %v8302_v15 = vld [vmem:[#allocation6_spill] sm:$0xff] }
 0x2af   : > { %v7614_v58 = vpop.f32.mrf.mxu0  ;;  %v4427_v9 = vadd.f32 %v4411_v21, %v7552_v39  ;;  %v4426_v63 = vadd.f32 %v4364_v41, %v4143_v48  ;;  %v4374_v17 = vsel %vm8298_vm3, %v4371_v40, %v4373_v38  ;;  %v4413_v25 = vsel %vm8193_vm14, %v4370_v57, 0.0  ;;  %vm8300_vm7 = vmmov %vm8299_vm0  ;;  %v8303_v48 = vld [vmem:[#allocation5_spill] sm:$0xff] }
 0x2b0   : > { %v4376_v61 = vsel %vm8299_vm0, %v4373_v38, %v4375_v54  ;;  %v4372_v12 = vsel %vm8300_vm7, %v4369_v33, %v4371_v40  ;;  %vm8301_vm6 = vmmov %vm8299_vm0  ;;  %v7661_v39 = vadd.f32 %v4107_v8, %v8302_v15  ;;  %v3952_v18 = vadd.f32 %v8303_v48, %v7556_v35  ;;  %v8305_v40 = vld [vmem:[#allocation20_spill] sm:$0xff]  ;;  %v8306_v35 = vld [vmem:[#allocation7_spill] sm:$0xff] }
 0x2b1   : > { %v7628_v23 = vpop.f32.mrf.mxu0  ;;  %v4377_v34 = vrot.slane %v7577_v4, 7  ;;  %v4139_v21 = vsel %vm6606_vm4, %v4105_v27, 0.0  ;;  %v4415_v33 = vsel %vm8198_vm13, %v4374_v17, 0.0  ;;  %v4153_v38 = vadd.f32 %v4137_v44, %v8305_v40  ;;  %v4516_v44 = vpop.f32.mrf.mxu1  ;;  %vm8308_vm14 = vmmov %vm8299_vm0 }
 0x2b2   : > { %v7673_v57 = vadd.f32 %v4141_v31, %v3954_v53  ;;  %v4429_v8 = vadd.f32 %v4413_v25, %v4146_v62  ;;  %v4432_v15 = vadd.f32 %v4376_v61, %v4149_v20  ;;  %v7676_v48 = vadd.f32 %v4103_v36, %v8306_v35  ;;  %vm8309_vm13 = vmmov %vm8295_vm12 }
 0x2b3   : > { %v7640_v28 = vpop.f32.mrf.mxu0  ;;  %v7681_v27 = vadd.f32 %v7503_v51, %v4428_v43  ;;  %v4548_v0 = vadd.f32 %v7532_v2, %v4426_v63  ;;  %v7684_v17 = vadd.f32 %v4139_v21, %v3952_v18  ;;  %v4549_v53 = vadd.f32 %v8307_v7, %v4427_v9  ;;  %v5854_v9 = vpop.f32.mrf.mxu1  ;;  %v8311_v21 = vld [vmem:[#allocation28_spill] sm:$0xff]  ;;  %vm8314_vm11 = vmmov %vm8299_vm0 }
 0x2b4   : > { %v8015_v6 = vrot.slane %v7640_v28, 7  ;;  %v4431_v62 = vadd.f32 %v4415_v33, %v7579_v1  ;;  %v4383_v20 = vrot.slane %v7592_v49, 7  ;;  %v4379_v25 = vrot.slane %v7600_v56, 7  ;;  %vm8315_vm3 = vmmov %vm8295_vm12 }
 0x2b5   : > { %v7649_v32 = vpop.f32.mrf.mxu0  ;;  %v4385_v51 = vrot.slane %v7628_v23, 7  ;;  %v7695_v63 = vadd.f32 %v7583_v13, %v4429_v8  ;;  %v7698_v1 = vadd.f32 %v7605_v52, %v4432_v15  ;;  %v4381_v49 = vrot.slane %v7567_v30, 7  ;;  %vm8318_vm7 = vmmov %vm8315_vm3 }
 0x2b6   : > { %v4408_v5 = vsel %vm8301_vm6, %v8015_v6, %v4362_v22  ;;  %v4430_v6 = vadd.f32 %v4372_v12, %v4147_v3  ;;  %v4378_v3 = vsel %vm8308_vm14, %v4375_v54, %v4377_v34  ;;  %v4387_v24 = vrot.slane %v7649_v32, 7  ;;  %vm8322_vm14 = vmmov %vm8315_vm3 }
 0x2b7   : > { %v5863_v41 = vpop.f32.mrf.mxu0  ;;  %v4409_v22 = vsel %vm8205_vm15, %v4408_v5, 0.0  ;;  %v4417_v56 = vsel %vm6423_vm9, %v4378_v3, 0.0  ;;  %vm8310_vm15 = vmmov %vm8299_vm0  ;;  %v4386_v30 = vsel %vm8314_vm11, %v4383_v20, %v4385_v51 }
 0x2b8   : > { %v4425_v36 = vadd.f32 %v4409_v22, %v7569_v37  ;;  %v4688_v43 = vrot.slane %v5863_v41, 1  ;;  %v7700_v54 = vadd.f32 %v4503_v47, %v4430_v6  ;;  %v4384_v13 = vsel %vm8310_vm15, %v4381_v49, %v4383_v20  ;;  %vm8313_vm9 = vmmov %vm8299_vm0  ;;  %v4768_v6 = vld [vmem:[#allocation2 + $0x10] sm:$0xff]  ;;  %v4766_v20 = vld [vmem:[#allocation2] sm:$0xff] }
 0x2b9   : > { %v7678_v4 = vpop.f32.mrf.mxu0  ;;  %v4553_v47 = vadd.f32 %v7560_v11, %v4431_v62  ;;  %v4382_v42 = vsel %vm8313_vm9, %v4379_v25, %v4381_v49  ;;  %v4433_v11 = vadd.f32 %v4417_v56, %v7619_v16  ;;  %v4436_v7 = vadd.f32 %v4384_v13, %v4153_v38  ;;  %v4519_v62 = vpop.f32.mrf.mxu1  ;;  %v4767_v49 = vld [vmem:[#allocation2 + $0x8] sm:$0xff]  ;;  %vm8325_vm15 = vmmov %vm8299_vm0 }
 0x2ba   : > { %v4685_v61 = vrot.slane %v7678_v4, 1  ;;  %v4547_v52 = vadd.f32 %v8311_v21, %v4425_v36  ;;  %vm8326_vm9 = vmmov %vm8315_vm3 }
 0x2bb   : > { %v5864_v31 = vpop.f32.mrf.mxu0  ;;  %v7740_v14 = vadd.f32 %v4516_v44, %v4433_v11  ;;  %vm8327_vm11 = vmmov %vm8315_vm3 }
 0x2bc   : > { %v4690_v2 = vrot.slane %v5864_v31, 1  ;;  %v4419_v31 = vsel %vm6419_vm8, %v4382_v42, 0.0  ;;  %v8323_v42 = vrot.slane %v7640_v28, 7 }
 0x2bd   : > { %v4609_v37 = vpop.f32.mrf.mxu0  ;;  %v4435_v21 = vadd.f32 %v4419_v31, %v7609_v46  ;;  %v8330_v31 = vld [vmem:[#allocation10_spill] sm:$0xff] }
 0x2be   : > { %v4691_v12 = vsel %vm8309_vm13, %v4688_v43, %v4690_v2  ;;  %v4686_v5 = vrot.slane %v4609_v37, 1  ;;  %vm8324_vm13 = vmmov %vm8299_vm0 }
 0x2bf   : > { %v4752_v18 = vadd.f32 %v4691_v12, %v4549_v53  ;;  %v5867_v41 = vpop.f32.mrf.mxu0  ;;  %v4380_v53 = vsel %vm8299_vm0, %v4377_v34, %v4379_v25  ;;  %vm8331_vm0 = vnez %v8330_v31 }
 0x2c0   : > { %v4687_v33 = vsel %vm8295_vm12, %v4685_v61, %v4686_v5  ;;  %v4689_v40 = vsel %vm8315_vm3, %v4686_v5, %v4688_v43  ;;  %v4421_v43 = vsel %vm8145_vm10, %v4386_v30, 0.0  ;;  %v4434_v12 = vadd.f32 %v4380_v53, %v7626_v29  ;;  %v4769_v30 = vld [vmem:[#allocation2 + $0x18] sm:$0xff] }
 0x2c1   : > { %v4784_v22 = vadd.f32 %v4768_v6, %v4752_v18  ;;  %v4735_v8 = vsel %vm8266_vm1, %v4689_v40, 0.0  ;;  %v4750_v15 = vadd.f32 %v4687_v33, %v4547_v52  ;;  %v4622_v35 = vpop.f32.mrf.mxu0  ;;  %vm8317_vm1 = vcmask 31744   ;;  %v7748_v52 = vpop.f32.mrf.mxu1 }
 0x2c2   : > { %v4751_v3 = vadd.f32 %v4735_v8, %v4548_v0  ;;  %v4692_v36 = vrot.slane %v4622_v35, 1  ;;  %v4696_v0 = vrot.slane %v5867_v41, 1  ;;  %v4389_v5 = vrot.slane %v7614_v58, 7  ;;  %vm8319_vm8 = vmmov %vm8317_vm1 }
 0x2c3   : > { %4801 = vst.msk [vmem:[#allocation2 + $0x10] sm:$0xff] %vm8317_vm1, %v4784_v22  ;;  %v4782_v37 = vadd.f32 %v4766_v20, %v4750_v15  ;;  %v5868_v38 = vpop.f32.mrf.mxu0  ;;  %vm8320_vm10 = vnez %v8268_v10  ;;  %vm8321_vm6 = vmmov %vm8317_vm1  ;;  %v7753_v29 = vadd.f32 %v5854_v9, %v4436_v7  ;;  %v4437_v58 = vadd.f32 %v4421_v43, %v7676_v48  ;;  %v7767_v9 = vld [vmem:[%s7931_s5] ss:$0 sm:$0xff]  ;;  %v4772_v48 = vld [vmem:[#allocation2 + $0x30] sm:$0xff]  ;;  %v4532_v35 = vpop.f32.mrf.mxu1 }
 0x2c4   : > { %v4783_v34 = vadd.f32 %v4767_v49, %v4751_v3  ;;  %v4693_v25 = vsel %vm8318_vm7, %v4690_v2, %v4692_v36  ;;  %v4698_v56 = vrot.slane %v5868_v38, 1  ;;  %v4391_v10 = vsel %vm8324_vm13, %v4389_v5, %v8323_v42  ;;  %v7780_v3 = vld [vmem:[%s7932_s6] ss:$0 sm:$0xff]  ;;  %vm8329_vm3 = vmmov %vm8317_vm1  ;;  %v4771_v43 = vld [vmem:[#allocation2 + $0x28] sm:$0xff] }
 0x2c5   : > { %4799 = vst.msk [vmem:[#allocation2] sm:$0xff] %vm8319_vm8, %v4782_v37  ;;  %v4737_v13 = vsel %vm8320_vm10, %v4693_v25, 0.0  ;;  %v4625_v18 = vpop.f32.mrf.mxu0  ;;  %vm8328_vm12 = vnez %v8277_v55  ;;  %v4440_v7 = vadd.f32 %v4391_v10, %v7673_v57  ;;  %v4770_v20 = vld [vmem:[#allocation2 + $0x20] sm:$0xff]  ;;  %v4557_v55 = vadd.f32 %v7655_v19, %v4435_v21  ;;  %vm8332_vm8 = vmmov %vm8324_vm13 }
 0x2c6   : > { %4800 = vst.msk [vmem:[#allocation2 + $0x8] sm:$0xff] %vm8321_vm6, %v4783_v34  ;;  %v4753_v2 = vadd.f32 %v4737_v13, %v7681_v27  ;;  %v4699_v44 = vsel %vm8322_vm14, %v4696_v0, %v4698_v56  ;;  %v4694_v41 = vrot.slane %v4625_v18, 1  ;;  %v4390_v27 = vsel %vm8325_vm15, %v4387_v24, %v4389_v5  ;;  %vm8333_vm10 = vmmov %vm8317_vm1 }
 0x2c7   : > { %v4756_v6 = vadd.f32 %v4699_v44, %v4553_v47  ;;  %v5871_v46 = vpop.f32.mrf.mxu0  ;;  %v7771_v47 = vadd.f32 %v4519_v62, %v4434_v12  ;;  %v4423_v57 = vsel %vm8331_vm0, %v4390_v27, 0.0  ;;  %v4388_v25 = vsel %vm8332_vm8, %v4385_v51, %v4387_v24  ;;  %vm8335_vm14 = vmmov %vm8317_vm1  ;;  %v4773_v44 = vld [vmem:[#allocation2 + $0x38] sm:$0xff] }
 0x2c8   : > { %v4785_v33 = vadd.f32 %v4769_v30, %v4753_v2  ;;  %v4695_v28 = vsel %vm8326_vm9, %v4692_v36, %v4694_v41  ;;  %v4697_v40 = vsel %vm8327_vm11, %v4694_v41, %v4696_v0  ;;  %v4704_v34 = vrot.slane %v5871_v46, 1  ;;  %vm8336_vm13 = vmmov %vm8318_vm7  ;;  %v4776_v30 = vld [vmem:[#allocation2 + $0x50] sm:$0xff]  ;;  %v5858_v46 = vpop.f32.mrf.mxu1 }
 0x2c9   : > { %v4788_v11 = vadd.f32 %v4772_v48, %v4756_v6  ;;  %v4739_v22 = vsel %vm8328_vm12, %v4697_v40, 0.0  ;;  %v4754_v8 = vadd.f32 %v4695_v28, %v7695_v63  ;;  %v4638_v15 = vpop.f32.mrf.mxu0  ;;  %v7786_v63 = vadd.f32 %v4532_v35, %v4437_v58  ;;  %vm8337_vm15 = vmmov %vm8318_vm7 }
 0x2ca   : > { %v4820_v53 = vld [vmem:[#allocation2 + $0x10] sm:$0xff]  ;;  %4802 = vst.msk [vmem:[#allocation2 + $0x18] sm:$0xff] %vm8329_vm3, %v4785_v33  ;;  %v4755_v62 = vadd.f32 %v4739_v22, %v7700_v54  ;;  %v4700_v36 = vrot.slane %v4638_v15, 1  ;;  %vm8334_vm6 = vnez %v8280_v50  ;;  %vm8338_vm9 = vmmov %vm8318_vm7  ;;  %vm8340_vm12 = vnez %v8285_v26 }
 0x2cb   : > { %v4843_v16 = vmul.f32 %v7767_v9, %v4820_v53  ;;  %4805 = vst.msk [vmem:[#allocation2 + $0x30] sm:$0xff] %vm8317_vm1, %v4788_v11  ;;  %v4786_v49 = vadd.f32 %v4770_v20, %v4754_v8  ;;  %v7792_v37 = vpop.f32.mrf.mxu0  ;;  %vm8339_vm11 = vmmov %vm8317_vm1  ;;  %v4562_v11 = vadd.f32 %v5858_v46, %v4440_v7  ;;  %v4774_v53 = vld [vmem:[#allocation2 + $0x40] sm:$0xff] }
 0x2cc   : > { %v4818_v38 = vld [vmem:[#allocation2] sm:$0xff]  ;;  %v4787_v54 = vadd.f32 %v4771_v43, %v4755_v62  ;;  %v4701_v0 = vsel %vm8318_vm7, %v4698_v56, %v4700_v36  ;;  %v4706_v19 = vrot.slane %v7792_v37, 1  ;;  %v4439_v56 = vadd.f32 %v4423_v57, %v7661_v39  ;;  %vm8341_vm3 = vmmov %vm8317_vm1 }
 0x2cd   : > { %v4866_v12 = vadd.f32 %v7780_v3, %v4843_v16  ;;  %v4819_v5 = vld [vmem:[#allocation2 + $0x8] sm:$0xff]  ;;  %v4841_v13 = vmul.f32 %v7767_v9, %v4818_v38  ;;  %4803 = vst.msk [vmem:[#allocation2 + $0x20] sm:$0xff] %vm8333_vm10, %v4786_v49  ;;  %v4741_v18 = vsel %vm8334_vm6, %v4701_v0, 0.0  ;;  %v4641_v21 = vpop.f32.mrf.mxu0  ;;  %v4438_v62 = vadd.f32 %v4388_v25, %v7684_v17  ;;  %vm8342_vm0 = vmmov %vm8317_vm1 }
 0x2ce   : > { %v4842_v23 = vmul.f32 %v7767_v9, %v4819_v5  ;;  %4804 = vst.msk [vmem:[#allocation2 + $0x28] sm:$0xff] %vm8335_vm14, %v4787_v54  ;;  %v4757_v32 = vadd.f32 %v4741_v18, %v7698_v1  ;;  %v4707_v51 = vsel %vm8336_vm13, %v4704_v34, %v4706_v19  ;;  %v4702_v24 = vrot.slane %v4641_v21, 1  ;;  %vm8343_vm1 = vmmov %vm8342_vm0 }
 0x2cf   : > { %v4882_v50 = vmax.f32 %v4866_v12, 0.0  ;;  %v4864_v2 = vadd.f32 %v7780_v3, %v4841_v13  ;;  %v4760_v41 = vadd.f32 %v4707_v51, %v4557_v55  ;;  %v7817_v58 = vpop.f32.mrf.mxu0  ;;  %vm8344_vm7 = vmmov %vm8342_vm0  ;;  %v4561_v38 = vadd.f32 %v7748_v52, %v4439_v56 }
 0x2d0   : > { %v4865_v42 = vadd.f32 %v7780_v3, %v4842_v23  ;;  %v4789_v10 = vadd.f32 %v4773_v44, %v4757_v32  ;;  %v4703_v6 = vsel %vm8337_vm15, %v4700_v36, %v4702_v24  ;;  %v4705_v1 = vsel %vm8338_vm9, %v4702_v24, %v4704_v34  ;;  %vm8345_vm8 = vmmov %vm8342_vm0  ;;  %v4777_v23 = vld [vmem:[#allocation2 + $0x58] sm:$0xff] }
 0x2d1   : > { %4898 = vst.msk [vmem:[%s7809_s16 + $0x10] sm:$0xff] %vm8339_vm11, %v4882_v50  ;;  %v4880_v39 = vmax.f32 %v4864_v2, 0.0  ;;  %v4821_v27 = vld [vmem:[#allocation2 + $0x18] sm:$0xff]  ;;  %v4792_v33 = vadd.f32 %v4776_v30, %v4760_v41  ;;  %v4743_v48 = vsel %vm8340_vm12, %v4705_v1, 0.0  ;;  %v4758_v28 = vadd.f32 %v4703_v6, %v7740_v14  ;;  %v4654_v40 = vpop.f32.mrf.mxu0  ;;  %v4775_v14 = vld [vmem:[#allocation2 + $0x48] sm:$0xff]  ;;  %vm8346_vm10 = vmmov %vm8338_vm9 }
 0x2d2   : > { %v4881_v22 = vmax.f32 %v4865_v42, 0.0  ;;  %v4844_v8 = vmul.f32 %v7767_v9, %v4821_v27  ;;  %v4824_v15 = vld [vmem:[#allocation2 + $0x30] sm:$0xff]  ;;  %4806 = vst.msk [vmem:[#allocation2 + $0x38] sm:$0xff] %vm8341_vm3, %v4789_v10  ;;  %v4759_v35 = vadd.f32 %v4743_v48, %v7771_v47  ;;  %v4708_v7 = vrot.slane %v4654_v40, 1  ;;  %vm8347_vm6 = vmmov %vm8342_vm0 }
 0x2d3   : > { %4896 = vst.msk [vmem:[%s7809_s16] sm:$0xff] %vm8342_vm0, %v4880_v39  ;;  %v4847_v26 = vmul.f32 %v7767_v9, %v4824_v15  ;;  %v4790_v20 = vadd.f32 %v4774_v53, %v4758_v28  ;;  %v5876_v36 = vpop.f32.mrf.mxu0  ;;  %v4712_v47 = vrot.slane %v7817_v58, 1  ;;  %vm8348_vm14 = vmmov %vm8338_vm9  ;;  %v4780_v50 = vld [vmem:[#allocation2 + $0x70] sm:$0xff]  ;;  %v4781_v58 = vld [vmem:[#allocation2 + $0x78] sm:$0xff] }
 0x2d4   : > { %4809 = vst.msk [vmem:[#allocation2 + $0x50] sm:$0xff] %vm8343_vm1, %v4792_v33  ;;  %v4867_v55 = vadd.f32 %v7780_v3, %v4844_v8  ;;  %v4822_v31 = vld [vmem:[#allocation2 + $0x20] sm:$0xff]  ;;  %v4791_v57 = vadd.f32 %v4775_v14, %v4759_v35  ;;  %v4714_v16 = vrot.slane %v5876_v36, 1  ;;  %v4709_v37 = vsel %vm8346_vm10, %v4706_v19, %v4708_v7  ;;  %vm8349_vm13 = vmmov %vm8338_vm9  ;;  %v4535_v19 = vpop.f32.mrf.mxu1  ;;  %v4779_v15 = vld [vmem:[#allocation2 + $0x68] sm:$0xff] }
 0x2d5   : > { %4897 = vst.msk [vmem:[%s7809_s16 + $0x8] sm:$0xff] %vm8344_vm7, %v4881_v22  ;;  %v4870_v17 = vadd.f32 %v7780_v3, %v4847_v26  ;;  %v4823_v43 = vld [vmem:[#allocation2 + $0x28] sm:$0xff]  ;;  %v4845_v49 = vmul.f32 %v7767_v9, %v4822_v31  ;;  %v4657_v54 = vpop.f32.mrf.mxu0  ;;  %v4745_v25 = vsel %vm8294_vm5, %v4709_v37, 0.0  ;;  %vm8350_vm15 = vmmov %vm8342_vm0  ;;  %v4560_v24 = vadd.f32 %v4535_v19, %v4438_v62  ;;  %v4778_v33 = vld [vmem:[#allocation2 + $0x60] sm:$0xff] }
 0x2d6   : > { %4807 = vst.msk [vmem:[#allocation2 + $0x40] sm:$0xff] %vm8345_vm8, %v4790_v20  ;;  %v4883_v34 = vmax.f32 %v4867_v55, 0.0  ;;  %v4846_v0 = vmul.f32 %v7767_v9, %v4823_v43  ;;  %v4715_v12 = vsel %vm8348_vm14, %v4712_v47, %v4714_v16  ;;  %v4761_v18 = vadd.f32 %v4745_v25, %v7753_v29  ;;  %vm8351_vm5 = vmmov %vm8342_vm0 }
 0x2d7   : > { %4808 = vst.msk [vmem:[#allocation2 + $0x48] sm:$0xff] %vm8347_vm6, %v4791_v57  ;;  %v4886_v5 = vmax.f32 %v4870_v17, 0.0  ;;  %v4868_v13 = vadd.f32 %v7780_v3, %v4845_v49  ;;  %v4733_v52 = vsel %vm8349_vm13, %v4714_v16, %v4685_v61  ;;  %v4764_v32 = vadd.f32 %v4715_v12, %v4561_v38  ;;  %vm8353_vm11 = vmmov %vm8342_vm0 }
 0x2d8   : > { %4899 = vst.msk [vmem:[%s7809_s16 + $0x18] sm:$0xff] %vm8350_vm15, %v4883_v34  ;;  %v4869_v21 = vadd.f32 %v7780_v3, %v4846_v0  ;;  %v4749_v60 = vsel %vm6602_vm2, %v4733_v52, 0.0  ;;  %v4710_v51 = vrot.slane %v4657_v54, 1  ;;  %v4793_v4 = vadd.f32 %v4777_v23, %v4761_v18  ;;  %vm8352_vm2 = vmmov %vm8342_vm0 }
 0x2d9   : > { %4902 = vst.msk [vmem:[%s7809_s16 + $0x30] sm:$0xff] %vm8351_vm5, %v4886_v5  ;;  %v4884_v29 = vmax.f32 %v4868_v13, 0.0  ;;  %v4825_v56 = vld [vmem:[#allocation2 + $0x38] sm:$0xff]  ;;  %v4765_v61 = vadd.f32 %v4749_v60, %v4562_v11  ;;  %v4796_v42 = vadd.f32 %v4780_v50, %v4764_v32  ;;  %vm8354_vm12 = vmmov %vm8338_vm9 }
 0x2da   : > { %v4885_v2 = vmax.f32 %v4869_v21, 0.0  ;;  %v4848_v44 = vmul.f32 %v7767_v9, %v4825_v56  ;;  %v4711_v45 = vsel %vm8338_vm9, %v4708_v7, %v4710_v51  ;;  %4810 = vst.msk [vmem:[#allocation2 + $0x58] sm:$0xff] %vm8353_vm11, %v4793_v4  ;;  %v4713_v6 = vsel %vm8354_vm12, %v4710_v51, %v4712_v47  ;;  %vm8355_vm3 = vmmov %vm8342_vm0 }
 0x2db   : > { %v4828_v41 = vld [vmem:[#allocation2 + $0x50] sm:$0xff]  ;;  %4900 = vst.msk [vmem:[%s7809_s16 + $0x20] sm:$0xff] %vm8352_vm2, %v4884_v29  ;;  %v4797_v30 = vadd.f32 %v4781_v58, %v4765_v61  ;;  %v4762_v1 = vadd.f32 %v4711_v45, %v7786_v63  ;;  %v4747_v27 = vsel %vm6606_vm4, %v4713_v6, 0.0  ;;  %vm8356_vm1 = vmmov %vm8342_vm0 }
 0x2dc   : > { %v4851_v10 = vmul.f32 %v7767_v9, %v4828_v41  ;;  %4901 = vst.msk [vmem:[%s7809_s16 + $0x28] sm:$0xff] %vm8355_vm3, %v4885_v2  ;;  %v4871_v46 = vadd.f32 %v7780_v3, %v4848_v44  ;;  %v4763_v63 = vadd.f32 %v4747_v27, %v4560_v24  ;;  %vm8357_vm4 = vmmov %vm8342_vm0 }
 0x2dd   : > { %v4826_v39 = vld [vmem:[#allocation2 + $0x40] sm:$0xff]  ;;  %4813 = vst.msk [vmem:[#allocation2 + $0x70] sm:$0xff] %vm8342_vm0, %v4796_v42  ;;  %v4794_v11 = vadd.f32 %v4778_v33, %v4762_v1  ;;  %vm8358_vm7 = vmmov %vm8342_vm0 }
 0x2de   : > { %v4874_v48 = vadd.f32 %v7780_v3, %v4851_v10  ;;  %v4827_v28 = vld [vmem:[#allocation2 + $0x48] sm:$0xff]  ;;  %v4849_v40 = vmul.f32 %v7767_v9, %v4826_v39  ;;  %4814 = vst.msk [vmem:[#allocation2 + $0x78] sm:$0xff] %vm8356_vm1, %v4797_v30  ;;  %v4887_v22 = vmax.f32 %v4871_v46, 0.0  ;;  %v4795_v53 = vadd.f32 %v4779_v15, %v4763_v63  ;;  %vm8359_vm8 = vmmov %vm8342_vm0 }
 0x2df   : > { %v4850_v8 = vmul.f32 %v7767_v9, %v4827_v28  ;;  %4811 = vst.msk [vmem:[#allocation2 + $0x60] sm:$0xff] %vm8357_vm4, %v4794_v11  ;;  %vm8360_vm10 = vmmov %vm8342_vm0 }
 0x2e0   : > { %v4890_v59 = vmax.f32 %v4874_v48, 0.0  ;;  %v4872_v35 = vadd.f32 %v7780_v3, %v4849_v40  ;;  %4903 = vst.msk [vmem:[%s7809_s16 + $0x38] sm:$0xff] %vm8358_vm7, %v4887_v22  ;;  %vm8361_vm6 = vmmov %vm8342_vm0 }
 0x2e1   : > { %v4873_v62 = vadd.f32 %v7780_v3, %v4850_v8  ;;  %4812 = vst.msk [vmem:[#allocation2 + $0x68] sm:$0xff] %vm8360_vm10, %v4795_v53  ;;  %v4829_v20 = vld [vmem:[#allocation2 + $0x58] sm:$0xff]  ;;  %vm8362_vm14 = vmmov %vm8342_vm0 }
 0x2e2   : > { %4906 = vst.msk [vmem:[%s7809_s16 + $0x50] sm:$0xff] %vm8359_vm8, %v4890_v59  ;;  %v4888_v26 = vmax.f32 %v4872_v35, 0.0  ;;  %v4852_v7 = vmul.f32 %v7767_v9, %v4829_v20  ;;  %vm8363_vm13 = vmmov %vm8342_vm0 }
 0x2e3   : > { %v4889_v14 = vmax.f32 %v4873_v62, 0.0  ;;  %vm8364_vm15 = vmmov %vm8342_vm0 }
 0x2e4   : > { %4904 = vst.msk [vmem:[%s7809_s16 + $0x40] sm:$0xff] %vm8361_vm6, %v4888_v26  ;;  %v4832_v36 = vld [vmem:[#allocation2 + $0x70] sm:$0xff]  ;;  %v4875_v57 = vadd.f32 %v7780_v3, %v4852_v7  ;;  %vm8365_vm5 = vmmov %vm8342_vm0 }
 0x2e5   : > { %4905 = vst.msk [vmem:[%s7809_s16 + $0x48] sm:$0xff] %vm8362_vm14, %v4889_v14  ;;  %v4833_v55 = vld [vmem:[#allocation2 + $0x78] sm:$0xff]  ;;  %v4855_v31 = vmul.f32 %v7767_v9, %v4832_v36  ;;  %vm8366_vm9 = vmmov %vm8342_vm0 }
 0x2e6   : > { %v4856_v47 = vmul.f32 %v7767_v9, %v4833_v55  ;;  %v4830_v17 = vld [vmem:[#allocation2 + $0x60] sm:$0xff]  ;;  %v4891_v43 = vmax.f32 %v4875_v57, 0.0  ;;  %vm8367_vm2 = vmmov %vm8342_vm0 }
 0x2e7   : > { %v4878_v16 = vadd.f32 %v7780_v3, %v4855_v31  ;;  %v4853_v37 = vmul.f32 %v7767_v9, %v4830_v17 }
 0x2e8   : > { %v4879_v49 = vadd.f32 %v7780_v3, %v4856_v47  ;;  %v4831_v54 = vld [vmem:[#allocation2 + $0x68] sm:$0xff]  ;;  %4907 = vst.msk [vmem:[%s7809_s16 + $0x58] sm:$0xff] %vm8363_vm13, %v4891_v43 }
 0x2e9   : > { %v4894_v38 = vmax.f32 %v4878_v16, 0.0  ;;  %v4854_v0 = vmul.f32 %v7767_v9, %v4831_v54  ;;  %v4876_v25 = vadd.f32 %v7780_v3, %v4853_v37 }
 0x2ea   : > { %v4895_v34 = vmax.f32 %v4879_v49, 0.0 }
 0x2eb   : > { %4910 = vst.msk [vmem:[%s7809_s16 + $0x70] sm:$0xff] %vm8364_vm15, %v4894_v38  ;;  %v4877_v12 = vadd.f32 %v7780_v3, %v4854_v0  ;;  %v4892_v5 = vmax.f32 %v4876_v25, 0.0 }
 0x2ec   : > { %4911 = vst.msk [vmem:[%s7809_s16 + $0x78] sm:$0xff] %vm8365_vm5, %v4895_v34 }
 0x2ed   : > { %v4893_v13 = vmax.f32 %v4877_v12, 0.0  ;;  %4908 = vst.msk [vmem:[%s7809_s16 + $0x60] sm:$0xff] %vm8366_vm9, %v4892_v5 }
 0x2ef   : > { %4909 = vst.msk [vmem:[%s7809_s16 + $0x68] sm:$0xff] %vm8367_vm2, %v4893_v13 }
 0x2f0 PF: > { %s17_s28 = sadd.s32 1, %s6042_s28   ;;  %s8368_s24 = smov %s6034_s26 }
 0x2f1   : > { %p14_p7 = scmp.ge.s32.totalorder %s17_s28, 6   ;;  %s8369_s25 = smov %s6038_s27 }
 0x2f2   : > { %s8370_s26 = smov %s8373_s29  ;;  %s8371_s27 = smov %s8377_s30 }
 0x2f3   :  { %16 = sbr.rel (!%p14_p7) target bundleno = 3 (0x3), region = 112 }

</bundles_post_ra>
